<compile_context>
chip_gen: v6e
topology: v6e:2x2x1
jax: 0.10.0
libtpu: 0.0.40
codegen_flags: <defaults>
</compile_context>

<pallas_src>
import functools

import jax
import jax.numpy as jnp
import numpy as np
from jax.experimental import pallas as pl
from jax.experimental.pallas import tpu as pltpu

BN_EPS = 1e-5


def _round_up(x, m):
    return ((x + m - 1) // m) * m


def _res_block_kernel(x_ref, w1_ref, b1_ref, w2_ref, b2_ref, out_ref,
                      xpad_ref, col_ref, *, KH, KW):
    """Fused: conv1+BN+ReLU -> conv2+BN -> +residual -> ReLU, all resident in VMEM."""
    TN, H, W, C = x_ref.shape
    ph = (KH - 1) // 2
    pw = (KW - 1) // 2
    rows = TN * H * W
    KKC = KH * KW * C
    mxu_dtype = col_ref.dtype

    # Zero the padded scratch every step (halo must be zero; interior rewritten below).
    # Not program_id-gated: with a "parallel" batch axis each TensorCore owns its own
    # scratch, so step 0 is not guaranteed to run on every core.
    xpad_ref[...] = jnp.zeros_like(xpad_ref)

    # 'same' padding built in VMEM — no padded HBM copy in the wrapper.
    xpad_ref[:, ph:ph + H, pw:pw + W, :] = x_ref[...]

    def im2col():
        # Materialize the (TN,H,W,KH*KW*C) patch tensor once; a single large-K MXU
        # dot follows (instead of KH*KW tiny K=C matmuls + VPU adds).
        for kh in range(KH):
            for kw in range(KW):
                tap = kh * KW + kw
                col_ref[:, :, :, tap * C:(tap + 1) * C] = (
                    xpad_ref[:, kh:kh + H, kw:kw + W, :].astype(mxu_dtype))

    # ---- conv1 (+ BN scale folded into w1) + bias + ReLU ----
    im2col()
    h1 = jnp.dot(col_ref[...].reshape(rows, KKC), w1_ref[...],
                 preferred_element_type=jnp.float32)
    h1 = jnp.maximum(h1 + b1_ref[...], 0.0)                       # (rows, C)

    # ---- conv2 (+ BN) + residual add + ReLU ----
    xpad_ref[:, ph:ph + H, pw:pw + W, :] = h1.reshape(TN, H, W, C)
    im2col()
    h2 = jnp.dot(col_ref[...].reshape(rows, KKC), w2_ref[...],
                 preferred_element_type=jnp.float32)
    y = (h2 + b2_ref[...]).reshape(TN, H, W, C)
    out_ref[...] = jnp.maximum(y + x_ref[...], 0.0)               # lane-dense (C=128k) store


def _prep_conv_bn(w_oihw, gamma, beta, mean, var, C_pad, mxu_dtype):
    """Fold BN (inference) scale into the conv weight; pad channels; reorder for im2col."""
    Cout, Cin, KH, KW = w_oihw.shape
    scale = gamma / jnp.sqrt(var + BN_EPS)
    bias = beta - mean * scale
    w = w_oihw.astype(jnp.float32) * scale[:, None, None, None]   # scale per out-channel
    w = jnp.pad(w, ((0, C_pad - Cout), (0, C_pad - Cin), (0, 0), (0, 0)))
    # (Cout,Cin,KH,KW) -> (KH*KW*Cin, Cout), matching im2col column order (kh, kw, cin)
    w = jnp.transpose(w, (2, 3, 1, 0)).reshape(KH * KW * C_pad, C_pad)
    b = jnp.pad(bias.astype(jnp.float32), (0, C_pad - Cout)).reshape(1, C_pad)
    return w.astype(mxu_dtype), b


def residual_block_forward(x_nchw, params, *, batch_tile=1, use_bf16_mxu=False):
    """Pallas implementation of ResidualBlock.forward (inference-mode BN)."""
    N, C, H, W = x_nchw.shape
    Cout, Cin, KH, KW = params["w1"].shape
    assert Cin == C and Cout == C, "residual add requires in_channels == out_channels"
    assert params["w2"].shape == (C, C, KH, KW)
    assert N % batch_tile == 0
    # TODO(synk): PyTorch padding='same' with an EVEN kernel pads on the opposite side
    # from this (XLA-style lo=(K-1)//2); exact only for odd kernels (K=3 in TurboZero).
    # TODO(synk): bf16 MXU inputs (use_bf16_mxu=True) roughly double MXU throughput on
    # v6e/v7x but need a looser numeric tolerance than the 1e-4 used in the self-test.

    mxu_dtype = jnp.bfloat16 if use_bf16_mxu else jnp.float32
    C_pad = _round_up(C, 128)     # lane-dense channels: unmasked vld/vst, aligned MXU tiles

    w1, b1 = _prep_conv_bn(params["w1"], params["bn1_gamma"], params["bn1_beta"],
                           params["bn1_mean"], params["bn1_var"], C_pad, mxu_dtype)
    w2, b2 = _prep_conv_bn(params["w2"], params["bn2_gamma"], params["bn2_beta"],
                           params["bn2_mean"], params["bn2_var"], C_pad, mxu_dtype)

    # NCHW -> NHWC, zero-pad channels. (No spatial padding here — the 'same' halo is
    # built inside the kernel in VMEM, saving an extra HBM read+write per conv.)
    x_nhwc = jnp.transpose(x_nchw.astype(jnp.float32), (0, 2, 3, 1))
    if C_pad != C:
        x_nhwc = jnp.pad(x_nhwc, ((0, 0), (0, 0), (0, 0), (0, C_pad - C)))

    TN = batch_tile
    grid = (N // TN,)
    kern = functools.partial(_res_block_kernel, KH=KH, KW=KW)

    flops = 2 * 2 * N * H * W * (KH * KW * C_pad) * C_pad
    bytes_accessed = (2 * N * H * W * C_pad * 4
                      + 2 * (KH * KW * C_pad * C_pad + C_pad) * 4)

    out = pl.pallas_call(
        kern,
        out_shape=jax.ShapeDtypeStruct((N, H, W, C_pad), jnp.float32),
        grid=grid,
        in_specs=[
            pl.BlockSpec((TN, H, W, C_pad), lambda n: (n, 0, 0, 0)),          # x (and residual)
            pl.BlockSpec((KH * KW * C_pad, C_pad), lambda n: (0, 0)),         # w1 (BN-folded)
            pl.BlockSpec((1, C_pad), lambda n: (0, 0)),                       # b1
            pl.BlockSpec((KH * KW * C_pad, C_pad), lambda n: (0, 0)),         # w2 (BN-folded)
            pl.BlockSpec((1, C_pad), lambda n: (0, 0)),                       # b2
        ],
        out_specs=pl.BlockSpec((TN, H, W, C_pad), lambda n: (n, 0, 0, 0)),
        scratch_shapes=[
            pltpu.VMEM((TN, H + KH - 1, W + KW - 1, C_pad), jnp.float32),     # padded activation
            pltpu.VMEM((TN, H, W, KH * KW * C_pad), mxu_dtype),               # im2col patches
        ],
        compiler_params=pltpu.CompilerParams(
            dimension_semantics=("parallel",),      # megacore / v7x dual-TC batch sharding
            vmem_limit_bytes=64 * 1024 * 1024),
        cost_estimate=pl.CostEstimate(flops=flops, transcendentals=0,
                                      bytes_accessed=bytes_accessed),
    )(x_nhwc, w1, b1, w2, b2)

    if C_pad != C:
        out = out[..., :C]
    return jnp.transpose(out, (0, 3, 1, 2))          # back to NCHW


# ---------------- reference (plain JAX, PyTorch semantics) ----------------
def _ref_forward(x_nchw, params):
    def conv(x, w):
        return jax.lax.conv_general_dilated(
            x, w, window_strides=(1, 1), padding="SAME",
            dimension_numbers=("NCHW", "OIHW", "NCHW"))

    def bn(x, g, b, m, v):
        g = g.reshape(1, -1, 1, 1); b = b.reshape(1, -1, 1, 1)
        m = m.reshape(1, -1, 1, 1); v = v.reshape(1, -1, 1, 1)
        return (x - m) / jnp.sqrt(v + BN_EPS) * g + b

    out = jax.nn.relu(bn(conv(x_nchw, params["w1"]), params["bn1_gamma"],
                         params["bn1_beta"], params["bn1_mean"], params["bn1_var"]))
    out = bn(conv(out, params["w2"]), params["bn2_gamma"],
             params["bn2_beta"], params["bn2_mean"], params["bn2_var"])
    return jax.nn.relu(out + x_nchw)


if __name__ == "__main__":
    N, C, H, W, K = 2, 8, 16, 16, 3   # in_channels == out_channels (residual add requires it)

    key = jax.random.PRNGKey(0)
    ks = jax.random.split(key, 11)
    params = {
        "w1": jax.random.normal(ks[0], (C, C, K, K), jnp.float32) * 0.1,
        "w2": jax.random.normal(ks[1], (C, C, K, K), jnp.float32) * 0.1,
        "bn1_gamma": 1.0 + 0.1 * jax.random.normal(ks[2], (C,), jnp.float32),
        "bn1_beta": 0.1 * jax.random.normal(ks[3], (C,), jnp.float32),
        "bn1_mean": 0.1 * jax.random.normal(ks[4], (C,), jnp.float32),
        "bn1_var": jnp.abs(1.0 + 0.1 * jax.random.normal(ks[5], (C,), jnp.float32)),
        "bn2_gamma": 1.0 + 0.1 * jax.random.normal(ks[6], (C,), jnp.float32),
        "bn2_beta": 0.1 * jax.random.normal(ks[7], (C,), jnp.float32),
        "bn2_mean": 0.1 * jax.random.normal(ks[8], (C,), jnp.float32),
        "bn2_var": jnp.abs(1.0 + 0.1 * jax.random.normal(ks[9], (C,), jnp.float32)),
    }
    x = jax.random.normal(ks[10], (N, C, H, W), jnp.float32)

    out = jax.block_until_ready(residual_block_forward(x, params, batch_tile=1))
    ref = jax.block_until_ready(_ref_forward(x, params))

    assert out.shape == (N, C, H, W)
    np.testing.assert_allclose(np.asarray(out), np.asarray(ref), rtol=1e-4, atol=1e-4)
    print("KERNEL_OK")
</pallas_src>

<mosaic_0001>
module attributes {stable_mosaic.version = 11 : i64} {
  func.func @_res_block_kernel(%arg0: i32, %arg1: memref<1x16x16x128xf32, #tpu.memory_space<vmem>>, %arg2: memref<1152x128xf32, #tpu.memory_space<vmem>>, %arg3: memref<1x128xf32, #tpu.memory_space<vmem>>, %arg4: memref<1152x128xf32, #tpu.memory_space<vmem>>, %arg5: memref<1x128xf32, #tpu.memory_space<vmem>>, %arg6: memref<1x16x16x128xf32, #tpu.memory_space<vmem>>, %arg7: memref<1x18x18x128xf32, #tpu.memory_space<vmem>>, %arg8: memref<1x16x16x1152xf32, #tpu.memory_space<vmem>>) attributes {dimension_semantics = [#tpu.dimension_semantics<parallel>], iteration_bounds = array<i64: 2>, scalar_prefetch = 0 : i64, scratch_operands = 2 : i64, tpu.core_type = #tpu.core_type<tc>, window_params = [{transform_indices = @transform_0, window_bounds = array<i64: 1, 16, 16, 128>}, {pipeline_mode = #tpu.pipeline_mode<synchronous>, transform_indices = @transform_1, window_bounds = array<i64: 1152, 128>}, {pipeline_mode = #tpu.pipeline_mode<synchronous>, transform_indices = @transform_2, window_bounds = array<i64: 1, 128>}, {pipeline_mode = #tpu.pipeline_mode<synchronous>, transform_indices = @transform_3, window_bounds = array<i64: 1152, 128>}, {pipeline_mode = #tpu.pipeline_mode<synchronous>, transform_indices = @transform_4, window_bounds = array<i64: 1, 128>}, {transform_indices = @transform_5, window_bounds = array<i64: 1, 16, 16, 128>}]} {
    %cst = arith.constant 0.000000e+00 : f32
    %0 = vector.broadcast %cst : f32 to vector<1x18x18x128xf32>
    %c0 = arith.constant 0 : index
    %c0_0 = arith.constant 0 : index
    %c0_1 = arith.constant 0 : index
    %c0_2 = arith.constant 0 : index
    %1 = vector.load %arg7[%c0, %c0_0, %c0_1, %c0_2] : memref<1x18x18x128xf32, #tpu.memory_space<vmem>>, vector<1x18x18x128xf32>
    tpu.vector_store %arg7[%c0, %c0_0, %c0_1, %c0_2], %0 {strides = array<i32>} : memref<1x18x18x128xf32, #tpu.memory_space<vmem>>, vector<1x18x18x128xf32>,
    %c0_3 = arith.constant 0 : index
    %c0_4 = arith.constant 0 : index
    %c0_5 = arith.constant 0 : index
    %c0_6 = arith.constant 0 : index
    %2 = vector.load %arg1[%c0_3, %c0_4, %c0_5, %c0_6] : memref<1x16x16x128xf32, #tpu.memory_space<vmem>>, vector<1x16x16x128xf32>
    %c0_7 = arith.constant 0 : index
    %c1 = arith.constant 1 : index
    %c1_8 = arith.constant 1 : index
    %c0_9 = arith.constant 0 : index
    %3 = vector.load %arg7[%c0_7, %c1, %c1_8, %c0_9] : memref<1x18x18x128xf32, #tpu.memory_space<vmem>>, vector<1x16x16x128xf32>
    tpu.vector_store %arg7[%c0_7, %c1, %c1_8, %c0_9], %2 {strides = array<i32>} : memref<1x18x18x128xf32, #tpu.memory_space<vmem>>, vector<1x16x16x128xf32>,
    %c0_10 = arith.constant 0 : index
    %c0_11 = arith.constant 0 : index
    %c0_12 = arith.constant 0 : index
    %c0_13 = arith.constant 0 : index
    %4 = vector.load %arg7[%c0_10, %c0_11, %c0_12, %c0_13] : memref<1x18x18x128xf32, #tpu.memory_space<vmem>>, vector<1x16x16x128xf32>
    %c0_14 = arith.constant 0 : index
    %c0_15 = arith.constant 0 : index
    %c0_16 = arith.constant 0 : index
    %c0_17 = arith.constant 0 : index
    %5 = vector.load %arg8[%c0_14, %c0_15, %c0_16, %c0_17] : memref<1x16x16x1152xf32, #tpu.memory_space<vmem>>, vector<1x16x16x128xf32>
    tpu.vector_store %arg8[%c0_14, %c0_15, %c0_16, %c0_17], %4 {strides = array<i32>} : memref<1x16x16x1152xf32, #tpu.memory_space<vmem>>, vector<1x16x16x128xf32>,
    %c0_18 = arith.constant 0 : index
    %c0_19 = arith.constant 0 : index
    %c1_20 = arith.constant 1 : index
    %c0_21 = arith.constant 0 : index
    %6 = vector.load %arg7[%c0_18, %c0_19, %c1_20, %c0_21] : memref<1x18x18x128xf32, #tpu.memory_space<vmem>>, vector<1x16x16x128xf32>
    %c0_22 = arith.constant 0 : index
    %c0_23 = arith.constant 0 : index
    %c0_24 = arith.constant 0 : index
    %c128 = arith.constant 128 : index
    %7 = vector.load %arg8[%c0_22, %c0_23, %c0_24, %c128] : memref<1x16x16x1152xf32, #tpu.memory_space<vmem>>, vector<1x16x16x128xf32>
    tpu.vector_store %arg8[%c0_22, %c0_23, %c0_24, %c128], %6 {strides = array<i32>} : memref<1x16x16x1152xf32, #tpu.memory_space<vmem>>, vector<1x16x16x128xf32>,
    %c0_25 = arith.constant 0 : index
    %c0_26 = arith.constant 0 : index
    %c2 = arith.constant 2 : index
    %c0_27 = arith.constant 0 : index
    %8 = vector.load %arg7[%c0_25, %c0_26, %c2, %c0_27] : memref<1x18x18x128xf32, #tpu.memory_space<vmem>>, vector<1x16x16x128xf32>
    %c0_28 = arith.constant 0 : index
    %c0_29 = arith.constant 0 : index
    %c0_30 = arith.constant 0 : index
    %c256 = arith.constant 256 : index
    %9 = vector.load %arg8[%c0_28, %c0_29, %c0_30, %c256] : memref<1x16x16x1152xf32, #tpu.memory_space<vmem>>, vector<1x16x16x128xf32>
    tpu.vector_store %arg8[%c0_28, %c0_29, %c0_30, %c256], %8 {strides = array<i32>} : memref<1x16x16x1152xf32, #tpu.memory_space<vmem>>, vector<1x16x16x128xf32>,
    %c0_31 = arith.constant 0 : index
    %c1_32 = arith.constant 1 : index
    %c0_33 = arith.constant 0 : index
    %c0_34 = arith.constant 0 : index
    %10 = vector.load %arg7[%c0_31, %c1_32, %c0_33, %c0_34] : memref<1x18x18x128xf32, #tpu.memory_space<vmem>>, vector<1x16x16x128xf32>
    %c0_35 = arith.constant 0 : index
    %c0_36 = arith.constant 0 : index
    %c0_37 = arith.constant 0 : index
    %c384 = arith.constant 384 : index
    %11 = vector.load %arg8[%c0_35, %c0_36, %c0_37, %c384] : memref<1x16x16x1152xf32, #tpu.memory_space<vmem>>, vector<1x16x16x128xf32>
    tpu.vector_store %arg8[%c0_35, %c0_36, %c0_37, %c384], %10 {strides = array<i32>} : memref<1x16x16x1152xf32, #tpu.memory_space<vmem>>, vector<1x16x16x128xf32>,
    %c0_38 = arith.constant 0 : index
    %c1_39 = arith.constant 1 : index
    %c1_40 = arith.constant 1 : index
    %c0_41 = arith.constant 0 : index
    %12 = vector.load %arg7[%c0_38, %c1_39, %c1_40, %c0_41] : memref<1x18x18x128xf32, #tpu.memory_space<vmem>>, vector<1x16x16x128xf32>
    %c0_42 = arith.constant 0 : index
    %c0_43 = arith.constant 0 : index
    %c0_44 = arith.constant 0 : index
    %c512 = arith.constant 512 : index
    %13 = vector.load %arg8[%c0_42, %c0_43, %c0_44, %c512] : memref<1x16x16x1152xf32, #tpu.memory_space<vmem>>, vector<1x16x16x128xf32>
    tpu.vector_store %arg8[%c0_42, %c0_43, %c0_44, %c512], %12 {strides = array<i32>} : memref<1x16x16x1152xf32, #tpu.memory_space<vmem>>, vector<1x16x16x128xf32>,
    %c0_45 = arith.constant 0 : index
    %c1_46 = arith.constant 1 : index
    %c2_47 = arith.constant 2 : index
    %c0_48 = arith.constant 0 : index
    %14 = vector.load %arg7[%c0_45, %c1_46, %c2_47, %c0_48] : memref<1x18x18x128xf32, #tpu.memory_space<vmem>>, vector<1x16x16x128xf32>
    %c0_49 = arith.constant 0 : index
    %c0_50 = arith.constant 0 : index
    %c0_51 = arith.constant 0 : index
    %c640 = arith.constant 640 : index
    %15 = vector.load %arg8[%c0_49, %c0_50, %c0_51, %c640] : memref<1x16x16x1152xf32, #tpu.memory_space<vmem>>, vector<1x16x16x128xf32>
    tpu.vector_store %arg8[%c0_49, %c0_50, %c0_51, %c640], %14 {strides = array<i32>} : memref<1x16x16x1152xf32, #tpu.memory_space<vmem>>, vector<1x16x16x128xf32>,
    %c0_52 = arith.constant 0 : index
    %c2_53 = arith.constant 2 : index
    %c0_54 = arith.constant 0 : index
    %c0_55 = arith.constant 0 : index
    %16 = vector.load %arg7[%c0_52, %c2_53, %c0_54, %c0_55] : memref<1x18x18x128xf32, #tpu.memory_space<vmem>>, vector<1x16x16x128xf32>
    %c0_56 = arith.constant 0 : index
    %c0_57 = arith.constant 0 : index
    %c0_58 = arith.constant 0 : index
    %c768 = arith.constant 768 : index
    %17 = vector.load %arg8[%c0_56, %c0_57, %c0_58, %c768] : memref<1x16x16x1152xf32, #tpu.memory_space<vmem>>, vector<1x16x16x128xf32>
    tpu.vector_store %arg8[%c0_56, %c0_57, %c0_58, %c768], %16 {strides = array<i32>} : memref<1x16x16x1152xf32, #tpu.memory_space<vmem>>, vector<1x16x16x128xf32>,
    %c0_59 = arith.constant 0 : index
    %c2_60 = arith.constant 2 : index
    %c1_61 = arith.constant 1 : index
    %c0_62 = arith.constant 0 : index
    %18 = vector.load %arg7[%c0_59, %c2_60, %c1_61, %c0_62] : memref<1x18x18x128xf32, #tpu.memory_space<vmem>>, vector<1x16x16x128xf32>
    %c0_63 = arith.constant 0 : index
    %c0_64 = arith.constant 0 : index
    %c0_65 = arith.constant 0 : index
    %c896 = arith.constant 896 : index
    %19 = vector.load %arg8[%c0_63, %c0_64, %c0_65, %c896] : memref<1x16x16x1152xf32, #tpu.memory_space<vmem>>, vector<1x16x16x128xf32>
    tpu.vector_store %arg8[%c0_63, %c0_64, %c0_65, %c896], %18 {strides = array<i32>} : memref<1x16x16x1152xf32, #tpu.memory_space<vmem>>, vector<1x16x16x128xf32>,
    %c0_66 = arith.constant 0 : index
    %c2_67 = arith.constant 2 : index
    %c2_68 = arith.constant 2 : index
    %c0_69 = arith.constant 0 : index
    %20 = vector.load %arg7[%c0_66, %c2_67, %c2_68, %c0_69] : memref<1x18x18x128xf32, #tpu.memory_space<vmem>>, vector<1x16x16x128xf32>
    %c0_70 = arith.constant 0 : index
    %c0_71 = arith.constant 0 : index
    %c0_72 = arith.constant 0 : index
    %c1024 = arith.constant 1024 : index
    %21 = vector.load %arg8[%c0_70, %c0_71, %c0_72, %c1024] : memref<1x16x16x1152xf32, #tpu.memory_space<vmem>>, vector<1x16x16x128xf32>
    tpu.vector_store %arg8[%c0_70, %c0_71, %c0_72, %c1024], %20 {strides = array<i32>} : memref<1x16x16x1152xf32, #tpu.memory_space<vmem>>, vector<1x16x16x128xf32>,
    %c0_73 = arith.constant 0 : index
    %c0_74 = arith.constant 0 : index
    %c0_75 = arith.constant 0 : index
    %c0_76 = arith.constant 0 : index
    %22 = vector.load %arg8[%c0_73, %c0_74, %c0_75, %c0_76] : memref<1x16x16x1152xf32, #tpu.memory_space<vmem>>, vector<1x16x16x1152xf32>
    %23 = vector.shape_cast %22 : vector<1x16x16x1152xf32> to vector<256x1152xf32>
    %c0_77 = arith.constant 0 : index
    %c0_78 = arith.constant 0 : index
    %24 = vector.load %arg2[%c0_77, %c0_78] : memref<1152x128xf32, #tpu.memory_space<vmem>>, vector<1152x128xf32>
    %cst_79 = arith.constant dense<0.000000e+00> : vector<256x128xf32>
    %25 = tpu.matmul %23, %24, %cst_79 {dimension_numbers = #tpu.dot_dimension_numbers<[1], [0], [0], [1], [0, 0, 1, 1], [], []>} : vector<256x1152xf32>, vector<1152x128xf32>, vector<256x128xf32> -> vector<256x128xf32>
    %c0_80 = arith.constant 0 : index
    %c0_81 = arith.constant 0 : index
    %26 = vector.load %arg3[%c0_80, %c0_81] : memref<1x128xf32, #tpu.memory_space<vmem>>, vector<1x128xf32>
    %27 = vector.broadcast %26 : vector<1x128xf32> to vector<256x128xf32>
    %28 = arith.addf %25, %27 : vector<256x128xf32>
    %cst_82 = arith.constant 0.000000e+00 : f32
    %29 = vector.broadcast %cst_82 : f32 to vector<256x128xf32>
    %30 = arith.maximumf %28, %29 : vector<256x128xf32>
    %31 = vector.shape_cast %30 : vector<256x128xf32> to vector<1x16x16x128xf32>
    %c0_83 = arith.constant 0 : index
    %c1_84 = arith.constant 1 : index
    %c1_85 = arith.constant 1 : index
    %c0_86 = arith.constant 0 : index
    %32 = vector.load %arg7[%c0_83, %c1_84, %c1_85, %c0_86] : memref<1x18x18x128xf32, #tpu.memory_space<vmem>>, vector<1x16x16x128xf32>
    tpu.vector_store %arg7[%c0_83, %c1_84, %c1_85, %c0_86], %31 {strides = array<i32>} : memref<1x18x18x128xf32, #tpu.memory_space<vmem>>, vector<1x16x16x128xf32>,
    %c0_87 = arith.constant 0 : index
    %c0_88 = arith.constant 0 : index
    %c0_89 = arith.constant 0 : index
    %c0_90 = arith.constant 0 : index
    %33 = vector.load %arg7[%c0_87, %c0_88, %c0_89, %c0_90] : memref<1x18x18x128xf32, #tpu.memory_space<vmem>>, vector<1x16x16x128xf32>
    %c0_91 = arith.constant 0 : index
    %c0_92 = arith.constant 0 : index
    %c0_93 = arith.constant 0 : index
    %c0_94 = arith.constant 0 : index
    %34 = vector.load %arg8[%c0_91, %c0_92, %c0_93, %c0_94] : memref<1x16x16x1152xf32, #tpu.memory_space<vmem>>, vector<1x16x16x128xf32>
    tpu.vector_store %arg8[%c0_91, %c0_92, %c0_93, %c0_94], %33 {strides = array<i32>} : memref<1x16x16x1152xf32, #tpu.memory_space<vmem>>, vector<1x16x16x128xf32>,
    %c0_95 = arith.constant 0 : index
    %c0_96 = arith.constant 0 : index
    %c1_97 = arith.constant 1 : index
    %c0_98 = arith.constant 0 : index
    %35 = vector.load %arg7[%c0_95, %c0_96, %c1_97, %c0_98] : memref<1x18x18x128xf32, #tpu.memory_space<vmem>>, vector<1x16x16x128xf32>
    %c0_99 = arith.constant 0 : index
    %c0_100 = arith.constant 0 : index
    %c0_101 = arith.constant 0 : index
    %c128_102 = arith.constant 128 : index
    %36 = vector.load %arg8[%c0_99, %c0_100, %c0_101, %c128_102] : memref<1x16x16x1152xf32, #tpu.memory_space<vmem>>, vector<1x16x16x128xf32>
    tpu.vector_store %arg8[%c0_99, %c0_100, %c0_101, %c128_102], %35 {strides = array<i32>} : memref<1x16x16x1152xf32, #tpu.memory_space<vmem>>, vector<1x16x16x128xf32>,
    %c0_103 = arith.constant 0 : index
    %c0_104 = arith.constant 0 : index
    %c2_105 = arith.constant 2 : index
    %c0_106 = arith.constant 0 : index
    %37 = vector.load %arg7[%c0_103, %c0_104, %c2_105, %c0_106] : memref<1x18x18x128xf32, #tpu.memory_space<vmem>>, vector<1x16x16x128xf32>
    %c0_107 = arith.constant 0 : index
    %c0_108 = arith.constant 0 : index
    %c0_109 = arith.constant 0 : index
    %c256_110 = arith.constant 256 : index
    %38 = vector.load %arg8[%c0_107, %c0_108, %c0_109, %c256_110] : memref<1x16x16x1152xf32, #tpu.memory_space<vmem>>, vector<1x16x16x128xf32>
    tpu.vector_store %arg8[%c0_107, %c0_108, %c0_109, %c256_110], %37 {strides = array<i32>} : memref<1x16x16x1152xf32, #tpu.memory_space<vmem>>, vector<1x16x16x128xf32>,
    %c0_111 = arith.constant 0 : index
    %c1_112 = arith.constant 1 : index
    %c0_113 = arith.constant 0 : index
    %c0_114 = arith.constant 0 : index
    %39 = vector.load %arg7[%c0_111, %c1_112, %c0_113, %c0_114] : memref<1x18x18x128xf32, #tpu.memory_space<vmem>>, vector<1x16x16x128xf32>
    %c0_115 = arith.constant 0 : index
    %c0_116 = arith.constant 0 : index
    %c0_117 = arith.constant 0 : index
    %c384_118 = arith.constant 384 : index
    %40 = vector.load %arg8[%c0_115, %c0_116, %c0_117, %c384_118] : memref<1x16x16x1152xf32, #tpu.memory_space<vmem>>, vector<1x16x16x128xf32>
    tpu.vector_store %arg8[%c0_115, %c0_116, %c0_117, %c384_118], %39 {strides = array<i32>} : memref<1x16x16x1152xf32, #tpu.memory_space<vmem>>, vector<1x16x16x128xf32>,
    %c0_119 = arith.constant 0 : index
    %c1_120 = arith.constant 1 : index
    %c1_121 = arith.constant 1 : index
    %c0_122 = arith.constant 0 : index
    %41 = vector.load %arg7[%c0_119, %c1_120, %c1_121, %c0_122] : memref<1x18x18x128xf32, #tpu.memory_space<vmem>>, vector<1x16x16x128xf32>
    %c0_123 = arith.constant 0 : index
    %c0_124 = arith.constant 0 : index
    %c0_125 = arith.constant 0 : index
    %c512_126 = arith.constant 512 : index
    %42 = vector.load %arg8[%c0_123, %c0_124, %c0_125, %c512_126] : memref<1x16x16x1152xf32, #tpu.memory_space<vmem>>, vector<1x16x16x128xf32>
    tpu.vector_store %arg8[%c0_123, %c0_124, %c0_125, %c512_126], %41 {strides = array<i32>} : memref<1x16x16x1152xf32, #tpu.memory_space<vmem>>, vector<1x16x16x128xf32>,
    %c0_127 = arith.constant 0 : index
    %c1_128 = arith.constant 1 : index
    %c2_129 = arith.constant 2 : index
    %c0_130 = arith.constant 0 : index
    %43 = vector.load %arg7[%c0_127, %c1_128, %c2_129, %c0_130] : memref<1x18x18x128xf32, #tpu.memory_space<vmem>>, vector<1x16x16x128xf32>
    %c0_131 = arith.constant 0 : index
    %c0_132 = arith.constant 0 : index
    %c0_133 = arith.constant 0 : index
    %c640_134 = arith.constant 640 : index
    %44 = vector.load %arg8[%c0_131, %c0_132, %c0_133, %c640_134] : memref<1x16x16x1152xf32, #tpu.memory_space<vmem>>, vector<1x16x16x128xf32>
    tpu.vector_store %arg8[%c0_131, %c0_132, %c0_133, %c640_134], %43 {strides = array<i32>} : memref<1x16x16x1152xf32, #tpu.memory_space<vmem>>, vector<1x16x16x128xf32>,
    %c0_135 = arith.constant 0 : index
    %c2_136 = arith.constant 2 : index
    %c0_137 = arith.constant 0 : index
    %c0_138 = arith.constant 0 : index
    %45 = vector.load %arg7[%c0_135, %c2_136, %c0_137, %c0_138] : memref<1x18x18x128xf32, #tpu.memory_space<vmem>>, vector<1x16x16x128xf32>
    %c0_139 = arith.constant 0 : index
    %c0_140 = arith.constant 0 : index
    %c0_141 = arith.constant 0 : index
    %c768_142 = arith.constant 768 : index
    %46 = vector.load %arg8[%c0_139, %c0_140, %c0_141, %c768_142] : memref<1x16x16x1152xf32, #tpu.memory_space<vmem>>, vector<1x16x16x128xf32>
    tpu.vector_store %arg8[%c0_139, %c0_140, %c0_141, %c768_142], %45 {strides = array<i32>} : memref<1x16x16x1152xf32, #tpu.memory_space<vmem>>, vector<1x16x16x128xf32>,
    %c0_143 = arith.constant 0 : index
    %c2_144 = arith.constant 2 : index
    %c1_145 = arith.constant 1 : index
    %c0_146 = arith.constant 0 : index
    %47 = vector.load %arg7[%c0_143, %c2_144, %c1_145, %c0_146] : memref<1x18x18x128xf32, #tpu.memory_space<vmem>>, vector<1x16x16x128xf32>
    %c0_147 = arith.constant 0 : index
    %c0_148 = arith.constant 0 : index
    %c0_149 = arith.constant 0 : index
    %c896_150 = arith.constant 896 : index
    %48 = vector.load %arg8[%c0_147, %c0_148, %c0_149, %c896_150] : memref<1x16x16x1152xf32, #tpu.memory_space<vmem>>, vector<1x16x16x128xf32>
    tpu.vector_store %arg8[%c0_147, %c0_148, %c0_149, %c896_150], %47 {strides = array<i32>} : memref<1x16x16x1152xf32, #tpu.memory_space<vmem>>, vector<1x16x16x128xf32>,
    %c0_151 = arith.constant 0 : index
    %c2_152 = arith.constant 2 : index
    %c2_153 = arith.constant 2 : index
    %c0_154 = arith.constant 0 : index
    %49 = vector.load %arg7[%c0_151, %c2_152, %c2_153, %c0_154] : memref<1x18x18x128xf32, #tpu.memory_space<vmem>>, vector<1x16x16x128xf32>
    %c0_155 = arith.constant 0 : index
    %c0_156 = arith.constant 0 : index
    %c0_157 = arith.constant 0 : index
    %c1024_158 = arith.constant 1024 : index
    %50 = vector.load %arg8[%c0_155, %c0_156, %c0_157, %c1024_158] : memref<1x16x16x1152xf32, #tpu.memory_space<vmem>>, vector<1x16x16x128xf32>
    tpu.vector_store %arg8[%c0_155, %c0_156, %c0_157, %c1024_158], %49 {strides = array<i32>} : memref<1x16x16x1152xf32, #tpu.memory_space<vmem>>, vector<1x16x16x128xf32>,
    %c0_159 = arith.constant 0 : index
    %c0_160 = arith.constant 0 : index
    %c0_161 = arith.constant 0 : index
    %c0_162 = arith.constant 0 : index
    %51 = vector.load %arg8[%c0_159, %c0_160, %c0_161, %c0_162] : memref<1x16x16x1152xf32, #tpu.memory_space<vmem>>, vector<1x16x16x1152xf32>
    %52 = vector.shape_cast %51 : vector<1x16x16x1152xf32> to vector<256x1152xf32>
    %c0_163 = arith.constant 0 : index
    %c0_164 = arith.constant 0 : index
    %53 = vector.load %arg4[%c0_163, %c0_164] : memref<1152x128xf32, #tpu.memory_space<vmem>>, vector<1152x128xf32>
    %cst_165 = arith.constant dense<0.000000e+00> : vector<256x128xf32>
    %54 = tpu.matmul %52, %53, %cst_165 {dimension_numbers = #tpu.dot_dimension_numbers<[1], [0], [0], [1], [0, 0, 1, 1], [], []>} : vector<256x1152xf32>, vector<1152x128xf32>, vector<256x128xf32> -> vector<256x128xf32>
    %c0_166 = arith.constant 0 : index
    %c0_167 = arith.constant 0 : index
    %55 = vector.load %arg5[%c0_166, %c0_167] : memref<1x128xf32, #tpu.memory_space<vmem>>, vector<1x128xf32>
    %56 = vector.broadcast %55 : vector<1x128xf32> to vector<256x128xf32>
    %57 = arith.addf %54, %56 : vector<256x128xf32>
    %58 = vector.shape_cast %57 : vector<256x128xf32> to vector<1x16x16x128xf32>
    %c0_168 = arith.constant 0 : index
    %c0_169 = arith.constant 0 : index
    %c0_170 = arith.constant 0 : index
    %c0_171 = arith.constant 0 : index
    %59 = vector.load %arg1[%c0_168, %c0_169, %c0_170, %c0_171] : memref<1x16x16x128xf32, #tpu.memory_space<vmem>>, vector<1x16x16x128xf32>
    %60 = arith.addf %58, %59 : vector<1x16x16x128xf32>
    %cst_172 = arith.constant 0.000000e+00 : f32
    %61 = vector.broadcast %cst_172 : f32 to vector<1x16x16x128xf32>
    %62 = arith.maximumf %60, %61 : vector<1x16x16x128xf32>
    %c0_173 = arith.constant 0 : index
    %c0_174 = arith.constant 0 : index
    %c0_175 = arith.constant 0 : index
    %c0_176 = arith.constant 0 : index
    %63 = vector.load %arg6[%c0_173, %c0_174, %c0_175, %c0_176] : memref<1x16x16x128xf32, #tpu.memory_space<vmem>>, vector<1x16x16x128xf32>
    tpu.vector_store %arg6[%c0_173, %c0_174, %c0_175, %c0_176], %62 {strides = array<i32>} : memref<1x16x16x128xf32, #tpu.memory_space<vmem>>, vector<1x16x16x128xf32>,
    return
  }
  func.func @transform_0(%arg0: i32) -> (i32, i32, i32, i32) {
    %c0_i32 = arith.constant 0 : i32
    %c0_i32_0 = arith.constant 0 : i32
    %c0_i32_1 = arith.constant 0 : i32
    %c0_i32_2 = arith.constant 0 : i32
    return %arg0, %c0_i32, %c0_i32_0, %c0_i32_1 : i32, i32, i32, i32
  }
  func.func @transform_1(%arg0: i32) -> (i32, i32) {
    %c0_i32 = arith.constant 0 : i32
    %c0_i32_0 = arith.constant 0 : i32
    %c0_i32_1 = arith.constant 0 : i32
    return %c0_i32, %c0_i32_0 : i32, i32
  }
  func.func @transform_2(%arg0: i32) -> (i32, i32) {
    %c0_i32 = arith.constant 0 : i32
    %c0_i32_0 = arith.constant 0 : i32
    %c0_i32_1 = arith.constant 0 : i32
    return %c0_i32, %c0_i32_0 : i32, i32
  }
  func.func @transform_3(%arg0: i32) -> (i32, i32) {
    %c0_i32 = arith.constant 0 : i32
    %c0_i32_0 = arith.constant 0 : i32
    %c0_i32_1 = arith.constant 0 : i32
    return %c0_i32, %c0_i32_0 : i32, i32
  }
  func.func @transform_4(%arg0: i32) -> (i32, i32) {
    %c0_i32 = arith.constant 0 : i32
    %c0_i32_0 = arith.constant 0 : i32
    %c0_i32_1 = arith.constant 0 : i32
    return %c0_i32, %c0_i32_0 : i32, i32
  }
  func.func @transform_5(%arg0: i32) -> (i32, i32, i32, i32) {
    %c0_i32 = arith.constant 0 : i32
    %c0_i32_0 = arith.constant 0 : i32
    %c0_i32_1 = arith.constant 0 : i32
    %c0_i32_2 = arith.constant 0 : i32
    return %arg0, %c0_i32, %c0_i32_0, %c0_i32_1 : i32, i32, i32, i32
  }
}

</mosaic_0001>

<bundles_post_ra>
// kernel: tpu_custom_call.1
= control target key start
LH: loop header
LB: loop body
LE: loop exit
PB: predicated region body
PF: predicated region fallthrough
CT: control target
= control target key end

     0   :  { %10 = vsyncpa [#allocation5], 0  ;;  %s7511_s0 = inlined_call_operand.hbm [shape: f32[2,16,16,128], index: 0, kind: input, shape index: {}]   ;;  %s7512_s1 = inlined_call_operand.hbm [shape: f32[1152,128], index: 1, kind: input, shape index: {}]   ;;  %s7513_s2 = inlined_call_operand.vmem [shape: f32[1,128], index: 2, kind: input, shape index: {}]   ;;  %s7514_s3 = inlined_call_operand.hbm [shape: f32[1152,128], index: 3, kind: input, shape index: {}]   ;;  %s7515_s4 = inlined_call_operand.vmem [shape: f32[1,128], index: 4, kind: input, shape index: {}]   ;;  %s7516_s5 = inlined_call_operand.hbm [shape: f32[2,16,16,128], index: 5, kind: output, shape index: {}]  }
   0x1   :  { %12 = vsyncpa [#allocation5 + $0x1], 0 }
   0x2   :  { %13 = vsyncpa [#allocation8], 0 }
   0x3   :  { %14 = vsyncpa [#allocation6], 0 }
   0x4   :  { %16 = vsyncpa [#allocation6 + $0x1], 0  ;;  %s5545_s18 = smov 0   ;;  %s5547_s19 = smov 0  }
   0x5   :  { %s5549_s20 = smov 0   ;;  %s5551_s21 = smov 0  }
   0x6 LB: > { %s5566_s22 = sadd.s32 4294967295, %s5504_s21   ;;  %s4970_s23 = sadd.s32 4294967294, %s5504_s21   ;;  %s5504_s21 = sphi %s5551_s21, %s7564_s21   ;;  %s5500_s20 = sphi %s5549_s20, %s7563_s20   ;;  %s5496_s19 = sphi %s5547_s19, %s7562_s19   ;;  %s5492_s18 = sphi %s5545_s18, %s7561_s18  }
   0x7   : > { %p42_p0 = scmp.ne.s32.totalorder %s5496_s19, %s5492_s18  ;;  %p7517_p1 = scmp.eq.s32.totalorder %s5566_s22, 0 }
   0x8   : > { %p150_p2 = scmp.eq.s32.totalorder %s5566_s22, 1  ;;  %p156_p3 = scmp.eq.s32.totalorder %s4970_s23, 1 }
   0x9   : > { %p5575_p4 = por %p7517_p1, %p42_p0  ;;  %p4971_p5 = scmp.ge.s32.totalorder %s5504_s21, 1 }
   0xa   : > { %p5580_p6 = por %p156_p3, %p42_p0  ;;  %p163_p7 = scmp.lt.s32.totalorder %s5504_s21, 3 }
   0xb   : > { %s7531_s24 = scalar_select %p5575_p4, 1, 0 }
   0xc   : > { %s7532_s25 = scalar_select %p5580_p6, 1, 0 }
   0xd   : > { %p5585_p8 = pnand %p4971_p5, %p163_p7  ;;  %s5506_s27 = smov [#allocation7]  }
   0xe   : > { %s175_s28 = sshll.u32 %s5506_s27, 4  ;;  %s5507_s30 = smov [#allocation9]   ;;  %s176_s28 = int_to_ptr.vmem [resolvable:$true] %s175_s28 }
   0xf   : > { %s7533_s26 = scalar_select %p5585_p8, 1, 0 }
  0x10   : > { %p5260_p9 = pneg %p5585_p8  ;;  %s191_s6 = sshll.u32 %s5507_s30, 4  ;;  %s192_s6 = int_to_ptr.vmem [resolvable:$true] %s191_s6 }
  0x11   : > { %s5367_s7 = scalar_lea.vmem %s176_s28, 18432  ;;  %p5375_p5 = scmp.lt.s32.totalorder %s176_s28, %s176_s28 }
  0x12   : > { %p5594_p11 = pnand %p5260_p9, %p7517_p1  ;;  %p5368_p13 = scmp.ne.s32.totalorder %s176_s28, %s5367_s7 }
  0x13   : > { %p5376_p7 = scmp.lt.s32.totalorder %s5367_s7, %s5367_s7 }
  0x14   : > { %p5358_p12 = pneg %p5594_p11 }
  0x15   : > { %p5377_p10 = por %p5376_p7, %p5375_p5 }
  0x16   : > { %p5370_p0 = pnand %p5368_p13, %p5358_p12 }
  0x18   : > { %p5371_p3 = pneg %p5370_p0 }
  0x1a   : > { %p5378_p9 = pnand %p5377_p10, %p5371_p3 }
  0x1c   : > { %5381 = shalt.err (!%p5378_p9)
}
  0x1d   : > { %s7518_s8 = smov 128   ;;  %s5509_s9 = smov 8  }
  0x1e   : > { %5263 = dma.hbm_to_vmem [thread:$0]  (!%p5594_p11), %s7512_s1, 18432, %s176_s28, [#allocation8], %s7518_s8, %s7518_s8, %s5509_s9  }
  0x1f   : > { %s5393_s12 = scalar_lea.vmem %s192_s6, 18432  ;;  %p5401_p10 = scmp.lt.s32.totalorder %s192_s6, %s192_s6 }
  0x20   : > { %p5394_p13 = scmp.ne.s32.totalorder %s192_s6, %s5393_s12  ;;  %p5402_p3 = scmp.lt.s32.totalorder %s5393_s12, %s5393_s12 }
  0x22   : > { %p5396_p0 = pnand %p5394_p13, %p5358_p12  ;;  %p5403_p7 = por %p5402_p3, %p5401_p10 }
  0x24   : > { %p5397_p5 = pneg %p5396_p0 }
  0x26   : > { %p5404_p9 = pnand %p5403_p7, %p5397_p5 }
  0x28   : > { %5407 = shalt.err (!%p5404_p9)
}
  0x29   : > { %5266 = dma.hbm_to_vmem [thread:$0]  (!%p5594_p11), %s7514_s3, 18432, %s192_s6, [#allocation8], %s7518_s8, %s7518_s8, %s5509_s9  }
  0x2a   : > { %s5623_s15 = sadd.s32 1, %s5504_s21   ;;  %s29_s16 = sadd.s32 1, %s5500_s20 }
  0x2b   : > { %s26_s17 = ssub.s32 %s5504_s21, %s5623_s15  ;;  %p36_p12 = scmp.ne.s32.totalorder %s5500_s20, %s5496_s19 }
  0x2c   : > { %p27_p13 = scmp.eq.s32.totalorder %s26_s17, 0  ;;  %p37_p0 = scmp.eq.s32.totalorder %s5504_s21, 0 }
  0x2d   : > { %p5633_p5 = por %p150_p2, %p36_p12  ;;  %p5277_p10 = scmp.lt.s32.totalorder %s5504_s21, 2 }
  0x2e   : > { %s5639_s27 = scalar_select %p27_p13, %s5500_s20, %s29_s16  }
  0x2f   : > { %s7535_s23 = scalar_select %p5633_p5, 1, 0 }
  0x30   : > { %p38_p3 = por %p37_p0, %p36_p12  ;;  %s208_s28 = sand.u32 1, %s5500_s20  }
  0x31   : > { %s4975_s29 = sshll.u32 %s208_s28, 8  ;;  %s4990_s30 = sshll.u32 %s5504_s21, 12 }
  0x32   : > { %s5646_s10 = scalar_lea.hbm %s7511_s0, %s4990_s30  ;;  %s212_s11 = scalar_lea.vmem [#allocation4], %s4975_s29 }
  0x33   : > { %s219_s12 = sshll.u32 %s212_s11, 4  ;;  %p5650_p2 = pnand %p5277_p10, %p38_p3  ;;  %s5648_s12 = int_to_ptr.vmem [resolvable:$true] %s219_s12 }
  0x34   : > { %s5654_s14 = scalar_lea.sflag [#allocation5], %s208_s28  ;;  %s5408_s16 = scalar_lea.hbm %s5646_s10, 4096 }
  0x35   : > { %p5409_p11 = scmp.ne.s32.totalorder %s5646_s10, %s5408_s16  ;;  %p5410_p7 = pneg %p5650_p2 }
  0x36   : > { %s5413_s29 = scalar_lea.hbm %s7511_s0, 8192  ;;  %p5414_p13 = scmp.lt.s32.totalorder %s5646_s10, %s7511_s0 }
  0x37   : > { %p5411_p9 = pnand %p5410_p7, %p5409_p11  ;;  %p5415_p0 = scmp.lt.s32.totalorder %s5413_s29, %s5408_s16 }
  0x39   : > { %p5412_p12 = pneg %p5411_p9  ;;  %p5416_p10 = por %p5415_p0, %p5414_p13 }
  0x3b   : > { %p5417_p3 = pnand %p5416_p10, %p5412_p12 }
  0x3d   : > { %5420 = shalt.err (!%p5417_p3)
}
  0x3e   : > { %s5421_s28 = scalar_lea.vmem %s5648_s12, 4096  ;;  %s5510_s11 = smov [#allocation4]  }
  0x3f   : > { %p5422_p1 = scmp.ne.s32.totalorder %s5648_s12, %s5421_s28  ;;  %s5426_s8 = sshll.u32 %s5510_s11, 4  ;;  %s5427_s8 = int_to_ptr.vmem [resolvable:$false] %s5426_s8 }
  0x40   : > { %s5428_s17 = scalar_lea.vmem %s5427_s8, 8192  ;;  %p5429_p9 = scmp.lt.s32.totalorder %s5648_s12, %s5427_s8 }
  0x41   : > { %p5424_p6 = pnand %p5422_p1, %p5410_p7  ;;  %p5430_p5 = scmp.lt.s32.totalorder %s5428_s17, %s5421_s28 }
  0x43   : > { %p5425_p11 = pneg %p5424_p6  ;;  %p5431_p4 = por %p5430_p5, %p5429_p9 }
  0x45   : > { %p5432_p8 = pnand %p5431_p4, %p5425_p11 }
  0x47   : > { %5435 = shalt.err (!%p5432_p8)
}
  0x48   : > { %s7537_s16 = smov 128   ;;  %p7538_p1 = scmp.ne.s32.totalorder %s7533_s26, 0 }
  0x49   : > { %5270 = dma.hbm_to_vmem [thread:$0]  (!%p5650_p2), %s5646_s10, 4096, %s5648_s12, %s5654_s14, %s7537_s16, %s7537_s16, %s5509_s9  }
  0x4a   : > { %231 = sbr.rel (%p7538_p1) target bundleno = 1137 (0x471), region = 40 }
  0x4f   : > { %s5681_s30 = sand.u32 1, %s5496_s19   ;;  %p7539_p4 = scmp.ne.s32.totalorder %s7531_s24, 0 }
  0x50   : > { %s4979_s8 = sshll.u32 %s5681_s30, 8  ;;  %s234_s29 = scalar_lea.sflag [#allocation5], %s5681_s30 }
  0x51   : > { %s5687_s13 = scalar_lea.vmem [#allocation4], %s4979_s8 }
  0x52   : > { %5479 = dma.done.wait (%p7539_p4), %s234_s29, 4096  }
  0x53   : > { %5481 = vsyncadd (%p7539_p4), %s234_s29, 4294963200  ;;  %p7540_p6 = scmp.eq.s32.totalorder %s5566_s22, 0 }
  0x55   : > { %5483 = dma.done.wait (%p7540_p6), [#allocation8], 36864   ;;  %p7541_p8 = pmov %p7540_p6 }
  0x56   : > { %v5511_v0 = vmov 0.0   ;;  %v1271_v1 = vld [vmem:[#allocation7 + $0x78] sm:$0xff]  ;;  %v1270_v2 = vld [vmem:[#allocation7 + $0x70] sm:$0xff]  ;;  %v1269_v5 = vld [vmem:[#allocation7 + $0x68] sm:$0xff]  ;;  %s7364_s12 = scalar_lea.vmem [#allocation10], %s4979_s8  ;;  %s4991_s14 = sshll.u32 %s5566_s22, 12 }
  0x57   : > { %5485 = vsyncadd (%p7541_p8), [#allocation8], 4294930432  ;;  %1407 = vmatprep.subr.mxu0 %v5511_v0  ;;  %272 = vst [vmem:[#allocation2] sm:$0xff] %v5511_v0  ;;  %1632 = vmatprep.subr.mxu1 %v5511_v0  ;;  %v1303_v3 = vld [vmem:[#allocation7 + $0x178] sm:$0xff]  ;;  %v1302_v4 = vld [vmem:[#allocation7 + $0x170] sm:$0xff]  ;;  %s4878_s6 = sshll.u32 %s7364_s12, 4  ;;  %s7464_s11 = scalar_lea.hbm %s7516_s5, %s4991_s14  ;;  %s7466_s6 = int_to_ptr.vmem [resolvable:$true] %s4878_s6 }
  0x58   : > { %273 = vst [vmem:[#allocation2 + $0x8] sm:$0xff] %v5511_v0  ;;  %274 = vst [vmem:[#allocation2 + $0x10] sm:$0x3] %v5511_v0  ;;  %1408 = vmatpush1.msra.mxu0 %v1271_v1  ;;  %1633 = vmatpush1.msra.mxu1 %v1303_v3  ;;  %v1301_v6 = vld [vmem:[#allocation7 + $0x168] sm:$0xff]  ;;  %v1268_v7 = vld [vmem:[#allocation7 + $0x60] sm:$0xff]  ;;  %s4865_s17 = scalar_lea.sflag [#allocation6], %s5681_s30 }
  0x59   : > { %275 = vst [vmem:[#allocation2 + $0x18] sm:$0xff] %v5511_v0  ;;  %276 = vst [vmem:[#allocation2 + $0x20] sm:$0xff] %v5511_v0  ;;  %1409 = vmatprep.subr.mxu0 %v5511_v0  ;;  %1634 = vmatprep.subr.mxu1 %v5511_v0  ;;  %v1300_v8 = vld [vmem:[#allocation7 + $0x160] sm:$0xff]  ;;  %v1267_v9 = vld [vmem:[#allocation7 + $0x58] sm:$0xff]  ;;  %s5436_s16 = scalar_lea.vmem %s7466_s6, 4096  ;;  %p7558_p2 = scmp.ne.s32.totalorder %s7535_s23, 0 }
  0x5a   : > { %277 = vst [vmem:[#allocation2 + $0x28] sm:$0x3] %v5511_v0  ;;  %278 = vst [vmem:[#allocation2 + $0x30] sm:$0xff] %v5511_v0  ;;  %1410 = vmatpush1.msra.mxu0 %v1270_v2  ;;  %1635 = vmatpush1.msra.mxu1 %v1302_v4  ;;  %v1299_v10 = vld [vmem:[#allocation7 + $0x158] sm:$0xff]  ;;  %v1266_v11 = vld [vmem:[#allocation7 + $0x50] sm:$0xff]  ;;  %p5437_p5 = scmp.ne.s32.totalorder %s7466_s6, %s5436_s16  ;;  %s5512_s22 = smov [#allocation10]  }
  0x5b   : > { %279 = vst [vmem:[#allocation2 + $0x38] sm:$0xff] %v5511_v0  ;;  %280 = vst [vmem:[#allocation2 + $0x40] sm:$0x3] %v5511_v0  ;;  %1411 = vmatprep.subr.mxu0 %v5511_v0  ;;  %1636 = vmatprep.subr.mxu1 %v5511_v0  ;;  %v1298_v12 = vld [vmem:[#allocation7 + $0x150] sm:$0xff]  ;;  %v1265_v13 = vld [vmem:[#allocation7 + $0x48] sm:$0xff]  ;;  %s5440_s8 = sshll.u32 %s5512_s22, 4  ;;  %s5441_s8 = int_to_ptr.vmem [resolvable:$false] %s5440_s8 }
  0x5c   : > { %281 = vst [vmem:[#allocation2 + $0x48] sm:$0xff] %v5511_v0  ;;  %282 = vst [vmem:[#allocation2 + $0x50] sm:$0xff] %v5511_v0  ;;  %1412 = vmatpush1.msra.mxu0 %v1269_v5  ;;  %1637 = vmatpush1.msra.mxu1 %v1301_v6  ;;  %v1297_v14 = vld [vmem:[#allocation7 + $0x148] sm:$0xff]  ;;  %v1264_v15 = vld [vmem:[#allocation7 + $0x40] sm:$0xff]  ;;  %p5438_p7 = pnand %p5437_p5, %p7558_p2  ;;  %s5442_s29 = scalar_lea.vmem %s5441_s8, 8192 }
  0x5d   : > { %283 = vst [vmem:[#allocation2 + $0x58] sm:$0x3] %v5511_v0  ;;  %284 = vst [vmem:[#allocation2 + $0x60] sm:$0xff] %v5511_v0  ;;  %1413 = vmatprep.subr.mxu0 %v5511_v0  ;;  %1638 = vmatprep.subr.mxu1 %v5511_v0  ;;  %v1296_v16 = vld [vmem:[#allocation7 + $0x140] sm:$0xff]  ;;  %v1263_v17 = vld [vmem:[#allocation7 + $0x38] sm:$0xff]  ;;  %p5443_p13 = scmp.lt.s32.totalorder %s7466_s6, %s5441_s8  ;;  %p5444_p0 = scmp.lt.s32.totalorder %s5442_s29, %s5436_s16 }
  0x5e   : > { %285 = vst [vmem:[#allocation2 + $0x68] sm:$0xff] %v5511_v0  ;;  %286 = vst [vmem:[#allocation2 + $0x70] sm:$0x3] %v5511_v0  ;;  %1414 = vmatpush1.msra.mxu0 %v1268_v7  ;;  %1639 = vmatpush1.msra.mxu1 %v1300_v8  ;;  %v1295_v18 = vld [vmem:[#allocation7 + $0x138] sm:$0xff]  ;;  %v1262_v19 = vld [vmem:[#allocation7 + $0x30] sm:$0xff]  ;;  %p5439_p12 = pneg %p5438_p7 }
  0x5f   : > { %287 = vst [vmem:[#allocation2 + $0x78] sm:$0xff] %v5511_v0  ;;  %288 = vst [vmem:[#allocation2 + $0x80] sm:$0xff] %v5511_v0  ;;  %1415 = vmatprep.subr.mxu0 %v5511_v0  ;;  %1640 = vmatprep.subr.mxu1 %v5511_v0  ;;  %v1294_v20 = vld [vmem:[#allocation7 + $0x130] sm:$0xff]  ;;  %v1261_v21 = vld [vmem:[#allocation7 + $0x28] sm:$0xff]  ;;  %p5445_p10 = por %p5444_p0, %p5443_p13 }
  0x60   : > { %289 = vst [vmem:[#allocation2 + $0x88] sm:$0x3] %v5511_v0  ;;  %290 = vst [vmem:[#allocation2 + $0x90] sm:$0xff] %v5511_v0  ;;  %1416 = vmatpush1.msra.mxu0 %v1267_v9  ;;  %1641 = vmatpush1.msra.mxu1 %v1299_v10  ;;  %v1293_v22 = vld [vmem:[#allocation7 + $0x128] sm:$0xff]  ;;  %v1260_v23 = vld [vmem:[#allocation7 + $0x20] sm:$0xff] }
  0x61   : > { %291 = vst [vmem:[#allocation2 + $0x98] sm:$0xff] %v5511_v0  ;;  %292 = vst [vmem:[#allocation2 + $0xa0] sm:$0x3] %v5511_v0  ;;  %1417 = vmatprep.subr.mxu0 %v5511_v0  ;;  %1642 = vmatprep.subr.mxu1 %v5511_v0  ;;  %v1292_v24 = vld [vmem:[#allocation7 + $0x120] sm:$0xff]  ;;  %v1259_v26 = vld [vmem:[#allocation7 + $0x18] sm:$0xff]  ;;  %p5446_p3 = pnand %p5445_p10, %p5439_p12 }
  0x62   : > { %293 = vst [vmem:[#allocation2 + $0xa8] sm:$0xff] %v5511_v0  ;;  %294 = vst [vmem:[#allocation2 + $0xb0] sm:$0xff] %v5511_v0  ;;  %1418 = vmatpush1.msra.mxu0 %v1266_v11  ;;  %1643 = vmatpush1.msra.mxu1 %v1298_v12  ;;  %v5774_v25 = vld [vmem:[%s5687_s13] sm:$0xff]  ;;  %v1291_v27 = vld [vmem:[#allocation7 + $0x118] sm:$0xff] }
  0x63   : > { %295 = vst [vmem:[#allocation2 + $0xb8] sm:$0x3] %v5511_v0  ;;  %296 = vst [vmem:[#allocation2 + $0xc0] sm:$0xff] %v5511_v0  ;;  %1419 = vmatprep.subr.mxu0 %v5511_v0  ;;  %1644 = vmatprep.subr.mxu1 %v5511_v0  ;;  %v1258_v28 = vld [vmem:[#allocation7 + $0x10] sm:$0xff]  ;;  %v5780_v29 = vld [vmem:[%s5687_s13 + $0x8] sm:$0xff] }
  0x64   : > { %297 = vst [vmem:[#allocation2 + $0xc8] sm:$0xff] %v5511_v0  ;;  %298 = vst [vmem:[#allocation2 + $0xd0] sm:$0x3] %v5511_v0  ;;  %1420 = vmatpush1.msra.mxu0 %v1265_v13  ;;  %1645 = vmatpush1.msra.mxu1 %v1297_v14  ;;  %v1290_v30 = vld [vmem:[#allocation7 + $0x110] sm:$0xff]  ;;  %v5789_v32 = vld [vmem:[%s5687_s13 + $0x18] sm:$0xff] }
  0x65   : > { %299 = vst [vmem:[#allocation2 + $0xd8] sm:$0xff] %v5511_v0  ;;  %300 = vst [vmem:[#allocation2 + $0xe0] sm:$0xff] %v5511_v0  ;;  %1421 = vmatprep.subr.mxu0 %v5511_v0  ;;  %1646 = vmatprep.subr.mxu1 %v5511_v0  ;;  %v5786_v31 = vld [vmem:[%s5687_s13 + $0x10] sm:$0xff]  ;;  %v1257_v33 = vld [vmem:[#allocation7 + $0x8] sm:$0xff] }
  0x66   : > { %301 = vst [vmem:[#allocation2 + $0xe8] sm:$0x3] %v5511_v0  ;;  %302 = vst [vmem:[#allocation2 + $0xf0] sm:$0xff] %v5511_v0  ;;  %1422 = vmatpush1.msra.mxu0 %v1264_v15  ;;  %1647 = vmatpush1.msra.mxu1 %v1296_v16  ;;  %v5794_v34 = vld [vmem:[%s5687_s13 + $0x20] sm:$0xff]  ;;  %v1289_v35 = vld [vmem:[#allocation7 + $0x108] sm:$0xff] }
  0x67   : > { %303 = vst [vmem:[#allocation2 + $0xf8] sm:$0xff] %v5511_v0  ;;  %304 = vst [vmem:[#allocation2 + $0x100] sm:$0x3] %v5511_v0  ;;  %1423 = vmatprep.subr.mxu0 %v5511_v0  ;;  %1648 = vmatprep.subr.mxu1 %v5511_v0  ;;  %v5800_v36 = vld [vmem:[%s5687_s13 + $0x28] sm:$0xff]  ;;  %v5803_v37 = vld [vmem:[%s5687_s13 + $0x30] sm:$0xff] }
  0x68   : > { %305 = vst [vmem:[#allocation2 + $0x108] sm:$0xff] %v5511_v0  ;;  %306 = vst [vmem:[#allocation2 + $0x110] sm:$0xff] %v5511_v0  ;;  %1424 = vmatpush1.msra.mxu0 %v1263_v17  ;;  %1649 = vmatpush1.msra.mxu1 %v1295_v18  ;;  %v1256_v38 = vld [vmem:[#allocation7] sm:$0xff]  ;;  %v5808_v39 = vld [vmem:[%s5687_s13 + $0x38] sm:$0xff] }
  0x69   : > { %307 = vst [vmem:[#allocation2 + $0x118] sm:$0x3] %v5511_v0  ;;  %308 = vst [vmem:[#allocation2 + $0x120] sm:$0xff] %v5511_v0  ;;  %1425 = vmatprep.subr.mxu0 %v5511_v0  ;;  %1650 = vmatprep.subr.mxu1 %v5511_v0  ;;  %v1288_v40 = vld [vmem:[#allocation7 + $0x100] sm:$0xff]  ;;  %v5817_v42 = vld [vmem:[%s5687_s13 + $0x48] sm:$0xff] }
  0x6a   : > { %309 = vst [vmem:[#allocation2 + $0x128] sm:$0xff] %v5511_v0  ;;  %310 = vst [vmem:[#allocation2 + $0x130] sm:$0x3] %v5511_v0  ;;  %1426 = vmatpush1.msra.mxu0 %v1262_v19  ;;  %1651 = vmatpush1.msra.mxu1 %v1294_v20  ;;  %v5814_v41 = vld [vmem:[%s5687_s13 + $0x40] sm:$0xff]  ;;  %v5822_v43 = vld [vmem:[%s5687_s13 + $0x50] sm:$0xff] }
  0x6b   : > { %311 = vst [vmem:[#allocation2 + $0x138] sm:$0xff] %v5511_v0  ;;  %312 = vst [vmem:[#allocation2 + $0x140] sm:$0xff] %v5511_v0  ;;  %1427 = vmatprep.subr.mxu0 %v5511_v0  ;;  %1652 = vmatprep.subr.mxu1 %v5511_v0  ;;  %v1287_v44 = vld [vmem:[#allocation7 + $0xf8] sm:$0xff]  ;;  %v1286_v47 = vld [vmem:[#allocation7 + $0xf0] sm:$0xff] }
  0x6c   : > { %313 = vst [vmem:[#allocation2 + $0x148] sm:$0x3] %v5511_v0  ;;  %314 = vst [vmem:[#allocation2 + $0x150] sm:$0xff] %v5511_v0  ;;  %1428 = vmatpush1.msra.mxu0 %v1261_v21  ;;  %1653 = vmatpush1.msra.mxu1 %v1293_v22  ;;  %v1319_v45 = vld [vmem:[#allocation7 + $0x1f8] sm:$0xff]  ;;  %v1318_v48 = vld [vmem:[#allocation7 + $0x1f0] sm:$0xff] }
  0x6d   : > { %315 = vst [vmem:[#allocation2 + $0x158] sm:$0xff] %v5511_v0  ;;  %316 = vst [vmem:[#allocation2 + $0x160] sm:$0x3] %v5511_v0  ;;  %1429 = vmatprep.subr.mxu0 %v5511_v0  ;;  %1654 = vmatprep.subr.mxu1 %v5511_v0  ;;  %v5828_v46 = vld [vmem:[%s5687_s13 + $0x58] sm:$0xff]  ;;  %v5834_v49 = vld [vmem:[%s5687_s13 + $0x60] sm:$0xff] }
  0x6e   : > { %317 = vst [vmem:[#allocation2 + $0x168] sm:$0xff] %v5511_v0  ;;  %318 = vst [vmem:[#allocation2 + $0x170] sm:$0xff] %v5511_v0  ;;  %1430 = vmatpush1.msra.mxu0 %v1260_v23  ;;  %1655 = vmatpush1.msra.mxu1 %v1292_v24  ;;  %v1285_v50 = vld [vmem:[#allocation7 + $0xe8] sm:$0xff]  ;;  %v1284_v52 = vld [vmem:[#allocation7 + $0xe0] sm:$0xff] }
  0x6f   : > { %319 = vst [vmem:[#allocation2 + $0x178] sm:$0x3] %v5511_v0  ;;  %320 = vst [vmem:[#allocation2 + $0x180] sm:$0xff] %v5511_v0  ;;  %1431 = vmatprep.subr.mxu0 %v5511_v0  ;;  %1656 = vmatprep.subr.mxu1 %v5511_v0  ;;  %v1317_v51 = vld [vmem:[#allocation7 + $0x1e8] sm:$0xff]  ;;  %v1316_v53 = vld [vmem:[#allocation7 + $0x1e0] sm:$0xff] }
  0x70   : > { %321 = vst [vmem:[#allocation2 + $0x188] sm:$0xff] %v5511_v0  ;;  %322 = vst [vmem:[#allocation2 + $0x190] sm:$0x3] %v5511_v0  ;;  %1432 = vmatpush1.msra.mxu0 %v1259_v26  ;;  %1657 = vmatpush1.msra.mxu1 %v1291_v27  ;;  %v1283_v54 = vld [vmem:[#allocation7 + $0xd8] sm:$0xff]  ;;  %v1282_v56 = vld [vmem:[#allocation7 + $0xd0] sm:$0xff] }
  0x71   : > { %323 = vst [vmem:[#allocation2 + $0x198] sm:$0xff] %v5511_v0  ;;  %324 = vst [vmem:[#allocation2 + $0x1a0] sm:$0xff] %v5511_v0  ;;  %1433 = vmatprep.subr.mxu0 %v5511_v0  ;;  %1658 = vmatprep.subr.mxu1 %v5511_v0  ;;  %v1315_v55 = vld [vmem:[#allocation7 + $0x1d8] sm:$0xff]  ;;  %v5844_v57 = vld [vmem:[%s5687_s13 + $0x68] sm:$0xff] }
  0x72   : > { %325 = vst [vmem:[#allocation2 + $0x1a8] sm:$0x3] %v5511_v0  ;;  %359 = vst [vmem:[#allocation2 + $0x19] sm:$0xff] %v5774_v25  ;;  %1434 = vmatpush1.msra.mxu0 %v1258_v28  ;;  %1659 = vmatpush1.msra.mxu1 %v1290_v30  ;;  %v1314_v58 = vld [vmem:[#allocation7 + $0x1d0] sm:$0xff]  ;;  %v5853_v60 = vld [vmem:[%s5687_s13 + $0x78] sm:$0xff] }
  0x73   : > { %360 = vst [vmem:[#allocation2 + $0x21] sm:$0xff] %v5780_v29  ;;  %361 = vst [vmem:[#allocation2 + $0x31] sm:$0xff] %v5786_v31  ;;  %1435 = vmatprep.subr.mxu0 %v5511_v0  ;;  %1660 = vmatprep.subr.mxu1 %v5511_v0  ;;  %v5850_v59 = vld [vmem:[%s5687_s13 + $0x70] sm:$0xff]  ;;  %v5858_v61 = vld [vmem:[%s5687_s13 + $0x80] sm:$0xff] }
  0x74   : > { %362 = vst [vmem:[#allocation2 + $0x39] sm:$0xff] %v5789_v32  ;;  %363 = vst [vmem:[#allocation2 + $0x49] sm:$0xff] %v5794_v34  ;;  %1436 = vmatpush1.msra.mxu0 %v1257_v33  ;;  %1661 = vmatpush1.msra.mxu1 %v1289_v35  ;;  %v1281_v62 = vld [vmem:[#allocation7 + $0xc8] sm:$0xff]  ;;  %v1280_v2 = vld [vmem:[#allocation7 + $0xc0] sm:$0xff] }
  0x75   : > { %364 = vst [vmem:[#allocation2 + $0x51] sm:$0xff] %v5800_v36  ;;  %365 = vst [vmem:[#allocation2 + $0x61] sm:$0xff] %v5803_v37  ;;  %1437 = vmatprep.subr.mxu0 %v5511_v0  ;;  %1662 = vmatprep.subr.mxu1 %v5511_v0  ;;  %v1313_v63 = vld [vmem:[#allocation7 + $0x1c8] sm:$0xff]  ;;  %v1312_v3 = vld [vmem:[#allocation7 + $0x1c0] sm:$0xff] }
  0x76   : > { %366 = vst [vmem:[#allocation2 + $0x69] sm:$0xff] %v5808_v39  ;;  %367 = vst [vmem:[#allocation2 + $0x79] sm:$0xff] %v5814_v41  ;;  %1438 = vmatpush1.msra.mxu0 %v1256_v38  ;;  %1663 = vmatpush1.msra.mxu1 %v1288_v40  ;;  %v5864_v1 = vld [vmem:[%s5687_s13 + $0x88] sm:$0xff]  ;;  %v5870_v4 = vld [vmem:[%s5687_s13 + $0x90] sm:$0xff] }
  0x77   : > { %368 = vst [vmem:[#allocation2 + $0x81] sm:$0xff] %v5817_v42  ;;  %369 = vst [vmem:[#allocation2 + $0x91] sm:$0xff] %v5822_v43  ;;  %1439 = vmatprep.subr.mxu0 %v5511_v0  ;;  %1664 = vmatprep.subr.mxu1 %v5511_v0  ;;  %v5874_v5 = vld [vmem:[%s5687_s13 + $0x98] sm:$0xff]  ;;  %v5880_v8 = vld [vmem:[%s5687_s13 + $0xa0] sm:$0xff] }
  0x78   : > { %370 = vst [vmem:[#allocation2 + $0x99] sm:$0xff] %v5828_v46  ;;  %1440 = vmatpush2.msra.mxu0 %v1287_v44  ;;  %1665 = vmatpush2.msra.mxu1 %v1319_v45  ;;  %371 = vst [vmem:[#allocation2 + $0xa9] sm:$0xff] %v5834_v49  ;;  %v1279_v6 = vld [vmem:[#allocation7 + $0xb8] sm:$0xff]  ;;  %v1278_v9 = vld [vmem:[#allocation7 + $0xb0] sm:$0xff] }
  0x79   : > { %1441 = vmatprep.subr.mxu0 %v5511_v0  ;;  %1666 = vmatprep.subr.mxu1 %v5511_v0  ;;  %372 = vst [vmem:[#allocation2 + $0xb1] sm:$0xff] %v5844_v57  ;;  %373 = vst [vmem:[#allocation2 + $0xc1] sm:$0xff] %v5850_v59  ;;  %v1311_v7 = vld [vmem:[#allocation7 + $0x1b8] sm:$0xff]  ;;  %v1310_v10 = vld [vmem:[#allocation7 + $0x1b0] sm:$0xff] }
  0x7a   : > { %1442 = vmatpush2.msra.mxu0 %v1286_v47  ;;  %1667 = vmatpush2.msra.mxu1 %v1318_v48  ;;  %374 = vst [vmem:[#allocation2 + $0xc9] sm:$0xff] %v5853_v60  ;;  %375 = vst [vmem:[#allocation2 + $0xd9] sm:$0xff] %v5858_v61  ;;  %v1277_v11 = vld [vmem:[#allocation7 + $0xa8] sm:$0xff]  ;;  %v1276_v14 = vld [vmem:[#allocation7 + $0xa0] sm:$0xff] }
  0x7b   : > { %1443 = vmatprep.subr.mxu0 %v5511_v0  ;;  %1668 = vmatprep.subr.mxu1 %v5511_v0  ;;  %376 = vst [vmem:[#allocation2 + $0xe1] sm:$0xff] %v5864_v1  ;;  %377 = vst [vmem:[#allocation2 + $0xf1] sm:$0xff] %v5870_v4  ;;  %v1309_v12 = vld [vmem:[#allocation7 + $0x1a8] sm:$0xff]  ;;  %v1308_v15 = vld [vmem:[#allocation7 + $0x1a0] sm:$0xff] }
  0x7c   : > { %1444 = vmatpush2.msra.mxu0 %v1285_v50  ;;  %1669 = vmatpush2.msra.mxu1 %v1317_v51  ;;  %378 = vst [vmem:[#allocation2 + $0xf9] sm:$0xff] %v5874_v5  ;;  %379 = vst [vmem:[#allocation2 + $0x109] sm:$0xff] %v5880_v8  ;;  %v5888_v13 = vld [vmem:[%s5687_s13 + $0xa8] sm:$0xff]  ;;  %v1275_v16 = vld [vmem:[#allocation7 + $0x98] sm:$0xff] }
  0x7d   : > { %1445 = vmatprep.subr.mxu0 %v5511_v0  ;;  %1670 = vmatprep.subr.mxu1 %v5511_v0  ;;  %380 = vst [vmem:[#allocation2 + $0x111] sm:$0xff] %v5888_v13  ;;  %v1307_v17 = vld [vmem:[#allocation7 + $0x198] sm:$0xff]  ;;  %v5896_v18 = vld [vmem:[%s5687_s13 + $0xb0] sm:$0xff]  ;;  %v5906_v22 = vld [vmem:[%s5687_s13 + $0xc0] sm:$0xff] }
  0x7e   : > { %1446 = vmatpush2.msra.mxu0 %v1284_v52  ;;  %1671 = vmatpush2.msra.mxu1 %v1316_v53  ;;  %381 = vst [vmem:[#allocation2 + $0x121] sm:$0xff] %v5896_v18  ;;  %v1274_v19 = vld [vmem:[#allocation7 + $0x90] sm:$0xff]  ;;  %v5902_v21 = vld [vmem:[%s5687_s13 + $0xb8] sm:$0xff]  ;;  %v1273_v23 = vld [vmem:[#allocation7 + $0x88] sm:$0xff] }
  0x7f   : > { %1447 = vmatprep.subr.mxu0 %v5511_v0  ;;  %1672 = vmatprep.subr.mxu1 %v5511_v0  ;;  %v1306_v20 = vld [vmem:[#allocation7 + $0x190] sm:$0xff]  ;;  %382 = vst [vmem:[#allocation2 + $0x129] sm:$0xff] %v5902_v21  ;;  %383 = vst [vmem:[#allocation2 + $0x139] sm:$0xff] %v5906_v22  ;;  %v5912_v26 = vld [vmem:[%s5687_s13 + $0xc8] sm:$0xff] }
  0x80   : > { %1448 = vmatpush2.msra.mxu0 %v1283_v54  ;;  %1673 = vmatpush2.msra.mxu1 %v1315_v55  ;;  %v455_v24 = vld [vmem:[#allocation2 + $0x1] sm:$0xff]  ;;  %v1305_v27 = vld [vmem:[#allocation7 + $0x188] sm:$0xff]  ;;  %384 = vst [vmem:[#allocation2 + $0x141] sm:$0xff] %v5912_v26  ;;  %v1272_v28 = vld [vmem:[#allocation7 + $0x80] sm:$0xff] }
  0x81   : > { %1449 = vmatprep.subr.mxu0 %v5511_v0  ;;  %1674 = vmatprep.subr.mxu1 %v5511_v0  ;;  %v5918_v30 = vld [vmem:[%s5687_s13 + $0xd0] sm:$0xff]  ;;  %v1304_v33 = vld [vmem:[#allocation7 + $0x180] sm:$0xff]  ;;  %v583_v35 = vld [vmem:[#allocation2 + $0x18] sm:$0xff] }
  0x82   : > { %1450 = vmatpush2.msra.mxu0 %v1282_v56  ;;  %1675 = vmatpush2.msra.mxu1 %v1314_v58  ;;  %385 = vst [vmem:[#allocation2 + $0x151] sm:$0xff] %v5918_v30  ;;  %v5923_v38 = vld [vmem:[%s5687_s13 + $0xd8] sm:$0xff]  ;;  %v584_v47 = vld [vmem:[#allocation2 + $0x20] sm:$0xff]  ;;  %v5930_v48 = vld [vmem:[%s5687_s13 + $0xe0] sm:$0xff] }
  0x83   : > { %1451 = vmatprep.subr.mxu0 %v5511_v0  ;;  %1676 = vmatprep.subr.mxu1 %v5511_v0  ;;  %v1335_v40 = vld [vmem:[#allocation7 + $0x278] sm:$0xff]  ;;  %386 = vst [vmem:[#allocation2 + $0x159] sm:$0xff] %v5923_v38  ;;  %v1334_v50 = vld [vmem:[#allocation7 + $0x270] sm:$0xff]  ;;  %387 = vst [vmem:[#allocation2 + $0x169] sm:$0xff] %v5930_v48 }
  0x84   : > { %1452 = vmatpush2.msra.mxu0 %v1281_v62  ;;  %1677 = vmatpush2.msra.mxu1 %v1313_v63  ;;  %v519_v44 = vld [vmem:[#allocation2 + $0x2] sm:$0xff]  ;;  %v520_v51 = vld [vmem:[#allocation2 + $0xa] sm:$0xff]  ;;  %v5935_v52 = vld [vmem:[%s5687_s13 + $0xe8] sm:$0xff] }
  0x85   : > { %1453 = vmatprep.subr.mxu0 %v5511_v0  ;;  %1678 = vmatprep.subr.mxu1 %v5511_v0  ;;  %v456_v45 = vld [vmem:[#allocation2 + $0x9] sm:$0xff]  ;;  %v1333_v54 = vld [vmem:[#allocation7 + $0x268] sm:$0xff]  ;;  %388 = vst [vmem:[#allocation2 + $0x171] sm:$0xff] %v5935_v52  ;;  %v356_v55 = vld [vmem:[%s5687_s13 + $0xf0] sm:$0xff] }
  0x86   : > { %1454 = vmatpush2.msra.mxu0 %v1280_v2  ;;  %1679 = vmatpush2.msra.mxu1 %v1312_v3  ;;  %v5938_v53 = vld [vmem:[#allocation2 + $0x30] sm:$0xff]  ;;  %389 = vst [vmem:[#allocation2 + $0x181] sm:$0xff] %v356_v55  ;;  %v5945_v58 = vld [vmem:[#allocation2 + $0x1a] sm:$0xff]  ;;  %v357_v62 = vld [vmem:[%s5687_s13 + $0xf8] sm:$0xff] }
  0x87   : > { %1455 = vmatprep.subr.mxu0 %v5511_v0  ;;  %1680 = vmatprep.subr.mxu1 %v5511_v0  ;;  %v1332_v56 = vld [vmem:[#allocation7 + $0x260] sm:$0xff]  ;;  %v5949_v63 = vld [vmem:[#allocation2 + $0x38] sm:$0xff]  ;;  %v1331_v2 = vld [vmem:[#allocation7 + $0x258] sm:$0xff]  ;;  %390 = vst [vmem:[#allocation2 + $0x189] sm:$0xff] %v357_v62 }
  0x88   : > { %1456 = vmatpush2.msra.mxu0 %v1279_v6  ;;  %1681 = vmatpush2.msra.mxu1 %v1311_v7  ;;  %v5955_v3 = vld [vmem:[#allocation2 + $0x22] sm:$0xff]  ;;  %v1329_v7 = vld [vmem:[#allocation7 + $0x248] sm:$0xff]  ;;  %v1364_v55 = vld [vmem:[#allocation7 + $0x360] sm:$0xff] }
  0x89   : > { %1457 = vmatprep.subr.mxu0 %v5511_v0  ;;  %1682 = vmatprep.subr.mxu1 %v5511_v0  ;;  %v5957_v6 = vld [vmem:[#allocation2 + $0x48] sm:$0xff]  ;;  %v6047_v62 = vld [vmem:[#allocation2 + $0xb0] sm:$0xff] }
  0x8a   : > { %1458 = vmatpush2.msra.mxu0 %v1278_v9  ;;  %1683 = vmatpush2.msra.mxu1 %v1310_v10  ;;  %v5964_v9 = vld [vmem:[#allocation2 + $0x32] sm:$0xff] }
  0x8b   : > { %1459 = vmatprep.subr.mxu0 %v5511_v0  ;;  %1684 = vmatprep.subr.mxu1 %v5511_v0  ;;  %v5967_v10 = vld [vmem:[#allocation2 + $0x50] sm:$0xff] }
  0x8c   : > { %1460 = vmatpush2.msra.mxu0 %v1277_v11  ;;  %1685 = vmatpush2.msra.mxu1 %v1309_v12  ;;  %v1327_v11 = vld [vmem:[#allocation7 + $0x238] sm:$0xff]  ;;  %v5974_v12 = vld [vmem:[#allocation2 + $0x3a] sm:$0xff] }
  0x8d   : > { %1461 = vmatprep.subr.mxu0 %v5511_v0  ;;  %1686 = vmatprep.subr.mxu1 %v5511_v0 }
  0x8e   : > { %1462 = vmatpush2.msra.mxu0 %v1276_v14  ;;  %1687 = vmatpush2.msra.mxu1 %v1308_v15  ;;  %v5977_v14 = vld [vmem:[#allocation2 + $0x60] sm:$0xff]  ;;  %v1325_v15 = vld [vmem:[#allocation7 + $0x228] sm:$0xff] }
  0x8f   : > { %1463 = vmatprep.subr.mxu0 %v5511_v0  ;;  %1688 = vmatprep.subr.mxu1 %v5511_v0 }
  0x90   : > { %1464 = vmatpush2.msra.mxu0 %v1275_v16  ;;  %1689 = vmatpush2.msra.mxu1 %v1307_v17  ;;  %v5984_v16 = vld [vmem:[#allocation2 + $0x4a] sm:$0xff] }
  0x91   : > { %1465 = vmatprep.subr.mxu0 %v5511_v0  ;;  %1690 = vmatprep.subr.mxu1 %v5511_v0  ;;  %v5987_v17 = vld [vmem:[#allocation2 + $0x68] sm:$0xff] }
  0x92   : > { %1466 = vmatpush2.msra.mxu0 %v1274_v19  ;;  %1691 = vmatpush2.msra.mxu1 %v1306_v20  ;;  %v1323_v19 = vld [vmem:[#allocation7 + $0x218] sm:$0xff]  ;;  %v5994_v20 = vld [vmem:[#allocation2 + $0x52] sm:$0xff] }
  0x93   : > { %1467 = vmatprep.subr.mxu0 %v5511_v0  ;;  %1692 = vmatprep.subr.mxu1 %v5511_v0 }
  0x94   : > { %1468 = vmatpush2.msra.mxu0 %v1273_v23  ;;  %1471 = vmatprep.mubr.f32.mxu0 %v455_v24  ;;  %v5997_v23 = vld [vmem:[#allocation2 + $0x78] sm:$0xff] }
  0x95   : > { %1469 = vmatprep.subr.mxu0 %v5511_v0  ;;  %1693 = vmatpush2.msra.mxu1 %v1305_v27  ;;  %v1321_v24 = vld [vmem:[#allocation7 + $0x208] sm:$0xff]  ;;  %v6004_v27 = vld [vmem:[#allocation2 + $0x62] sm:$0xff] }
  0x96   : > { %1470 = vmatpush2.msra.mxu0 %v1272_v28  ;;  %1694 = vmatprep.subr.mxu1 %v5511_v0  ;;  %v6007_v28 = vld [vmem:[#allocation2 + $0x80] sm:$0xff] }
  0x97   : > { %1472 = vmatmul.mubr.f32.vlgmr.msra.gmra.mxu0 %v5511_v0  ;;  %1857 = vmatprep.subr.mxu0 %v5511_v0 }
  0x98   : > { %1695 = vmatpush2.msra.mxu1 %v1304_v33  ;;  %1696 = vmatprep.mubr.f32.mxu1 %v583_v35  ;;  %v1351_v33 = vld [vmem:[#allocation7 + $0x2f8] sm:$0xff] }
  0x99   : > { %1858 = vmatpush1.msra.mxu0 %v1335_v40  ;;  %1697 = vmatmul.mubr.f32.vlgmr.msra.gmra.mxu1 %v519_v44  ;;  %v6017_v40 = vld [vmem:[#allocation2 + $0x90] sm:$0xff]  ;;  %v1350_v44 = vld [vmem:[#allocation7 + $0x2f0] sm:$0xff] }
  0x9a   : > { %1476 = vmatprep.mubr.f32.mxu0 %v456_v45  ;;  %1859 = vmatprep.subr.mxu0 %v5511_v0  ;;  %v6024_v45 = vld [vmem:[#allocation2 + $0x7a] sm:$0xff] }
  0x9b   : > { %1477 = vmatmul.mubr.f32.gmra.mxu0 %v5511_v0  ;;  %1701 = vmatprep.mubr.f32.mxu1 %v584_v47 }
  0x9c   : > { %1860 = vmatpush1.msra.mxu0 %v1334_v50  ;;  %1481 = vmatprep.mubr.f32.mxu0 %v5774_v25  ;;  %v1330_v25 = vld [vmem:[#allocation7 + $0x250] sm:$0xff]  ;;  %v1365_v50 = vld [vmem:[#allocation7 + $0x368] sm:$0xff] }
  0x9d   : > { %1702 = vmatmul.mubr.f32.gmra.mxu1 %v520_v51  ;;  %1861 = vmatprep.subr.mxu0 %v5511_v0  ;;  %v1349_v51 = vld [vmem:[#allocation7 + $0x2e8] sm:$0xff] }
  0x9e   : > { %1706 = vmatprep.mubr.f32.mxu1 %v5938_v53  ;;  %1862 = vmatpush1.msra.mxu0 %v1333_v54  ;;  %v6037_v54 = vld [vmem:[#allocation2 + $0xa8] sm:$0xff] }
  0x9f   : > { %1482 = vmatmul.mubr.f32.gmra.mxu0 %v583_v35  ;;  %1863 = vmatprep.subr.mxu0 %v5511_v0  ;;  %v6014_v35 = vld [vmem:[#allocation2 + $0x6a] sm:$0xff] }
  0xa0   : > { %1486 = vmatprep.mubr.f32.mxu0 %v5780_v29  ;;  %1864 = vmatpush1.msra.mxu0 %v1332_v56  ;;  %v1328_v29 = vld [vmem:[#allocation7 + $0x240] sm:$0xff] }
  0xa1   : > { %1707 = vmatmul.mubr.f32.gmra.mxu1 %v5945_v58  ;;  %1865 = vmatprep.subr.mxu0 %v5511_v0  ;;  %v6044_v56 = vld [vmem:[#allocation2 + $0x92] sm:$0xff] }
  0xa2   : > { %1711 = vmatprep.mubr.f32.mxu1 %v5949_v63  ;;  %1866 = vmatpush1.msra.mxu0 %v1331_v2  ;;  %v1348_v2 = vld [vmem:[#allocation7 + $0x2e0] sm:$0xff] }
  0xa3   : > { %1487 = vmatmul.mubr.f32.gmra.mxu0 %v584_v47  ;;  %1867 = vmatprep.subr.mxu0 %v5511_v0  ;;  %v6028_v47 = vld [vmem:[#allocation2 + $0x98] sm:$0xff] }
  0xa4   : > { %1491 = vmatprep.mubr.f32.mxu0 %v5786_v31  ;;  %1868 = vmatpush1.msra.mxu0 %v1330_v25  ;;  %v1326_v31 = vld [vmem:[#allocation7 + $0x230] sm:$0xff] }
  0xa5   : > { %1712 = vmatmul.mubr.f32.gmra.mxu1 %v5955_v3  ;;  %1869 = vmatprep.subr.mxu0 %v5511_v0  ;;  %v6054_v25 = vld [vmem:[#allocation2 + $0x9a] sm:$0xff] }
  0xa6   : > { %1716 = vmatprep.mubr.f32.mxu1 %v5957_v6  ;;  %1870 = vmatpush1.msra.mxu0 %v1329_v7  ;;  %v6058_v7 = vld [vmem:[#allocation2 + $0xc0] sm:$0xff] }
  0xa7   : > { %1492 = vmatmul.mubr.f32.gmra.mxu0 %v5938_v53  ;;  %1871 = vmatprep.subr.mxu0 %v5511_v0 }
  0xa8   : > { %1496 = vmatprep.mubr.f32.mxu0 %v5789_v32  ;;  %1872 = vmatpush1.msra.mxu0 %v1328_v29  ;;  %v1324_v32 = vld [vmem:[#allocation7 + $0x220] sm:$0xff]  ;;  %v1361_v29 = vld [vmem:[#allocation7 + $0x348] sm:$0xff] }
  0xa9   : > { %1717 = vmatmul.mubr.f32.gmra.mxu1 %v5964_v9  ;;  %1873 = vmatprep.subr.mxu0 %v5511_v0 }
  0xaa   : > { %1721 = vmatprep.mubr.f32.mxu1 %v5967_v10  ;;  %1874 = vmatpush1.msra.mxu0 %v1327_v11  ;;  %v1347_v11 = vld [vmem:[#allocation7 + $0x2d8] sm:$0xff] }
  0xab   : > { %1497 = vmatmul.mubr.f32.gmra.mxu0 %v5949_v63  ;;  %1875 = vmatprep.subr.mxu0 %v5511_v0 }
  0xac   : > { %1501 = vmatprep.mubr.f32.mxu0 %v5794_v34  ;;  %1876 = vmatpush1.msra.mxu0 %v1326_v31  ;;  %v1322_v34 = vld [vmem:[#allocation7 + $0x210] sm:$0xff]  ;;  %v6067_v31 = vld [vmem:[#allocation2 + $0xc8] sm:$0xff] }
  0xad   : > { %1722 = vmatmul.mubr.f32.gmra.mxu1 %v5974_v12  ;;  %1877 = vmatprep.subr.mxu0 %v5511_v0 }
  0xae   : > { %1726 = vmatprep.mubr.f32.mxu1 %v5977_v14  ;;  %1878 = vmatpush1.msra.mxu0 %v1325_v15  ;;  %v1360_v15 = vld [vmem:[#allocation7 + $0x340] sm:$0xff] }
  0xaf   : > { %1502 = vmatmul.mubr.f32.gmra.mxu0 %v5957_v6  ;;  %1879 = vmatprep.subr.mxu0 %v5511_v0 }
  0xb0   : > { %1506 = vmatprep.mubr.f32.mxu0 %v5800_v36  ;;  %1880 = vmatpush1.msra.mxu0 %v1324_v32  ;;  %v1320_v36 = vld [vmem:[#allocation7 + $0x200] sm:$0xff] }
  0xb1   : > { %1727 = vmatmul.mubr.f32.gmra.mxu1 %v5984_v16  ;;  %1881 = vmatprep.subr.mxu0 %v5511_v0  ;;  %v6074_v32 = vld [vmem:[#allocation2 + $0xb2] sm:$0xff] }
  0xb2   : > { %1731 = vmatprep.mubr.f32.mxu1 %v5987_v17  ;;  %1882 = vmatpush1.msra.mxu0 %v1323_v19  ;;  %v6077_v19 = vld [vmem:[#allocation2 + $0xd8] sm:$0xff] }
  0xb3   : > { %1507 = vmatmul.mubr.f32.gmra.mxu0 %v5967_v10  ;;  %1883 = vmatprep.subr.mxu0 %v5511_v0 }
  0xb4   : > { %1511 = vmatprep.mubr.f32.mxu0 %v5803_v37  ;;  %1884 = vmatpush1.msra.mxu0 %v1322_v34  ;;  %v1367_v37 = vld [vmem:[#allocation7 + $0x378] sm:$0xff]  ;;  %v1346_v34 = vld [vmem:[#allocation7 + $0x2d0] sm:$0xff] }
  0xb5   : > { %1732 = vmatmul.mubr.f32.gmra.mxu1 %v5994_v20  ;;  %1885 = vmatprep.subr.mxu0 %v5511_v0 }
  0xb6   : > { %1736 = vmatprep.mubr.f32.mxu1 %v5997_v23  ;;  %1886 = vmatpush1.msra.mxu0 %v1321_v24  ;;  %v6084_v24 = vld [vmem:[#allocation2 + $0xc2] sm:$0xff] }
  0xb7   : > { %1512 = vmatmul.mubr.f32.gmra.mxu0 %v5977_v14  ;;  %1887 = vmatprep.subr.mxu0 %v5511_v0 }
  0xb8   : > { %1516 = vmatprep.mubr.f32.mxu0 %v5808_v39  ;;  %1888 = vmatpush1.msra.mxu0 %v1320_v36  ;;  %v1366_v39 = vld [vmem:[#allocation7 + $0x370] sm:$0xff] }
  0xb9   : > { %1737 = vmatmul.mubr.f32.gmra.mxu1 %v6004_v27  ;;  %1889 = vmatprep.subr.mxu0 %v5511_v0  ;;  %v6088_v36 = vld [vmem:[#allocation2 + $0xe0] sm:$0xff] }
  0xba   : > { %1741 = vmatprep.mubr.f32.mxu1 %v6007_v28  ;;  %1890 = vmatpush2.msra.mxu0 %v1351_v33  ;;  %v1357_v33 = vld [vmem:[#allocation7 + $0x328] sm:$0xff] }
  0xbb   : > { %1517 = vmatmul.mubr.f32.gmra.mxu0 %v5987_v17  ;;  %2082 = vmatprep.subr.mxu1 %v5511_v0 }
  0xbc   : > { %1521 = vmatprep.mubr.f32.mxu0 %v5814_v41  ;;  %2083 = vmatpush1.msra.mxu1 %v1367_v37  ;;  %v6034_v41 = vld [vmem:[#allocation2 + $0x82] sm:$0xff]  ;;  %v6096_v37 = vld [vmem:[#allocation2 + $0xca] sm:$0xff] }
  0xbd   : > { %1742 = vmatmul.mubr.f32.gmra.mxu1 %v6014_v35  ;;  %1891 = vmatprep.subr.mxu0 %v5511_v0 }
  0xbe   : > { %1746 = vmatprep.mubr.f32.mxu1 %v6017_v40  ;;  %2084 = vmatprep.subr.mxu1 %v5511_v0 }
  0xbf   : > { %1522 = vmatmul.mubr.f32.gmra.mxu0 %v5997_v23  ;;  %2085 = vmatpush1.msra.mxu1 %v1366_v39  ;;  %v6099_v39 = vld [vmem:[#allocation2 + $0xf0] sm:$0xff] }
  0xc0   : > { %1526 = vmatprep.mubr.f32.mxu0 %v5817_v42  ;;  %1892 = vmatpush2.msra.mxu0 %v1350_v44  ;;  %v1363_v42 = vld [vmem:[#allocation7 + $0x358] sm:$0xff] }
  0xc1   : > { %1747 = vmatmul.mubr.f32.gmra.mxu1 %v6024_v45  ;;  %2086 = vmatprep.subr.mxu1 %v5511_v0  ;;  %v1355_v44 = vld [vmem:[#allocation7 + $0x318] sm:$0xff] }
  0xc2   : > { %1751 = vmatprep.mubr.f32.mxu1 %v6028_v47  ;;  %2087 = vmatpush1.msra.mxu1 %v1365_v50  ;;  %v6106_v50 = vld [vmem:[#allocation2 + $0xda] sm:$0xff] }
  0xc3   : > { %1527 = vmatmul.mubr.f32.gmra.mxu0 %v6007_v28  ;;  %1893 = vmatprep.subr.mxu0 %v5511_v0 }
  0xc4   : > { %1531 = vmatprep.mubr.f32.mxu0 %v5822_v43  ;;  %2088 = vmatprep.subr.mxu1 %v5511_v0  ;;  %v1362_v43 = vld [vmem:[#allocation7 + $0x350] sm:$0xff] }
  0xc5   : > { %1752 = vmatmul.mubr.f32.gmra.mxu1 %v6034_v41  ;;  %1894 = vmatpush2.msra.mxu0 %v1349_v51  ;;  %v6109_v51 = vld [vmem:[#allocation2 + $0xf8] sm:$0xff] }
  0xc6   : > { %1756 = vmatprep.mubr.f32.mxu1 %v6037_v54  ;;  %2089 = vmatpush1.msra.mxu1 %v1364_v55  ;;  %v1344_v55 = vld [vmem:[#allocation7 + $0x2c0] sm:$0xff] }
  0xc7   : > { %1532 = vmatmul.mubr.f32.gmra.mxu0 %v6017_v40  ;;  %2090 = vmatprep.subr.mxu1 %v5511_v0 }
  0xc8   : > { %1536 = vmatprep.mubr.f32.mxu0 %v5828_v46  ;;  %2091 = vmatpush1.msra.mxu1 %v1363_v42  ;;  %v6064_v46 = vld [vmem:[#allocation2 + $0xaa] sm:$0xff]  ;;  %v6116_v42 = vld [vmem:[#allocation2 + $0xe2] sm:$0xff] }
  0xc9   : > { %1757 = vmatmul.mubr.f32.gmra.mxu1 %v6044_v56  ;;  %1895 = vmatprep.subr.mxu0 %v5511_v0 }
  0xca   : > { %1761 = vmatprep.mubr.f32.mxu1 %v6047_v62  ;;  %2092 = vmatprep.subr.mxu1 %v5511_v0 }
  0xcb   : > { %1537 = vmatmul.mubr.f32.gmra.mxu0 %v6028_v47  ;;  %2093 = vmatpush1.msra.mxu1 %v1362_v43  ;;  %v6120_v43 = vld [vmem:[#allocation2 + $0x108] sm:$0xff] }
  0xcc   : > { %1541 = vmatprep.mubr.f32.mxu0 %v5834_v49  ;;  %1896 = vmatpush2.msra.mxu0 %v1348_v2  ;;  %v1359_v49 = vld [vmem:[#allocation7 + $0x338] sm:$0xff]  ;;  %v1353_v2 = vld [vmem:[#allocation7 + $0x308] sm:$0xff] }
  0xcd   : > { %1762 = vmatmul.mubr.f32.gmra.mxu1 %v6054_v25  ;;  %2094 = vmatprep.subr.mxu1 %v5511_v0 }
  0xce   : > { %1766 = vmatprep.mubr.f32.mxu1 %v6058_v7  ;;  %2095 = vmatpush1.msra.mxu1 %v1361_v29  ;;  %v1343_v29 = vld [vmem:[#allocation7 + $0x2b8] sm:$0xff] }
  0xcf   : > { %1542 = vmatmul.mubr.f32.gmra.mxu0 %v6037_v54  ;;  %1897 = vmatprep.subr.mxu0 %v5511_v0 }
  0xd0   : > { %1546 = vmatprep.mubr.f32.mxu0 %v5844_v57  ;;  %2096 = vmatprep.subr.mxu1 %v5511_v0  ;;  %v1358_v57 = vld [vmem:[#allocation7 + $0x330] sm:$0xff] }
  0xd1   : > { %1767 = vmatmul.mubr.f32.gmra.mxu1 %v6064_v46  ;;  %1898 = vmatpush2.msra.mxu0 %v1347_v11  ;;  %v6129_v11 = vld [vmem:[#allocation2 + $0x110] sm:$0xff] }
  0xd2   : > { %1771 = vmatprep.mubr.f32.mxu1 %v6067_v31  ;;  %2097 = vmatpush1.msra.mxu1 %v1360_v15  ;;  %v1352_v15 = vld [vmem:[#allocation7 + $0x300] sm:$0xff] }
  0xd3   : > { %1547 = vmatmul.mubr.f32.gmra.mxu0 %v6047_v62  ;;  %2098 = vmatprep.subr.mxu1 %v5511_v0 }
  0xd4   : > { %1551 = vmatprep.mubr.f32.mxu0 %v5850_v59  ;;  %2099 = vmatpush1.msra.mxu1 %v1359_v49  ;;  %v6092_v59 = vld [vmem:[#allocation2] sm:$0xff] }
  0xd5   : > { %1772 = vmatmul.mubr.f32.gmra.mxu1 %v6074_v32  ;;  %1899 = vmatprep.subr.mxu0 %v5511_v0  ;;  %v6136_v49 = vld [vmem:[#allocation2 + $0xfa] sm:$0xff] }
  0xd6   : > { %1776 = vmatprep.mubr.f32.mxu1 %v6077_v19  ;;  %2100 = vmatprep.subr.mxu1 %v5511_v0  ;;  %v1345_v0 = vld [vmem:[#allocation7 + $0x2c8] sm:$0xff] }
  0xd7   : > { %1552 = vmatmul.mubr.f32.gmra.mxu0 %v6058_v7  ;;  %2101 = vmatpush1.msra.mxu1 %v1358_v57  ;;  %v6139_v57 = vld [vmem:[#allocation2 + $0x120] sm:$0xff] }
  0xd8   : > { %1556 = vmatprep.mubr.f32.mxu0 %v5853_v60  ;;  %1900 = vmatpush2.msra.mxu0 %v1346_v34  ;;  %v1356_v60 = vld [vmem:[#allocation7 + $0x320] sm:$0xff]  ;;  %v1342_v34 = vld [vmem:[#allocation7 + $0x2b0] sm:$0xff] }
  0xd9   : > { %1777 = vmatmul.mubr.f32.gmra.mxu1 %v6084_v24  ;;  %2102 = vmatprep.subr.mxu1 %v6092_v59 }
  0xda   : > { %1781 = vmatprep.mubr.f32.mxu1 %v6088_v36  ;;  %2103 = vmatpush1.msra.mxu1 %v1357_v33  ;;  %v6146_v33 = vld [vmem:[#allocation2 + $0x10a] sm:$0xff] }
  0xdb   : > { %1557 = vmatmul.mubr.f32.gmra.mxu0 %v6067_v31  ;;  %1901 = vmatprep.subr.mxu0 %v6092_v59 }
  0xdc   : > { %1561 = vmatprep.mubr.f32.mxu0 %v5858_v61  ;;  %2104 = vmatprep.subr.mxu1 %v6092_v59  ;;  %v1354_v61 = vld [vmem:[#allocation7 + $0x310] sm:$0xff] }
  0xdd   : > { %1782 = vmatmul.mubr.f32.gmra.mxu1 %v6096_v37  ;;  %1902 = vmatpush2.msra.mxu0 %v1345_v0  ;;  %v6150_v0 = vld [vmem:[#allocation2 + $0x128] sm:$0xff] }
  0xde   : > { %1786 = vmatprep.mubr.f32.mxu1 %v6099_v39  ;;  %2105 = vmatpush1.msra.mxu1 %v1356_v60  ;;  %v1381_v60 = vld [vmem:[#allocation7 + $0x3e8] sm:$0xff] }
  0xdf   : > { %1562 = vmatmul.mubr.f32.gmra.mxu0 %v6077_v19  ;;  %2106 = vmatprep.subr.mxu1 %v6092_v59 }
  0xe0   : > { %1566 = vmatprep.mubr.f32.mxu0 %v5864_v1  ;;  %2107 = vmatpush1.msra.mxu1 %v1355_v44  ;;  %v6126_v1 = vld [vmem:[#allocation2 + $0xf2] sm:$0xff] }
  0xe1   : > { %1787 = vmatmul.mubr.f32.gmra.mxu1 %v6106_v50  ;;  %1903 = vmatprep.subr.mxu0 %v6092_v59  ;;  %v1341_v44 = vld [vmem:[#allocation7 + $0x2a8] sm:$0xff] }
  0xe2   : > { %1791 = vmatprep.mubr.f32.mxu1 %v6109_v51  ;;  %2108 = vmatprep.subr.mxu1 %v6092_v59 }
  0xe3   : > { %1567 = vmatmul.mubr.f32.gmra.mxu0 %v6088_v36  ;;  %2109 = vmatpush1.msra.mxu1 %v1354_v61  ;;  %v6159_v61 = vld [vmem:[#allocation2 + $0x138] sm:$0xff] }
  0xe4   : > { %1571 = vmatprep.mubr.f32.mxu0 %v5870_v4  ;;  %1904 = vmatpush2.msra.mxu0 %v1344_v55  ;;  %v1383_v4 = vld [vmem:[#allocation7 + $0x3f8] sm:$0xff]  ;;  %v1380_v55 = vld [vmem:[#allocation7 + $0x3e0] sm:$0xff] }
  0xe5   : > { %1792 = vmatmul.mubr.f32.gmra.mxu1 %v6116_v42  ;;  %2110 = vmatprep.subr.mxu1 %v6092_v59 }
  0xe6   : > { %1796 = vmatprep.mubr.f32.mxu1 %v6120_v43  ;;  %2111 = vmatpush1.msra.mxu1 %v1353_v2  ;;  %v6166_v2 = vld [vmem:[#allocation2 + $0x122] sm:$0xff] }
  0xe7   : > { %1572 = vmatmul.mubr.f32.gmra.mxu0 %v6099_v39  ;;  %1905 = vmatprep.subr.mxu0 %v6092_v59 }
  0xe8   : > { %1576 = vmatprep.mubr.f32.mxu0 %v5874_v5  ;;  %2112 = vmatprep.subr.mxu1 %v6092_v59  ;;  %v1382_v5 = vld [vmem:[#allocation7 + $0x3f0] sm:$0xff] }
  0xe9   : > { %1797 = vmatmul.mubr.f32.gmra.mxu1 %v6126_v1  ;;  %1906 = vmatpush2.msra.mxu0 %v1343_v29  ;;  %v6169_v29 = vld [vmem:[#allocation2 + $0x140] sm:$0xff] }
  0xea   : > { %1801 = vmatprep.mubr.f32.mxu1 %v6129_v11  ;;  %2113 = vmatpush1.msra.mxu1 %v1352_v15  ;;  %v1340_v15 = vld [vmem:[#allocation7 + $0x2a0] sm:$0xff] }
  0xeb   : > { %1577 = vmatmul.mubr.f32.gmra.mxu0 %v6109_v51  ;;  %2114 = vmatprep.subr.mxu1 %v6092_v59 }
  0xec   : > { %1581 = vmatprep.mubr.f32.mxu0 %v5880_v8  ;;  %2115 = vmatpush2.msra.mxu1 %v1383_v4  ;;  %v6156_v8 = vld [vmem:[#allocation2 + $0x112] sm:$0xff]  ;;  %v6176_v4 = vld [vmem:[#allocation2 + $0x12a] sm:$0xff] }
  0xed   : > { %1802 = vmatmul.mubr.f32.gmra.mxu1 %v6136_v49  ;;  %1907 = vmatprep.subr.mxu0 %v6092_v59 }
  0xee   : > { %1806 = vmatprep.mubr.f32.mxu1 %v6139_v57  ;;  %2116 = vmatprep.subr.mxu1 %v6092_v59 }
  0xef   : > { %1582 = vmatmul.mubr.f32.gmra.mxu0 %v6120_v43  ;;  %2117 = vmatpush2.msra.mxu1 %v1382_v5  ;;  %v6180_v5 = vld [vmem:[#allocation2 + $0x150] sm:$0xff] }
  0xf0   : > { %1586 = vmatprep.mubr.f32.mxu0 %v5888_v13  ;;  %1908 = vmatpush2.msra.mxu0 %v1342_v34  ;;  %v1379_v13 = vld [vmem:[#allocation7 + $0x3d8] sm:$0xff]  ;;  %7542 = vst [vmem:[#allocation14_spill] sm:$0xff] %v6180_v5  ;;  %v1377_v34 = vld [vmem:[#allocation7 + $0x3c8] sm:$0xff] }
  0xf1   : > { %1807 = vmatmul.mubr.f32.gmra.mxu1 %v6146_v33  ;;  %2118 = vmatprep.subr.mxu1 %v6092_v59 }
  0xf2   : > { %1811 = vmatprep.mubr.f32.mxu1 %v6150_v0  ;;  %2119 = vmatpush2.msra.mxu1 %v1381_v60  ;;  %v1339_v60 = vld [vmem:[#allocation7 + $0x298] sm:$0xff] }
  0xf3   : > { %1587 = vmatmul.mubr.f32.gmra.mxu0 %v6129_v11  ;;  %1909 = vmatprep.subr.mxu0 %v6092_v59 }
  0xf4   : > { %1591 = vmatprep.mubr.f32.mxu0 %v5896_v18  ;;  %2120 = vmatprep.subr.mxu1 %v6092_v59  ;;  %v1378_v18 = vld [vmem:[#allocation7 + $0x3d0] sm:$0xff] }
  0xf5   : > { %1812 = vmatmul.mubr.f32.gmra.mxu1 %v6156_v8  ;;  %1910 = vmatpush2.msra.mxu0 %v1341_v44  ;;  %v6189_v44 = vld [vmem:[#allocation2 + $0x158] sm:$0xff] }
  0xf6   : > { %1816 = vmatprep.mubr.f32.mxu1 %v6159_v61  ;;  %2121 = vmatpush2.msra.mxu1 %v1380_v55  ;;  %v1376_v55 = vld [vmem:[#allocation7 + $0x3c0] sm:$0xff] }
  0xf7   : > { %1592 = vmatmul.mubr.f32.gmra.mxu0 %v6139_v57  ;;  %2122 = vmatprep.subr.mxu1 %v6092_v59 }
  0xf8   : > { %1596 = vmatprep.mubr.f32.mxu0 %v5902_v21  ;;  %2123 = vmatpush2.msra.mxu1 %v1379_v13  ;;  %v6186_v21 = vld [vmem:[#allocation2 + $0x13a] sm:$0xff]  ;;  %v6196_v13 = vld [vmem:[#allocation2 + $0x142] sm:$0xff] }
  0xf9   : > { %1817 = vmatmul.mubr.f32.gmra.mxu1 %v6166_v2  ;;  %1911 = vmatprep.subr.mxu0 %v6092_v59 }
  0xfa   : > { %1821 = vmatprep.mubr.f32.mxu1 %v6169_v29  ;;  %2124 = vmatprep.subr.mxu1 %v6092_v59 }
  0xfb   : > { %1597 = vmatmul.mubr.f32.gmra.mxu0 %v6150_v0  ;;  %2125 = vmatpush2.msra.mxu1 %v1378_v18  ;;  %v6199_v18 = vld [vmem:[#allocation2 + $0x168] sm:$0xff] }
  0xfc   : > { %1601 = vmatprep.mubr.f32.mxu0 %v5906_v22  ;;  %1912 = vmatpush2.msra.mxu0 %v1340_v15  ;;  %v1375_v22 = vld [vmem:[#allocation7 + $0x3b8] sm:$0xff]  ;;  %7543 = vst [vmem:[#allocation15_spill] sm:$0xff] %v6199_v18  ;;  %v1338_v15 = vld [vmem:[#allocation7 + $0x290] sm:$0xff] }
  0xfd   : > { %1822 = vmatmul.mubr.f32.gmra.mxu1 %v6176_v4  ;;  %2126 = vmatprep.subr.mxu1 %v6092_v59 }
  0xfe   : > { %1826 = vmatprep.mubr.f32.mxu1 %v6180_v5  ;;  %2127 = vmatpush2.msra.mxu1 %v1377_v34  ;;  %v6206_v34 = vld [vmem:[#allocation2 + $0x152] sm:$0xff] }
  0xff   : > { %1602 = vmatmul.mubr.f32.gmra.mxu0 %v6159_v61  ;;  %1913 = vmatprep.subr.mxu0 %v6092_v59 }
 0x100   : > { %1606 = vmatprep.mubr.f32.mxu0 %v5912_v26  ;;  %2128 = vmatprep.subr.mxu1 %v6092_v59  ;;  %v1374_v26 = vld [vmem:[#allocation7 + $0x3b0] sm:$0xff] }
 0x101   : > { %1827 = vmatmul.mubr.f32.gmra.mxu1 %v6186_v21  ;;  %1914 = vmatpush2.msra.mxu0 %v1339_v60  ;;  %v6210_v60 = vld [vmem:[#allocation2 + $0x170] sm:$0xff] }
 0x102   : > { %1831 = vmatprep.mubr.f32.mxu1 %v6189_v44  ;;  %2129 = vmatpush2.msra.mxu1 %v1376_v55  ;;  %v1373_v55 = vld [vmem:[#allocation7 + $0x3a8] sm:$0xff] }
 0x103   : > { %1607 = vmatmul.mubr.f32.gmra.mxu0 %v6169_v29  ;;  %2130 = vmatprep.subr.mxu1 %v6092_v59 }
 0x104   : > { %1611 = vmatprep.mubr.f32.mxu0 %v5918_v30  ;;  %2131 = vmatpush2.msra.mxu1 %v1375_v22  ;;  %v6216_v30 = vld [vmem:[#allocation2 + $0x15a] sm:$0xff] }
 0x105   : > { %1832 = vmatmul.mubr.f32.gmra.mxu1 %v6196_v13  ;;  %1915 = vmatprep.subr.mxu0 %v6092_v59  ;;  %v1337_v22 = vld [vmem:[#allocation7 + $0x288] sm:$0xff] }
 0x106   : > { %1836 = vmatprep.mubr.f32.mxu1 %v6199_v18  ;;  %2132 = vmatprep.subr.mxu1 %v6092_v59 }
 0x107   : > { %1612 = vmatmul.mubr.f32.gmra.mxu0 %v6180_v5  ;;  %2133 = vmatpush2.msra.mxu1 %v1374_v26  ;;  %v6220_v5 = vld [vmem:[#allocation2 + $0x180] sm:$0xff]  ;;  %v1372_v26 = vld [vmem:[#allocation7 + $0x3a0] sm:$0xff] }
 0x108   : > { %1616 = vmatprep.mubr.f32.mxu0 %v5923_v38  ;;  %1916 = vmatpush2.msra.mxu0 %v1338_v15  ;;  %7544 = vst [vmem:[#allocation16_spill] sm:$0xff] %v6220_v5  ;;  %v1371_v38 = vld [vmem:[#allocation7 + $0x398] sm:$0xff] }
 0x109   : > { %1837 = vmatmul.mubr.f32.gmra.mxu1 %v6206_v34  ;;  %2134 = vmatprep.subr.mxu1 %v6092_v59  ;;  %v6226_v15 = vld [vmem:[#allocation2 + $0x16a] sm:$0xff] }
 0x10a   : > { %1841 = vmatprep.mubr.f32.mxu1 %v6210_v60  ;;  %2135 = vmatpush2.msra.mxu1 %v1373_v55  ;;  %v6230_v55 = vld [vmem:[#allocation2 + $0x188] sm:$0xff] }
 0x10b   : > { %1617 = vmatmul.mubr.f32.gmra.mxu0 %v6189_v44  ;;  %1917 = vmatprep.subr.mxu0 %v6092_v59  ;;  %7545 = vst [vmem:[#allocation17_spill] sm:$0xff] %v6230_v55 }
 0x10c   : > { %1621 = vmatprep.mubr.f32.mxu0 %v5930_v48  ;;  %2136 = vmatprep.subr.mxu1 %v6092_v59  ;;  %v1370_v48 = vld [vmem:[#allocation7 + $0x390] sm:$0xff] }
 0x10d   : > { %1842 = vmatmul.mubr.f32.gmra.mxu1 %v6216_v30  ;;  %1918 = vmatpush2.msra.mxu0 %v1337_v22  ;;  %v1336_v22 = vld [vmem:[#allocation7 + $0x280] sm:$0xff] }
 0x10e   : > { %1846 = vmatprep.mubr.f32.mxu1 %v6220_v5  ;;  %2137 = vmatpush2.msra.mxu1 %v1372_v26  ;;  %v6237_v26 = vld [vmem:[#allocation2 + $0x172] sm:$0xff] }
 0x10f   : > { %1622 = vmatmul.mubr.f32.gmra.mxu0 %v6199_v18  ;;  %2138 = vmatprep.subr.mxu1 %v6092_v59  ;;  %7546 = vst [vmem:[#allocation18_spill] sm:$0xff] %v6237_v26  ;;  %v1369_v5 = vld [vmem:[#allocation7 + $0x388] sm:$0xff]  ;;  %v1399_v18 = vld [vmem:[#allocation7 + $0x478] sm:$0xff] }
 0x110   : > { %1626 = vmatprep.mubr.f32.mxu0 %v5935_v52  ;;  %2139 = vmatpush2.msra.mxu1 %v1371_v38  ;;  %v1368_v52 = vld [vmem:[#allocation7 + $0x380] sm:$0xff]  ;;  %v5321_v38 = vld [vmem:[#allocation2 + $0x19] sm:$0xff] }
 0x111   : > { %1847 = vmatmul.mubr.f32.gmra.mxu1 %v6226_v15  ;;  %1919 = vmatprep.subr.mxu0 %v6092_v59 }
 0x112   : > { %2140 = vmatprep.subr.mxu1 %v6092_v59  ;;  %1851 = vmatprep.mubr.f32.mxu1 %v6230_v55  ;;  %v5322_v55 = vld [vmem:[#allocation2 + $0x31] sm:$0xff] }
 0x113   : > { %1627 = vmatmul.mubr.f32.gmra.mxu0 %v6210_v60  ;;  %2141 = vmatpush2.msra.mxu1 %v1370_v48  ;;  %v1398_v48 = vld [vmem:[#allocation7 + $0x470] sm:$0xff] }
 0x114   : > { %1920 = vmatpush2.msra.mxu0 %v1336_v22  ;;  %2142 = vmatprep.subr.mxu1 %v6092_v59  ;;  %v5323_v22 = vld [vmem:[#allocation2 + $0x39] sm:$0xff] }
 0x115   : > { %1852 = vmatmul.mubr.f32.gmra.mxu1 %v6237_v26  ;;  %1921 = vmatprep.mubr.f32.mxu0 %v5945_v58  ;;  %v1397_v26 = vld [vmem:[#allocation7 + $0x468] sm:$0xff]  ;;  %v5324_v58 = vld [vmem:[#allocation2 + $0x21] sm:$0xff] }
 0x116   : > { %2143 = vmatpush2.msra.mxu1 %v1369_v5  ;;  %5088 = vmatprep.subr.mxu0 %v1399_v18  ;;  %v1396_v5 = vld [vmem:[#allocation7 + $0x460] sm:$0xff] }
 0x117   : > { %1922 = vmatmul.mubr.f32.vlgmr.msra.gmra.mxu0 %v5321_v38  ;;  %2144 = vmatprep.subr.mxu1 %v6092_v59  ;;  %v5329_v38 = vld [vmem:[#allocation2 + $0x79] sm:$0xff] }
 0x118   : > { %2145 = vmatpush2.msra.mxu1 %v1368_v52  ;;  %2146 = vmatprep.mubr.f32.mxu1 %v5322_v55  ;;  %v5325_v52 = vld [vmem:[#allocation2 + $0x49] sm:$0xff] }
 0x119   : > { %5089 = vmatpush3.msra.mxu0 %v1399_v18  ;;  %2147 = vmatmul.mubr.f32.vlgmr.msra.gmra.mxu1 %v5938_v53  ;;  %v1395_v18 = vld [vmem:[#allocation7 + $0x458] sm:$0xff]  ;;  %v1394_v53 = vld [vmem:[#allocation7 + $0x450] sm:$0xff] }
 0x11a   : > { %1926 = vmatprep.mubr.f32.mxu0 %v5955_v3  ;;  %2151 = vmatprep.mubr.f32.mxu1 %v5323_v22  ;;  %v5326_v3 = vld [vmem:[#allocation2 + $0x51] sm:$0xff] }
 0x11b   : > { %1927 = vmatmul.mubr.f32.gmra.mxu0 %v5324_v58  ;;  %5090 = vmatprep.subr.mxu0 %v1398_v48  ;;  %v5341_v58 = vld [vmem:[#allocation2 + $0x109] sm:$0xff] }
 0x11c   : > { %1931 = vmatprep.mubr.f32.mxu0 %v5964_v9  ;;  %5091 = vmatpush3.msra.mxu0 %v1398_v48  ;;  %v1393_v9 = vld [vmem:[#allocation7 + $0x448] sm:$0xff]  ;;  %v5330_v48 = vld [vmem:[#allocation2 + $0x81] sm:$0xff] }
 0x11d   : > { %2152 = vmatmul.mubr.f32.gmra.mxu1 %v5949_v63  ;;  %5092 = vmatprep.subr.mxu0 %v1397_v26  ;;  %v1392_v63 = vld [vmem:[#allocation7 + $0x440] sm:$0xff] }
 0x11e   : > { %2156 = vmatprep.mubr.f32.mxu1 %v5325_v52  ;;  %5093 = vmatpush3.msra.mxu0 %v1397_v26  ;;  %v5328_v26 = vld [vmem:[#allocation2 + $0x69] sm:$0xff] }
 0x11f   : > { %1932 = vmatmul.mubr.f32.gmra.mxu0 %v5322_v55  ;;  %5094 = vmatprep.subr.mxu0 %v1396_v5  ;;  %v5327_v55 = vld [vmem:[#allocation2 + $0x61] sm:$0xff] }
 0x120   : > { %1936 = vmatprep.mubr.f32.mxu0 %v5974_v12  ;;  %5095 = vmatpush3.msra.mxu0 %v1396_v5  ;;  %v1391_v12 = vld [vmem:[#allocation7 + $0x438] sm:$0xff] }
 0x121   : > { %2157 = vmatmul.mubr.f32.gmra.mxu1 %v5957_v6  ;;  %5096 = vmatprep.subr.mxu0 %v1395_v18  ;;  %v1390_v6 = vld [vmem:[#allocation7 + $0x430] sm:$0xff] }
 0x122   : > { %2161 = vmatprep.mubr.f32.mxu1 %v5326_v3  ;;  %5097 = vmatpush3.msra.mxu0 %v1395_v18  ;;  %v3475_v18 = vld [vmem:[#allocation9 + $0x78] sm:$0xff] }
 0x123   : > { %1937 = vmatmul.mubr.f32.gmra.mxu0 %v5323_v22  ;;  %5098 = vmatprep.subr.mxu0 %v1394_v53  ;;  %v5331_v22 = vld [vmem:[#allocation2 + $0x91] sm:$0xff] }
 0x124   : > { %1941 = vmatprep.mubr.f32.mxu0 %v5984_v16  ;;  %5099 = vmatpush3.msra.mxu0 %v1394_v53  ;;  %v1389_v16 = vld [vmem:[#allocation7 + $0x428] sm:$0xff] }
 0x125   : > { %2162 = vmatmul.mubr.f32.gmra.mxu1 %v5967_v10  ;;  %5100 = vmatprep.subr.mxu0 %v1393_v9  ;;  %v1388_v10 = vld [vmem:[#allocation7 + $0x420] sm:$0xff] }
 0x126   : > { %2166 = vmatprep.mubr.f32.mxu1 %v5327_v55  ;;  %5101 = vmatpush3.msra.mxu0 %v1393_v9  ;;  %v5342_v9 = vld [vmem:[#allocation2 + $0x111] sm:$0xff] }
 0x127   : > { %1942 = vmatmul.mubr.f32.gmra.mxu0 %v5325_v52  ;;  %5102 = vmatprep.subr.mxu0 %v1392_v63 }
 0x128   : > { %1946 = vmatprep.mubr.f32.mxu0 %v5994_v20  ;;  %5103 = vmatpush3.msra.mxu0 %v1392_v63  ;;  %v1387_v20 = vld [vmem:[#allocation7 + $0x418] sm:$0xff] }
 0x129   : > { %2167 = vmatmul.mubr.f32.gmra.mxu1 %v5977_v14  ;;  %5104 = vmatprep.subr.mxu0 %v1391_v12  ;;  %v1386_v14 = vld [vmem:[#allocation7 + $0x410] sm:$0xff] }
 0x12a   : > { %2171 = vmatprep.mubr.f32.mxu1 %v5328_v26  ;;  %5105 = vmatpush3.msra.mxu0 %v1391_v12 }
 0x12b   : > { %1947 = vmatmul.mubr.f32.gmra.mxu0 %v5326_v3  ;;  %5106 = vmatprep.subr.mxu0 %v1390_v6 }
 0x12c   : > { %1951 = vmatprep.mubr.f32.mxu0 %v6004_v27  ;;  %5107 = vmatpush3.msra.mxu0 %v1390_v6  ;;  %v1385_v27 = vld [vmem:[#allocation7 + $0x408] sm:$0xff] }
 0x12d   : > { %2172 = vmatmul.mubr.f32.gmra.mxu1 %v5987_v17  ;;  %5108 = vmatprep.subr.mxu0 %v1389_v16  ;;  %v1384_v17 = vld [vmem:[#allocation7 + $0x400] sm:$0xff] }
 0x12e   : > { %2176 = vmatprep.mubr.f32.mxu1 %v5329_v38  ;;  %5109 = vmatpush3.msra.mxu0 %v1389_v16 }
 0x12f   : > { %1952 = vmatmul.mubr.f32.gmra.mxu0 %v5327_v55  ;;  %5110 = vmatprep.subr.mxu0 %v1388_v10 }
 0x130   : > { %1956 = vmatprep.mubr.f32.mxu0 %v6014_v35  ;;  %5111 = vmatpush3.msra.mxu0 %v1388_v10  ;;  %v5334_v35 = vld [vmem:[#allocation2 + $0xb1] sm:$0xff] }
 0x131   : > { %2177 = vmatmul.mubr.f32.gmra.mxu1 %v5997_v23  ;;  %5112 = vmatprep.subr.mxu0 %v1387_v20  ;;  %v5332_v23 = vld [vmem:[#allocation2 + $0x99] sm:$0xff] }
 0x132   : > { %2181 = vmatprep.mubr.f32.mxu1 %v5330_v48  ;;  %5113 = vmatpush3.msra.mxu0 %v1387_v20 }
 0x133   : > { %1957 = vmatmul.mubr.f32.gmra.mxu0 %v5328_v26  ;;  %5114 = vmatprep.subr.mxu0 %v1386_v14  ;;  %v5343_v26 = vld [vmem:[#allocation2 + $0x121] sm:$0xff] }
 0x134   : > { %1961 = vmatprep.mubr.f32.mxu0 %v6024_v45  ;;  %5115 = vmatpush3.msra.mxu0 %v1386_v14  ;;  %v5336_v45 = vld [vmem:[#allocation2 + $0xc9] sm:$0xff] }
 0x135   : > { %2182 = vmatmul.mubr.f32.gmra.mxu1 %v6007_v28  ;;  %5116 = vmatprep.subr.mxu0 %v1385_v27  ;;  %v5333_v28 = vld [vmem:[#allocation2 + $0xa9] sm:$0xff] }
 0x136   : > { %2186 = vmatprep.mubr.f32.mxu1 %v5331_v22  ;;  %5117 = vmatpush3.msra.mxu0 %v1385_v27 }
 0x137   : > { %1962 = vmatmul.mubr.f32.gmra.mxu0 %v5329_v38  ;;  %5118 = vmatprep.subr.mxu0 %v1384_v17 }
 0x138   : > { %1966 = vmatprep.mubr.f32.mxu0 %v6034_v41  ;;  %5119 = vmatpush3.msra.mxu0 %v1384_v17  ;;  %v5338_v41 = vld [vmem:[#allocation2 + $0xe1] sm:$0xff] }
 0x139   : > { %2187 = vmatmul.mubr.f32.gmra.mxu1 %v6017_v40  ;;  %3611 = vmatprep.subr.mxu1 %v6092_v59  ;;  %v5335_v40 = vld [vmem:[#allocation2 + $0xc1] sm:$0xff] }
 0x13a   : > { %2191 = vmatprep.mubr.f32.mxu1 %v5332_v23  ;;  %3836 = vmatprep.subr.mxu0 %v6092_v59 }
 0x13b   : > { %1967 = vmatmul.mubr.f32.gmra.mxu0 %v5330_v48  ;;  %3612 = vmatpush1.msra.mxu1 %v3475_v18  ;;  %v5344_v48 = vld [vmem:[#allocation2 + $0x129] sm:$0xff] }
 0x13c   : > { %1971 = vmatprep.mubr.f32.mxu0 %v6044_v56  ;;  %v5339_v56 = vld [vmem:[#allocation2 + $0xf1] sm:$0xff]  ;;  %3613 = vmatprep.subr.mxu1 %v6092_v59 }
 0x13d   : > { %2192 = vmatmul.mubr.f32.gmra.mxu1 %v6028_v47  ;;  %v5337_v47 = vld [vmem:[#allocation2 + $0xd9] sm:$0xff] }
 0x13e   : > { %2196 = vmatprep.mubr.f32.mxu1 %v5333_v28 }
 0x13f   : > { %1972 = vmatmul.mubr.f32.gmra.mxu0 %v5331_v22 }
 0x140   : > { %1976 = vmatprep.mubr.f32.mxu0 %v6054_v25 }
 0x141   : > { %2197 = vmatmul.mubr.f32.gmra.mxu1 %v6037_v54  ;;  %v6281_v54 = vld [vmem:[%s7513_s2] ss:$0 sm:$0xff] }
 0x142   : > { %2201 = vmatprep.mubr.f32.mxu1 %v5334_v35 }
 0x143   : > { %1977 = vmatmul.mubr.f32.gmra.mxu0 %v5332_v23 }
 0x144   : > { %1981 = vmatprep.mubr.f32.mxu0 %v6064_v46 }
 0x145   : > { %2202 = vmatmul.mubr.f32.gmra.mxu1 %v6047_v62 }
 0x146   : > { %2206 = vmatprep.mubr.f32.mxu1 %v5335_v40 }
 0x147   : > { %1982 = vmatmul.mubr.f32.gmra.mxu0 %v5333_v28 }
 0x148   : > { %1986 = vmatprep.mubr.f32.mxu0 %v6074_v32  ;;  %v5340_v32 = vld [vmem:[#allocation2 + $0xf9] sm:$0xff] }
 0x149   : > { %2207 = vmatmul.mubr.f32.gmra.mxu1 %v6058_v7 }
 0x14a   : > { %2211 = vmatprep.mubr.f32.mxu1 %v5336_v45 }
 0x14b   : > { %1987 = vmatmul.mubr.f32.gmra.mxu0 %v5334_v35  ;;  %v5345_v35 = vld [vmem:[#allocation2 + $0x139] sm:$0xff] }
 0x14c   : > { %1991 = vmatprep.mubr.f32.mxu0 %v6084_v24 }
 0x14d   : > { %2212 = vmatmul.mubr.f32.gmra.mxu1 %v6067_v31 }
 0x14e   : > { %2216 = vmatprep.mubr.f32.mxu1 %v5337_v47 }
 0x14f   : > { %1992 = vmatmul.mubr.f32.gmra.mxu0 %v5335_v40 }
 0x150   : > { %1996 = vmatprep.mubr.f32.mxu0 %v6096_v37 }
 0x151   : > { %2217 = vmatmul.mubr.f32.gmra.mxu1 %v6077_v19 }
 0x152   : > { %2221 = vmatprep.mubr.f32.mxu1 %v5338_v41 }
 0x153   : > { %1997 = vmatmul.mubr.f32.gmra.mxu0 %v5336_v45 }
 0x154   : > { %2001 = vmatprep.mubr.f32.mxu0 %v6106_v50 }
 0x155   : > { %2222 = vmatmul.mubr.f32.gmra.mxu1 %v6088_v36 }
 0x156   : > { %2226 = vmatprep.mubr.f32.mxu1 %v5339_v56 }
 0x157   : > { %v1473_v62 = vpop.f32.mrf.mxu0  ;;  %2002 = vmatmul.mubr.f32.gmra.mxu0 %v5337_v47 }
 0x158   : > { %v1474_v25 = vadd.f32 %v6281_v54, %v1473_v62  ;;  %2006 = vmatprep.mubr.f32.mxu0 %v6116_v42  ;;  %v5346_v62 = vld [vmem:[#allocation2 + $0x141] sm:$0xff] }
 0x159   : > { %v1475_v7 = vpop.f32.mrf.mxu0  ;;  %v1698_v46 = vpop.f32.mrf.mxu1  ;;  %2227 = vmatmul.mubr.f32.gmra.mxu1 %v6099_v39 }
 0x15a   : > { %v6286_v31 = vadd.f32 %v1698_v46, %v1474_v25  ;;  %2231 = vmatprep.mubr.f32.mxu1 %v5340_v32 }
 0x15b   : > { %v1478_v19 = vpop.f32.mrf.mxu0  ;;  %v1700_v24 = vpop.f32.mrf.mxu1  ;;  %2007 = vmatmul.mubr.f32.gmra.mxu0 %v5338_v41 }
 0x15c   : > { %v1479_v36 = vadd.f32 %v6281_v54, %v1478_v19  ;;  %2011 = vmatprep.mubr.f32.mxu0 %v6126_v1  ;;  %v5347_v24 = vld [vmem:[#allocation2 + $0x151] sm:$0xff] }
 0x15d   : > { %v1480_v37 = vpop.f32.mrf.mxu0  ;;  %v1703_v50 = vpop.f32.mrf.mxu1  ;;  %2232 = vmatmul.mubr.f32.gmra.mxu1 %v6109_v51 }
 0x15e   : > { %v6291_v42 = vadd.f32 %v1703_v50, %v1479_v36  ;;  %2236 = vmatprep.mubr.f32.mxu1 %v5341_v58 }
 0x15f   : > { %v1483_v39 = vpop.f32.mrf.mxu0  ;;  %v1705_v5 = vpop.f32.mrf.mxu1  ;;  %2012 = vmatmul.mubr.f32.gmra.mxu0 %v5339_v56 }
 0x160   : > { %v1484_v52 = vadd.f32 %v6281_v54, %v1483_v39  ;;  %2016 = vmatprep.mubr.f32.mxu0 %v6136_v49  ;;  %v3474_v49 = vld [vmem:[#allocation9 + $0x70] sm:$0xff]  ;;  %v7547_v5 = vld [vmem:[#allocation14_spill] sm:$0xff] }
 0x161   : > { %v1485_v53 = vpop.f32.mrf.mxu0  ;;  %v1708_v3 = vpop.f32.mrf.mxu1  ;;  %2237 = vmatmul.mubr.f32.gmra.mxu1 %v6120_v43 }
 0x162   : > { %v6296_v1 = vadd.f32 %v1708_v3, %v1484_v52  ;;  %2241 = vmatprep.mubr.f32.mxu1 %v5342_v9  ;;  %3614 = vmatpush1.msra.mxu1 %v3474_v49  ;;  %v5348_v52 = vld [vmem:[#allocation2 + $0x159] sm:$0xff] }
 0x163   : > { %v1488_v51 = vpop.f32.mrf.mxu0  ;;  %v1710_v63 = vpop.f32.mrf.mxu1  ;;  %2017 = vmatmul.mubr.f32.gmra.mxu0 %v5340_v32  ;;  %3615 = vmatprep.subr.mxu1 %v6092_v59 }
 0x164   : > { %v1489_v55 = vadd.f32 %v6281_v54, %v1488_v51  ;;  %2021 = vmatprep.mubr.f32.mxu0 %v6146_v33  ;;  %v3473_v33 = vld [vmem:[#allocation9 + $0x68] sm:$0xff] }
 0x165   : > { %v1490_v12 = vpop.f32.mrf.mxu0  ;;  %v1713_v6 = vpop.f32.mrf.mxu1  ;;  %2242 = vmatmul.mubr.f32.gmra.mxu1 %v6129_v11 }
 0x166   : > { %v6302_v43 = vadd.f32 %v1713_v6, %v1489_v55  ;;  %2246 = vmatprep.mubr.f32.mxu1 %v5343_v26  ;;  %3616 = vmatpush1.msra.mxu1 %v3473_v33  ;;  %v5349_v55 = vld [vmem:[#allocation2 + $0x169] sm:$0xff] }
 0x167   : > { %v1493_v16 = vpop.f32.mrf.mxu0  ;;  %v1715_v10 = vpop.f32.mrf.mxu1  ;;  %2022 = vmatmul.mubr.f32.gmra.mxu0 %v5341_v58  ;;  %3617 = vmatprep.subr.mxu1 %v6092_v59 }
 0x168   : > { %v1494_v38 = vadd.f32 %v6281_v54, %v1493_v16  ;;  %2026 = vmatprep.mubr.f32.mxu0 %v6156_v8  ;;  %v3472_v8 = vld [vmem:[#allocation9 + $0x60] sm:$0xff]  ;;  %v7548_v10 = vld [vmem:[#allocation15_spill] sm:$0xff] }
 0x169   : > { %v1495_v20 = vpop.f32.mrf.mxu0  ;;  %v1718_v14 = vpop.f32.mrf.mxu1  ;;  %2247 = vmatmul.mubr.f32.gmra.mxu1 %v6139_v57 }
 0x16a   : > { %v6308_v11 = vadd.f32 %v1718_v14, %v1494_v38  ;;  %2251 = vmatprep.mubr.f32.mxu1 %v5344_v48  ;;  %3618 = vmatpush1.msra.mxu1 %v3472_v8  ;;  %v5350_v38 = vld [vmem:[#allocation2 + $0x171] sm:$0xff] }
 0x16b   : > { %v1498_v27 = vpop.f32.mrf.mxu0  ;;  %v1720_v17 = vpop.f32.mrf.mxu1  ;;  %2027 = vmatmul.mubr.f32.gmra.mxu0 %v5342_v9  ;;  %3619 = vmatprep.subr.mxu1 %v6092_v59 }
 0x16c   : > { %v1499_v22 = vadd.f32 %v6281_v54, %v1498_v27  ;;  %2031 = vmatprep.mubr.f32.mxu0 %v6166_v2  ;;  %v3471_v2 = vld [vmem:[#allocation9 + $0x58] sm:$0xff] }
 0x16d   : > { %v1500_v23 = vpop.f32.mrf.mxu0  ;;  %v1723_v28 = vpop.f32.mrf.mxu1  ;;  %2252 = vmatmul.mubr.f32.gmra.mxu1 %v6150_v0 }
 0x16e   : > { %v6314_v57 = vadd.f32 %v1723_v28, %v1499_v22  ;;  %2256 = vmatprep.mubr.f32.mxu1 %v5345_v35  ;;  %3620 = vmatpush1.msra.mxu1 %v3471_v2  ;;  %v5351_v22 = vld [vmem:[#allocation2 + $0x181] sm:$0xff] }
 0x16f   : > { %v1503_v40 = vpop.f32.mrf.mxu0  ;;  %v1725_v45 = vpop.f32.mrf.mxu1  ;;  %2032 = vmatmul.mubr.f32.gmra.mxu0 %v5343_v26  ;;  %3621 = vmatprep.subr.mxu1 %v6092_v59 }
 0x170   : > { %v1504_v47 = vadd.f32 %v6281_v54, %v1503_v40  ;;  %2036 = vmatprep.mubr.f32.mxu0 %v6176_v4  ;;  %v3470_v4 = vld [vmem:[#allocation9 + $0x50] sm:$0xff] }
 0x171   : > { %v1505_v41 = vpop.f32.mrf.mxu0  ;;  %v1728_v56 = vpop.f32.mrf.mxu1  ;;  %2257 = vmatmul.mubr.f32.gmra.mxu1 %v6159_v61 }
 0x172   : > { %v6320_v0 = vadd.f32 %v1728_v56, %v1504_v47  ;;  %2261 = vmatprep.mubr.f32.mxu1 %v5346_v62  ;;  %3622 = vmatpush1.msra.mxu1 %v3470_v4  ;;  %v7550_v47 = vld [vmem:[#allocation16_spill] sm:$0xff]  ;;  %v5352_v41 = vld [vmem:[#allocation2 + $0x189] sm:$0xff] }
 0x173   : > { %v1508_v25 = vpop.f32.mrf.mxu0  ;;  %v1730_v7 = vpop.f32.mrf.mxu1  ;;  %2037 = vmatmul.mubr.f32.gmra.mxu0 %v5344_v48  ;;  %3623 = vmatprep.subr.mxu1 %v6092_v59 }
 0x174   : > { %v1509_v46 = vadd.f32 %v6281_v54, %v1508_v25  ;;  %2041 = vmatprep.mubr.f32.mxu0 %v6186_v21  ;;  %v3469_v21 = vld [vmem:[#allocation9 + $0x48] sm:$0xff] }
 0x175   : > { %v1510_v32 = vpop.f32.mrf.mxu0  ;;  %v1733_v19 = vpop.f32.mrf.mxu1  ;;  %2262 = vmatmul.mubr.f32.gmra.mxu1 %v6169_v29  ;;  %v870_v25 = vld [vmem:[#allocation2 + $0x199] sm:$0xff] }
 0x176   : > { %v6326_v61 = vadd.f32 %v1733_v19, %v1509_v46  ;;  %2266 = vmatprep.mubr.f32.mxu1 %v5347_v24  ;;  %3624 = vmatpush1.msra.mxu1 %v3469_v21  ;;  %v3464_v46 = vld [vmem:[#allocation9 + $0x20] sm:$0xff]  ;;  %v7551_v19 = vld [vmem:[#allocation17_spill] sm:$0xff] }
 0x177   : > { %v1513_v36 = vpop.f32.mrf.mxu0  ;;  %v1735_v37 = vpop.f32.mrf.mxu1  ;;  %2042 = vmatmul.mubr.f32.gmra.mxu0 %v5345_v35  ;;  %3625 = vmatprep.subr.mxu1 %v6092_v59  ;;  %v7549_v35 = vld [vmem:[#allocation18_spill] sm:$0xff]  ;;  %v871_v21 = vld [vmem:[#allocation2 + $0x1a1] sm:$0xff] }
 0x178   : > { %v1514_v50 = vadd.f32 %v6281_v54, %v1513_v36  ;;  %2046 = vmatprep.mubr.f32.mxu0 %v6196_v13  ;;  %v3468_v13 = vld [vmem:[#allocation9 + $0x40] sm:$0xff] }
 0x179   : > { %v1515_v58 = vpop.f32.mrf.mxu0  ;;  %v1738_v39 = vpop.f32.mrf.mxu1  ;;  %2267 = vmatmul.mubr.f32.gmra.mxu1 %v7547_v5 }
 0x17a   : > { %v6332_v29 = vadd.f32 %v1738_v39, %v1514_v50  ;;  %2271 = vmatprep.mubr.f32.mxu1 %v5348_v52  ;;  %3626 = vmatpush1.msra.mxu1 %v3468_v13  ;;  %v3463_v39 = vld [vmem:[#allocation9 + $0x18] sm:$0xff] }
 0x17b   : > { %v1518_v18 = vpop.f32.mrf.mxu0  ;;  %v1740_v53 = vpop.f32.mrf.mxu1  ;;  %2047 = vmatmul.mubr.f32.gmra.mxu0 %v5346_v62  ;;  %3627 = vmatprep.subr.mxu1 %v6092_v59 }
 0x17c   : > { %v1519_v3 = vadd.f32 %v6281_v54, %v1518_v18  ;;  %2051 = vmatprep.mubr.f32.mxu0 %v6206_v34  ;;  %v3467_v34 = vld [vmem:[#allocation9 + $0x38] sm:$0xff]  ;;  %v904_v18 = vld [vmem:[#allocation2 + $0x32] sm:$0xff] }
 0x17d   : > { %v1520_v9 = vpop.f32.mrf.mxu0  ;;  %v1743_v51 = vpop.f32.mrf.mxu1  ;;  %2272 = vmatmul.mubr.f32.gmra.mxu1 %v6189_v44 }
 0x17e   : > { %v6338_v63 = vadd.f32 %v1743_v51, %v1519_v3  ;;  %2276 = vmatprep.mubr.f32.mxu1 %v5349_v55  ;;  %3628 = vmatpush1.msra.mxu1 %v3467_v34  ;;  %v905_v51 = vld [vmem:[#allocation2 + $0x3a] sm:$0xff] }
 0x17f   : > { %v1523_v49 = vpop.f32.mrf.mxu0  ;;  %v1745_v12 = vpop.f32.mrf.mxu1  ;;  %2052 = vmatmul.mubr.f32.gmra.mxu0 %v5347_v24  ;;  %3629 = vmatprep.subr.mxu1 %v6092_v59  ;;  %v6364_v24 = vld [vmem:[#allocation2 + $0x18a] sm:$0xff] }
 0x180   : > { %v1524_v6 = vadd.f32 %v6281_v54, %v1523_v49  ;;  %2056 = vmatprep.mubr.f32.mxu0 %v6216_v30  ;;  %v3466_v30 = vld [vmem:[#allocation9 + $0x30] sm:$0xff] }
 0x181   : > { %v1525_v26 = vpop.f32.mrf.mxu0  ;;  %v1748_v16 = vpop.f32.mrf.mxu1  ;;  %2277 = vmatmul.mubr.f32.gmra.mxu1 %v7548_v10 }
 0x182   : > { %v6344_v44 = vadd.f32 %v1748_v16, %v1524_v6  ;;  %2281 = vmatprep.mubr.f32.mxu1 %v5350_v38  ;;  %3630 = vmatpush1.msra.mxu1 %v3466_v30  ;;  %v906_v6 = vld [vmem:[#allocation2 + $0x4a] sm:$0xff]  ;;  %v908_v30 = vld [vmem:[#allocation2 + $0x62] sm:$0xff] }
 0x183   : > { %v1528_v33 = vpop.f32.mrf.mxu0  ;;  %v1750_v20 = vpop.f32.mrf.mxu1  ;;  %2057 = vmatmul.mubr.f32.gmra.mxu0 %v5348_v52  ;;  %3631 = vmatprep.subr.mxu1 %v6092_v59 }
 0x184   : > { %v1529_v14 = vadd.f32 %v6281_v54, %v1528_v33  ;;  %2061 = vmatprep.mubr.f32.mxu0 %v6226_v15  ;;  %v3465_v15 = vld [vmem:[#allocation9 + $0x28] sm:$0xff] }
 0x185   : > { %v1530_v48 = vpop.f32.mrf.mxu0  ;;  %v1753_v27 = vpop.f32.mrf.mxu1  ;;  %2282 = vmatmul.mubr.f32.gmra.mxu1 %v6210_v60  ;;  %v6356_v60 = vld [vmem:[#allocation2 + $0x182] sm:$0xff]  ;;  %v3461_v33 = vld [vmem:[#allocation9 + $0x8] sm:$0xff] }
 0x186   : > { %v6350_v17 = vadd.f32 %v1753_v27, %v1529_v14  ;;  %2286 = vmatprep.mubr.f32.mxu1 %v5351_v22  ;;  %3632 = vmatpush1.msra.mxu1 %v3465_v15  ;;  %v6383_v27 = vld [vmem:[#allocation2] sm:$0xff] }
 0x187   : > { %v1533_v8 = vpop.f32.mrf.mxu0  ;;  %v1755_v23 = vpop.f32.mrf.mxu1  ;;  %2062 = vmatmul.mubr.f32.gmra.mxu0 %v5349_v55  ;;  %3633 = vmatprep.subr.mxu1 %v6092_v59  ;;  %v3462_v55 = vld [vmem:[#allocation9 + $0x10] sm:$0xff] }
 0x188   : > { %v1534_v28 = vadd.f32 %v6281_v54, %v1533_v8  ;;  %2066 = vmatprep.mubr.f32.mxu0 %v7549_v35  ;;  %3634 = vmatpush1.msra.mxu1 %v3464_v46  ;;  %v909_v23 = vld [vmem:[#allocation2 + $0x6a] sm:$0xff] }
 0x189   : > { %v1535_v40 = vpop.f32.mrf.mxu0  ;;  %v1758_v45 = vpop.f32.mrf.mxu1  ;;  %2287 = vmatmul.mubr.f32.gmra.mxu1 %v7550_v47  ;;  %3635 = vmatprep.subr.mxu1 %v6092_v59 }
 0x18a   : > { %v6358_v2 = vadd.f32 %v1758_v45, %v1534_v28  ;;  %2291 = vmatprep.mubr.f32.mxu1 %v5352_v41  ;;  %3636 = vmatpush1.msra.mxu1 %v3463_v39  ;;  %v3460_v28 = vld [vmem:[#allocation9] sm:$0xff]  ;;  %v910_v40 = vld [vmem:[#allocation2 + $0x7a] sm:$0xff] }
 0x18b   : > { %v1538_v56 = vpop.f32.mrf.mxu0  ;;  %v1760_v62 = vpop.f32.mrf.mxu1  ;;  %2067 = vmatmul.mubr.f32.gmra.mxu0 %v5350_v38  ;;  %3637 = vmatprep.subr.mxu1 %v6092_v59  ;;  %v907_v38 = vld [vmem:[#allocation2 + $0x52] sm:$0xff] }
 0x18c   : > { %v1539_v7 = vadd.f32 %v6281_v54, %v1538_v56  ;;  %2071 = vmatprep.mubr.f32.mxu0 %v6356_v60  ;;  %3638 = vmatpush1.msra.mxu1 %v3462_v55  ;;  %v911_v62 = vld [vmem:[#allocation2 + $0x82] sm:$0xff]  ;;  %v915_v55 = vld [vmem:[#allocation2 + $0xb2] sm:$0xff] }
 0x18d   : > { %v1540_v4 = vpop.f32.mrf.mxu0  ;;  %v1763_v32 = vpop.f32.mrf.mxu1  ;;  %2292 = vmatmul.mubr.f32.gmra.mxu1 %v7551_v19  ;;  %3639 = vmatprep.subr.mxu1 %v6092_v59 }
 0x18e   : > { %v6366_v36 = vadd.f32 %v1763_v32, %v1539_v7  ;;  %2296 = vmatprep.mubr.f32.mxu1 %v870_v25  ;;  %3640 = vmatpush1.msra.mxu1 %v3461_v33  ;;  %v3491_v25 = vld [vmem:[#allocation9 + $0xf8] sm:$0xff]  ;;  %v912_v4 = vld [vmem:[#allocation2 + $0x92] sm:$0xff] }
 0x18f   : > { %v1543_v37 = vpop.f32.mrf.mxu0  ;;  %v1765_v50 = vpop.f32.mrf.mxu1  ;;  %2072 = vmatmul.mubr.f32.gmra.mxu0 %v5351_v22  ;;  %3641 = vmatprep.subr.mxu1 %v6383_v27 }
 0x190   : > { %v1544_v58 = vadd.f32 %v6281_v54, %v1543_v37  ;;  %2076 = vmatprep.mubr.f32.mxu0 %v6364_v24  ;;  %3642 = vmatpush1.msra.mxu1 %v3460_v28  ;;  %v3504_v28 = vld [vmem:[#allocation9 + $0x160] sm:$0xff] }
 0x191   : > { %v1545_v5 = vpop.f32.mrf.mxu0  ;;  %v1768_v52 = vpop.f32.mrf.mxu1  ;;  %2297 = vmatmul.mubr.f32.gmra.mxu1 %v6092_v59  ;;  %3643 = vmatprep.subr.mxu1 %v6383_v27 }
 0x192   : > { %v6372_v53 = vadd.f32 %v1768_v52, %v1544_v58  ;;  %2301 = vmatprep.mubr.f32.mxu1 %v871_v21  ;;  %3644 = vmatpush2.msra.mxu1 %v3491_v25  ;;  %v913_v21 = vld [vmem:[#allocation2 + $0x9a] sm:$0xff]  ;;  %v914_v52 = vld [vmem:[#allocation2 + $0xaa] sm:$0xff] }
 0x193   : > { %v1548_v3 = vpop.f32.mrf.mxu0  ;;  %v1770_v13 = vpop.f32.mrf.mxu1  ;;  %2077 = vmatmul.mubr.f32.gmra.mxu0 %v5352_v41  ;;  %3645 = vmatprep.subr.mxu1 %v6383_v27  ;;  %v3490_v58 = vld [vmem:[#allocation9 + $0xf0] sm:$0xff] }
 0x194   : > { %v1549_v9 = vadd.f32 %v6281_v54, %v1548_v3  ;;  %5120 = vmatprep.mubr.f32.mxu0 %v904_v18  ;;  %3646 = vmatpush2.msra.mxu1 %v3490_v58 }
 0x195   : > { %v1550_v49 = vpop.f32.mrf.mxu0  ;;  %v1773_v12 = vpop.f32.mrf.mxu1  ;;  %2302 = vmatmul.mubr.f32.gmra.mxu1 %v6092_v59  ;;  %3647 = vmatprep.subr.mxu1 %v6383_v27 }
 0x196   : > { %v6377_v34 = vadd.f32 %v1773_v12, %v1549_v9  ;;  %v3507_v9 = vld [vmem:[#allocation9 + $0x178] sm:$0xff]  ;;  %v3489_v49 = vld [vmem:[#allocation9 + $0xe8] sm:$0xff] }
 0x197   : > { %v1553_v26 = vpop.f32.mrf.mxu0  ;;  %v1775_v16 = vpop.f32.mrf.mxu1  ;;  %5121 = vmatmul.mubr.f32.vlgmr.msra.gmra.mxu0 %v905_v51  ;;  %3648 = vmatpush2.msra.mxu1 %v3489_v49 }
 0x198   : > { %v1554_v10 = vadd.f32 %v6281_v54, %v1553_v26  ;;  %5123 = vmatprep.mubr.f32.mxu0 %v906_v6  ;;  %3837 = vmatpush1.msra.mxu0 %v3507_v9  ;;  %v916_v26 = vld [vmem:[#allocation2 + $0xc2] sm:$0xff]  ;;  %v3500_v9 = vld [vmem:[#allocation9 + $0x140] sm:$0xff] }
 0x199   : > { %v1555_v20 = vpop.f32.mrf.mxu0  ;;  %v1778_v14 = vpop.f32.mrf.mxu1  ;;  %3838 = vmatprep.subr.mxu0 %v6383_v27  ;;  %v3506_v16 = vld [vmem:[#allocation9 + $0x170] sm:$0xff]  ;;  %3649 = vmatprep.subr.mxu1 %v6383_v27 }
 0x19a   : > { %v6381_v48 = vadd.f32 %v1778_v14, %v1554_v10  ;;  %3839 = vmatpush1.msra.mxu0 %v3506_v16  ;;  %v3505_v20 = vld [vmem:[#allocation9 + $0x168] sm:$0xff] }
 0x19b   : > { %v1558_v22 = vpop.f32.mrf.mxu0  ;;  %v1780_v8 = vpop.f32.mrf.mxu1  ;;  %5124 = vmatmul.mubr.f32.gmra.mxu0 %v907_v38  ;;  %3840 = vmatprep.subr.mxu0 %v6383_v27  ;;  %v3485_v16 = vld [vmem:[#allocation9 + $0xc8] sm:$0xff] }
 0x19c   : > { %v1559_v59 = vadd.f32 %v6281_v54, %v1558_v22  ;;  %5126 = vmatprep.mubr.f32.mxu0 %v908_v30  ;;  %v917_v30 = vld [vmem:[#allocation2 + $0xca] sm:$0xff]  ;;  %3841 = vmatpush1.msra.mxu0 %v3505_v20  ;;  %v924_v20 = vld [vmem:[#allocation2 + $0x122] sm:$0xff] }
 0x19d   : > { %v1560_v35 = vpop.f32.mrf.mxu0  ;;  %v1783_v15 = vpop.f32.mrf.mxu1  ;;  %v3488_v22 = vld [vmem:[#allocation9 + $0xe0] sm:$0xff]  ;;  %3842 = vmatprep.subr.mxu0 %v6383_v27 }
 0x19e   : > { %v6387_v45 = vadd.f32 %v1783_v15, %v1559_v59  ;;  %3650 = vmatpush2.msra.mxu1 %v3488_v22  ;;  %3843 = vmatpush1.msra.mxu0 %v3504_v28  ;;  %v925_v28 = vld [vmem:[#allocation2 + $0x12a] sm:$0xff] }
 0x19f   : > { %v1563_v47 = vpop.f32.mrf.mxu0  ;;  %v1785_v41 = vpop.f32.mrf.mxu1  ;;  %5127 = vmatmul.mubr.f32.gmra.mxu0 %v909_v23  ;;  %v918_v23 = vld [vmem:[#allocation2 + $0xda] sm:$0xff]  ;;  %3651 = vmatprep.subr.mxu1 %v6383_v27 }
 0x1a0   : > { %v1564_v56 = vadd.f32 %v6281_v54, %v1563_v47  ;;  %5129 = vmatprep.mubr.f32.mxu0 %v910_v40  ;;  %3844 = vmatprep.subr.mxu0 %v6383_v27  ;;  %v3503_v47 = vld [vmem:[#allocation9 + $0x158] sm:$0xff] }
 0x1a1   : > { %v1565_v7 = vpop.f32.mrf.mxu0  ;;  %v1788_v46 = vpop.f32.mrf.mxu1  ;;  %3845 = vmatpush1.msra.mxu0 %v3503_v47 }
 0x1a2   : > { %v6391_v32 = vadd.f32 %v1788_v46, %v1564_v56  ;;  %v919_v56 = vld [vmem:[#allocation2 + $0xe2] sm:$0xff]  ;;  %v920_v46 = vld [vmem:[#allocation2 + $0xf2] sm:$0xff]  ;;  %3846 = vmatprep.subr.mxu0 %v6383_v27 }
 0x1a3   : > { %v1568_v19 = vpop.f32.mrf.mxu0  ;;  %v1790_v37 = vpop.f32.mrf.mxu1  ;;  %5130 = vmatmul.mubr.f32.gmra.mxu0 %v911_v62  ;;  %v3487_v62 = vld [vmem:[#allocation9 + $0xd8] sm:$0xff] }
 0x1a4   : > { %v1569_v50 = vadd.f32 %v6281_v54, %v1568_v19  ;;  %5132 = vmatprep.mubr.f32.mxu0 %v912_v4  ;;  %3652 = vmatpush2.msra.mxu1 %v3487_v62  ;;  %v3502_v4 = vld [vmem:[#allocation9 + $0x150] sm:$0xff] }
 0x1a5   : > { %v1570_v39 = vpop.f32.mrf.mxu0  ;;  %v1793_v5 = vpop.f32.mrf.mxu1  ;;  %3847 = vmatpush1.msra.mxu0 %v3502_v4  ;;  %3653 = vmatprep.subr.mxu1 %v6383_v27 }
 0x1a6   : > { %v6395_v18 = vadd.f32 %v1793_v5, %v1569_v50  ;;  %3848 = vmatprep.subr.mxu0 %v6383_v27  ;;  %v921_v39 = vld [vmem:[#allocation2 + $0xfa] sm:$0xff] }
 0x1a7   : > { %v1573_v3 = vpop.f32.mrf.mxu0  ;;  %v1795_v13 = vpop.f32.mrf.mxu1  ;;  %5133 = vmatmul.mubr.f32.gmra.mxu0 %v913_v21  ;;  %v3501_v21 = vld [vmem:[#allocation9 + $0x148] sm:$0xff]  ;;  %v3486_v5 = vld [vmem:[#allocation9 + $0xd0] sm:$0xff] }
 0x1a8   : > { %v1574_v51 = vadd.f32 %v6281_v54, %v1573_v3  ;;  %5135 = vmatprep.mubr.f32.mxu0 %v914_v52  ;;  %3849 = vmatpush1.msra.mxu0 %v3501_v21  ;;  %v922_v13 = vld [vmem:[#allocation2 + $0x10a] sm:$0xff] }
 0x1a9   : > { %v1575_v12 = vpop.f32.mrf.mxu0  ;;  %v1798_v6 = vpop.f32.mrf.mxu1  ;;  %3654 = vmatpush2.msra.mxu1 %v3486_v5  ;;  %3850 = vmatprep.subr.mxu0 %v6383_v27  ;;  %v3494_v5 = vld [vmem:[#allocation9 + $0x110] sm:$0xff] }
 0x1aa   : > { %v6400_v10 = vadd.f32 %v1798_v6, %v1574_v51  ;;  %3851 = vmatpush1.msra.mxu0 %v3500_v9  ;;  %3655 = vmatprep.subr.mxu1 %v6383_v27  ;;  %v3499_v12 = vld [vmem:[#allocation9 + $0x138] sm:$0xff]  ;;  %v3493_v9 = vld [vmem:[#allocation9 + $0x108] sm:$0xff] }
 0x1ab   : > { %v1578_v38 = vpop.f32.mrf.mxu0  ;;  %v1800_v33 = vpop.f32.mrf.mxu1  ;;  %5136 = vmatmul.mubr.f32.gmra.mxu0 %v915_v55  ;;  %3852 = vmatprep.subr.mxu0 %v6383_v27 }
 0x1ac   : > { %v1579_v14 = vadd.f32 %v6281_v54, %v1578_v38  ;;  %5138 = vmatprep.mubr.f32.mxu0 %v916_v26  ;;  %v923_v26 = vld [vmem:[#allocation2 + $0x112] sm:$0xff]  ;;  %3853 = vmatpush1.msra.mxu0 %v3499_v12  ;;  %v3482_v12 = vld [vmem:[#allocation9 + $0xb0] sm:$0xff] }
 0x1ad   : > { %v1580_v8 = vpop.f32.mrf.mxu0  ;;  %v1803_v59 = vpop.f32.mrf.mxu1  ;;  %3656 = vmatpush2.msra.mxu1 %v3485_v16  ;;  %3854 = vmatprep.subr.mxu0 %v6383_v27  ;;  %v930_v16 = vld [vmem:[#allocation2 + $0x16a] sm:$0xff] }
 0x1ae   : > { %v6406_v35 = vadd.f32 %v1803_v59, %v1579_v14  ;;  %v3498_v14 = vld [vmem:[#allocation9 + $0x130] sm:$0xff]  ;;  %3657 = vmatprep.subr.mxu1 %v6383_v27  ;;  %v3497_v59 = vld [vmem:[#allocation9 + $0x128] sm:$0xff] }
 0x1af   : > { %v1583_v15 = vpop.f32.mrf.mxu0  ;;  %v1805_v40 = vpop.f32.mrf.mxu1  ;;  %5139 = vmatmul.mubr.f32.gmra.mxu0 %v917_v30 }
 0x1b0   : > { %v1584_v41 = vadd.f32 %v6281_v54, %v1583_v15  ;;  %5141 = vmatprep.mubr.f32.mxu0 %v918_v23  ;;  %3855 = vmatpush1.msra.mxu0 %v3498_v14  ;;  %v3484_v15 = vld [vmem:[#allocation9 + $0xc0] sm:$0xff] }
 0x1b1   : > { %v1585_v25 = vpop.f32.mrf.mxu0  ;;  %v1808_v7 = vpop.f32.mrf.mxu1  ;;  %3856 = vmatprep.subr.mxu0 %v6383_v27  ;;  %3658 = vmatpush2.msra.mxu1 %v3484_v15 }
 0x1b2   : > { %v6412_v19 = vadd.f32 %v1808_v7, %v1584_v41  ;;  %3857 = vmatpush1.msra.mxu0 %v3497_v59  ;;  %v926_v41 = vld [vmem:[#allocation2 + $0x13a] sm:$0xff]  ;;  %3659 = vmatprep.subr.mxu1 %v6383_v27  ;;  %v931_v59 = vld [vmem:[#allocation2 + $0x172] sm:$0xff] }
 0x1b3   : > { %v1588_v37 = vpop.f32.mrf.mxu0  ;;  %v1810_v50 = vpop.f32.mrf.mxu1  ;;  %5142 = vmatmul.mubr.f32.gmra.mxu0 %v919_v56  ;;  %3858 = vmatprep.subr.mxu0 %v6383_v27  ;;  %v3496_v56 = vld [vmem:[#allocation9 + $0x120] sm:$0xff] }
 0x1b4   : > { %v1589_v58 = vadd.f32 %v6281_v54, %v1588_v37  ;;  %5144 = vmatprep.mubr.f32.mxu0 %v920_v46  ;;  %3859 = vmatpush1.msra.mxu0 %v3496_v56  ;;  %v3495_v46 = vld [vmem:[#allocation9 + $0x118] sm:$0xff] }
 0x1b5   : > { %v1590_v52 = vpop.f32.mrf.mxu0  ;;  %v1813_v3 = vpop.f32.mrf.mxu1  ;;  %3860 = vmatprep.subr.mxu0 %v6383_v27  ;;  %v927_v37 = vld [vmem:[#allocation2 + $0x142] sm:$0xff] }
 0x1b6   : > { %v6418_v51 = vadd.f32 %v1813_v3, %v1589_v58  ;;  %v3483_v50 = vld [vmem:[#allocation9 + $0xb8] sm:$0xff]  ;;  %3861 = vmatpush1.msra.mxu0 %v3495_v46  ;;  %v3480_v46 = vld [vmem:[#allocation9 + $0xa0] sm:$0xff] }
 0x1b7   : > { %v1593_v55 = vpop.f32.mrf.mxu0  ;;  %v1815_v49 = vpop.f32.mrf.mxu1  ;;  %5145 = vmatmul.mubr.f32.gmra.mxu0 %v921_v39  ;;  %v928_v39 = vld [vmem:[#allocation2 + $0x152] sm:$0xff]  ;;  %3660 = vmatpush2.msra.mxu1 %v3483_v50  ;;  %v934_v50 = vld [vmem:[#allocation2 + $0x19a] sm:$0xff] }
 0x1b8   : > { %v1594_v6 = vadd.f32 %v6281_v54, %v1593_v55  ;;  %5147 = vmatprep.mubr.f32.mxu0 %v922_v13  ;;  %3862 = vmatprep.subr.mxu0 %v6383_v27  ;;  %v929_v49 = vld [vmem:[#allocation2 + $0x15a] sm:$0xff] }
 0x1b9   : > { %v1595_v38 = vpop.f32.mrf.mxu0  ;;  %v1818_v33 = vpop.f32.mrf.mxu1  ;;  %3863 = vmatpush1.msra.mxu0 %v3494_v5  ;;  %3661 = vmatprep.subr.mxu1 %v6383_v27 }
 0x1ba   : > { %v6424_v30 = vadd.f32 %v1818_v33, %v1594_v6  ;;  %3864 = vmatprep.subr.mxu0 %v6383_v27  ;;  %3662 = vmatpush2.msra.mxu1 %v3482_v12  ;;  %v3492_v38 = vld [vmem:[#allocation9 + $0x100] sm:$0xff]  ;;  %v3518_v12 = vld [vmem:[#allocation9 + $0x1d0] sm:$0xff] }
 0x1bb   : > { %v1598_v22 = vpop.f32.mrf.mxu0  ;;  %v1820_v8 = vpop.f32.mrf.mxu1  ;;  %5148 = vmatmul.mubr.f32.gmra.mxu0 %v923_v26  ;;  %3663 = vmatprep.subr.mxu1 %v6383_v27 }
 0x1bc   : > { %v1599_v23 = vadd.f32 %v6281_v54, %v1598_v22  ;;  %5150 = vmatprep.mubr.f32.mxu0 %v924_v20  ;;  %3865 = vmatpush1.msra.mxu0 %v3493_v9  ;;  %v3523_v22 = vld [vmem:[#allocation9 + $0x1f8] sm:$0xff] }
 0x1bd   : > { %v1600_v40 = vpop.f32.mrf.mxu0  ;;  %v1823_v47 = vpop.f32.mrf.mxu1  ;;  %3866 = vmatprep.subr.mxu0 %v6383_v27  ;;  %v3479_v9 = vld [vmem:[#allocation9 + $0x98] sm:$0xff] }
 0x1be   : > { %v6430_v62 = vadd.f32 %v1823_v47, %v1599_v23  ;;  %3867 = vmatpush1.msra.mxu0 %v3492_v38  ;;  %v3481_v23 = vld [vmem:[#allocation9 + $0xa8] sm:$0xff]  ;;  %v3522_v40 = vld [vmem:[#allocation9 + $0x1f0] sm:$0xff] }
 0x1bf   : > { %v1603_v25 = vpop.f32.mrf.mxu0  ;;  %v1825_v7 = vpop.f32.mrf.mxu1  ;;  %5151 = vmatmul.mubr.f32.gmra.mxu0 %v925_v28  ;;  %3868 = vmatprep.subr.mxu0 %v6383_v27  ;;  %v3517_v38 = vld [vmem:[#allocation9 + $0x1c8] sm:$0xff] }
 0x1c0   : > { %v1604_v4 = vadd.f32 %v6281_v54, %v1603_v25  ;;  %5153 = vmatprep.mubr.f32.mxu0 %v926_v41  ;;  %3869 = vmatpush2.msra.mxu0 %v3523_v22  ;;  %v3521_v25 = vld [vmem:[#allocation9 + $0x1e8] sm:$0xff] }
 0x1c1   : > { %v1605_v21 = vpop.f32.mrf.mxu0  ;;  %v1828_v58 = vpop.f32.mrf.mxu1  ;;  %3664 = vmatpush2.msra.mxu1 %v3481_v23  ;;  %3870 = vmatprep.subr.mxu0 %v6383_v27 }
 0x1c2   : > { %v6436_v52 = vadd.f32 %v1828_v58, %v1604_v4  ;;  %3871 = vmatpush2.msra.mxu0 %v3522_v40  ;;  %3665 = vmatprep.subr.mxu1 %v6383_v27  ;;  %v3520_v21 = vld [vmem:[#allocation9 + $0x1e0] sm:$0xff]  ;;  %v3515_v40 = vld [vmem:[#allocation9 + $0x1b8] sm:$0xff] }
 0x1c3   : > { %v1608_v3 = vpop.f32.mrf.mxu0  ;;  %v1830_v13 = vpop.f32.mrf.mxu1  ;;  %5154 = vmatmul.mubr.f32.gmra.mxu0 %v927_v37  ;;  %3872 = vmatprep.subr.mxu0 %v6383_v27 }
 0x1c4   : > { %v1609_v55 = vadd.f32 %v6281_v54, %v1608_v3  ;;  %5156 = vmatprep.mubr.f32.mxu0 %v928_v39  ;;  %3873 = vmatpush2.msra.mxu0 %v3521_v25  ;;  %v935_v13 = vld [vmem:[#allocation2 + $0x1a2] sm:$0xff] }
 0x1c5   : > { %v1610_v6 = vpop.f32.mrf.mxu0  ;;  %v1833_v26 = vpop.f32.mrf.mxu1  ;;  %3666 = vmatpush2.msra.mxu1 %v3480_v46  ;;  %3874 = vmatprep.subr.mxu0 %v6383_v27  ;;  %v3514_v46 = vld [vmem:[#allocation9 + $0x1b0] sm:$0xff] }
 0x1c6   : > { %v6442_v33 = vadd.f32 %v1833_v26, %v1609_v55  ;;  %3875 = vmatpush2.msra.mxu0 %v3520_v21  ;;  %3667 = vmatprep.subr.mxu1 %v6383_v27  ;;  %v3513_v21 = vld [vmem:[#allocation9 + $0x1a8] sm:$0xff] }
 0x1c7   : > { %v1613_v20 = vpop.f32.mrf.mxu0  ;;  %v1835_v14 = vpop.f32.mrf.mxu1  ;;  %5157 = vmatmul.mubr.f32.gmra.mxu0 %v929_v49  ;;  %3876 = vmatprep.subr.mxu0 %v6383_v27 }
 0x1c8   : > { %v1614_v8 = vadd.f32 %v6281_v54, %v1613_v20  ;;  %5159 = vmatprep.mubr.f32.mxu0 %v930_v16  ;;  %3668 = vmatpush2.msra.mxu1 %v3479_v9  ;;  %v3478_v16 = vld [vmem:[#allocation9 + $0x90] sm:$0xff] }
 0x1c9   : > { %v1615_v28 = vpop.f32.mrf.mxu0  ;;  %v1838_v15 = vpop.f32.mrf.mxu1  ;;  %3669 = vmatprep.subr.mxu1 %v6383_v27 }
 0x1ca   : > { %v6448_v47 = vadd.f32 %v1838_v15, %v1614_v8  ;;  %3670 = vmatpush2.msra.mxu1 %v3478_v16  ;;  %v3516_v8 = vld [vmem:[#allocation9 + $0x1c0] sm:$0xff] }
 0x1cb   : > { %v1618_v41 = vpop.f32.mrf.mxu0  ;;  %v1840_v56 = vpop.f32.mrf.mxu1  ;;  %5160 = vmatmul.mubr.f32.gmra.mxu0 %v931_v59  ;;  %3671 = vmatprep.subr.mxu1 %v6383_v27  ;;  %v3477_v59 = vld [vmem:[#allocation9 + $0x88] sm:$0xff] }
 0x1cc   : > { %v1619_v7 = vadd.f32 %v6281_v54, %v1618_v41  ;;  %5162 = vmatprep.mubr.f32.mxu0 %v6356_v60  ;;  %v3519_v60 = vld [vmem:[#allocation9 + $0x1d8] sm:$0xff]  ;;  %3672 = vmatpush2.msra.mxu1 %v3477_v59 }
 0x1cd   : > { %v1620_v4 = vpop.f32.mrf.mxu0  ;;  %v1843_v37 = vpop.f32.mrf.mxu1  ;;  %3877 = vmatpush2.msra.mxu0 %v3519_v60  ;;  %3673 = vmatprep.subr.mxu1 %v6383_v27  ;;  %v2660_v41 = vld [vmem:[#allocation2 + $0x1] sm:$0xff] }
 0x1ce   : > { %v6455_v58 = vadd.f32 %v1843_v37, %v1619_v7  ;;  %3878 = vmatprep.subr.mxu0 %v6383_v27  ;;  %3675 = vmatprep.mubr.f32.mxu1 %v2660_v41 }
 0x1cf   : > { %v1623_v39 = vpop.f32.mrf.mxu0  ;;  %v1845_v5 = vpop.f32.mrf.mxu1  ;;  %5163 = vmatmul.mubr.f32.gmra.mxu0 %v6364_v24 }
 0x1d0   : > { %v1624_v3 = vadd.f32 %v6281_v54, %v1623_v39  ;;  %5165 = vmatprep.mubr.f32.mxu0 %v934_v50  ;;  %3879 = vmatpush2.msra.mxu0 %v3518_v12 }
 0x1d1   : > { %v1625_v55 = vpop.f32.mrf.mxu0  ;;  %v1848_v49 = vpop.f32.mrf.mxu1  ;;  %3880 = vmatprep.subr.mxu0 %v6383_v27 }
 0x1d2   : > { %v6462_v6 = vadd.f32 %v1848_v49, %v1624_v3  ;;  %3881 = vmatpush2.msra.mxu0 %v3517_v38  ;;  %v3512_v3 = vld [vmem:[#allocation9 + $0x1a0] sm:$0xff]  ;;  %v3511_v49 = vld [vmem:[#allocation9 + $0x198] sm:$0xff] }
 0x1d3   : > { %v1628_v24 = vpop.f32.mrf.mxu0  ;;  %v1850_v26 = vpop.f32.mrf.mxu1  ;;  %5166 = vmatmul.mubr.f32.gmra.mxu0 %v935_v13  ;;  %3882 = vmatprep.subr.mxu0 %v6383_v27 }
 0x1d4   : > { %v1629_v20 = vadd.f32 %v6281_v54, %v1628_v24  ;;  %3883 = vmatpush2.msra.mxu0 %v3516_v8  ;;  %v3476_v54 = vld [vmem:[#allocation9 + $0x80] sm:$0xff]  ;;  %v3510_v26 = vld [vmem:[#allocation9 + $0x190] sm:$0xff]  ;;  %v3539_v8 = vld [vmem:[#allocation9 + $0x278] sm:$0xff] }
 0x1d5   : > { %v1630_v14 = vpop.f32.mrf.mxu0  ;;  %v1853_v22 = vpop.f32.mrf.mxu1  ;;  %3884 = vmatprep.subr.mxu0 %v6383_v27  ;;  %3674 = vmatpush2.msra.mxu1 %v3476_v54 }
 0x1d6   : > { %v6469_v23 = vadd.f32 %v1853_v22, %v1629_v20  ;;  %3885 = vmatpush2.msra.mxu0 %v3515_v40  ;;  %3676 = vmatmul.mubr.f32.vlgmr.msra.gmra.mxu1 %v6383_v27  ;;  %v3509_v14 = vld [vmem:[#allocation9 + $0x188] sm:$0xff] }
 0x1d7   : > { %v1855_v28 = vpop.f32.mrf.mxu1  ;;  %v1923_v15 = vpop.f32.mrf.mxu0  ;;  %3886 = vmatprep.subr.mxu0 %v6383_v27  ;;  %4061 = vmatprep.subr.mxu1 %v6383_v27 }
 0x1d8   : > { %v1924_v56 = vadd.f32 %v1923_v15, %v6286_v31  ;;  %3887 = vmatpush2.msra.mxu0 %v3514_v46  ;;  %v2661_v31 = vld [vmem:[#allocation2 + $0x9] sm:$0xff]  ;;  %4062 = vmatpush1.msra.mxu1 %v3539_v8 }
 0x1d9   : > { %v1925_v25 = vpop.f32.mrf.mxu0  ;;  %v2148_v7 = vpop.f32.mrf.mxu1  ;;  %3888 = vmatprep.subr.mxu0 %v6383_v27  ;;  %3680 = vmatprep.mubr.f32.mxu1 %v2661_v31  ;;  %v3508_v28 = vld [vmem:[#allocation9 + $0x180] sm:$0xff] }
 0x1da   : > { %v6475_v4 = vadd.f32 %v2148_v7, %v1924_v56  ;;  %3889 = vmatpush2.msra.mxu0 %v3513_v21  ;;  %3681 = vmatmul.mubr.f32.gmra.mxu1 %v6383_v27  ;;  %v3537_v21 = vld [vmem:[#allocation9 + $0x268] sm:$0xff] }
 0x1db   : > { %v1928_v37 = vpop.f32.mrf.mxu0  ;;  %v2150_v50 = vpop.f32.mrf.mxu1  ;;  %3890 = vmatprep.subr.mxu0 %v6383_v27  ;;  %4063 = vmatprep.subr.mxu1 %v6383_v27 }
 0x1dc   : > { %v1929_v39 = vadd.f32 %v1928_v37, %v6291_v42  ;;  %3891 = vmatpush2.msra.mxu0 %v3512_v3 }
 0x1dd   : > { %v1930_v5 = vpop.f32.mrf.mxu0  ;;  %v2153_v60 = vpop.f32.mrf.mxu1  ;;  %3892 = vmatprep.subr.mxu0 %v6383_v27 }
 0x1de   : > { %v6482_v13 = vadd.f32 %v2153_v60, %v1929_v39  ;;  %3893 = vmatpush2.msra.mxu0 %v3511_v49 }
 0x1df   : > { %v1933_v9 = vpop.f32.mrf.mxu0  ;;  %v2155_v55 = vpop.f32.mrf.mxu1  ;;  %3894 = vmatprep.subr.mxu0 %v6383_v27 }
 0x1e0   : > { %v1934_v12 = vadd.f32 %v1933_v9, %v6296_v1  ;;  %3895 = vmatpush2.msra.mxu0 %v3510_v26  ;;  %v3536_v9 = vld [vmem:[#allocation9 + $0x260] sm:$0xff]  ;;  %v3535_v26 = vld [vmem:[#allocation9 + $0x258] sm:$0xff] }
 0x1e1   : > { %v1935_v42 = vpop.f32.mrf.mxu0  ;;  %v2158_v24 = vpop.f32.mrf.mxu1  ;;  %3896 = vmatprep.subr.mxu0 %v6383_v27 }
 0x1e2   : > { %v6488_v16 = vadd.f32 %v2158_v24, %v1934_v12  ;;  %3897 = vmatpush2.msra.mxu0 %v3509_v14 }
 0x1e3   : > { %v1938_v38 = vpop.f32.mrf.mxu0  ;;  %v2160_v20 = vpop.f32.mrf.mxu1  ;;  %3898 = vmatprep.subr.mxu0 %v6383_v27 }
 0x1e4   : > { %v1939_v22 = vadd.f32 %v1938_v38, %v6302_v43  ;;  %3899 = vmatpush2.msra.mxu0 %v3508_v28  ;;  %v3538_v43 = vld [vmem:[#allocation9 + $0x270] sm:$0xff] }
 0x1e5   : > { %v1940_v59 = vpop.f32.mrf.mxu0  ;;  %v2163_v1 = vpop.f32.mrf.mxu1  ;;  %4286 = vmatprep.subr.mxu0 %v6383_v27  ;;  %4064 = vmatpush1.msra.mxu1 %v3538_v43  ;;  %v3533_v43 = vld [vmem:[#allocation9 + $0x248] sm:$0xff] }
 0x1e6   : > { %v6493_v15 = vadd.f32 %v2163_v1, %v1939_v22  ;;  %4065 = vmatprep.subr.mxu1 %v6383_v27  ;;  %v3534_v59 = vld [vmem:[#allocation9 + $0x250] sm:$0xff] }
 0x1e7   : > { %v1943_v40 = vpop.f32.mrf.mxu0  ;;  %v2165_v54 = vpop.f32.mrf.mxu1  ;;  %4066 = vmatpush1.msra.mxu1 %v3537_v21  ;;  %v3532_v21 = vld [vmem:[#allocation9 + $0x240] sm:$0xff] }
 0x1e8   : > { %v1944_v41 = vadd.f32 %v1943_v40, %v6308_v11  ;;  %4067 = vmatprep.subr.mxu1 %v6383_v27 }
 0x1e9   : > { %v1945_v56 = vpop.f32.mrf.mxu0  ;;  %v2168_v25 = vpop.f32.mrf.mxu1  ;;  %4068 = vmatpush1.msra.mxu1 %v3536_v9  ;;  %v3531_v9 = vld [vmem:[#allocation9 + $0x238] sm:$0xff] }
 0x1ea   : > { %v6498_v7 = vadd.f32 %v2168_v25, %v1944_v41  ;;  %4069 = vmatprep.subr.mxu1 %v6383_v27 }
 0x1eb   : > { %v1948_v46 = vpop.f32.mrf.mxu0  ;;  %v2170_v37 = vpop.f32.mrf.mxu1  ;;  %4070 = vmatpush1.msra.mxu1 %v3535_v26  ;;  %v3530_v26 = vld [vmem:[#allocation9 + $0x230] sm:$0xff] }
 0x1ec   : > { %v1949_v50 = vadd.f32 %v1948_v46, %v6314_v57  ;;  %4071 = vmatprep.subr.mxu1 %v6383_v27 }
 0x1ed   : > { %v1950_v31 = vpop.f32.mrf.mxu0  ;;  %v2173_v39 = vpop.f32.mrf.mxu1  ;;  %4072 = vmatpush1.msra.mxu1 %v3534_v59  ;;  %v3529_v59 = vld [vmem:[#allocation9 + $0x228] sm:$0xff] }
 0x1ee   : > { %v6502_v5 = vadd.f32 %v2173_v39, %v1949_v50  ;;  %4073 = vmatprep.subr.mxu1 %v6383_v27 }
 0x1ef   : > { %v1953_v11 = vpop.f32.mrf.mxu0  ;;  %v2175_v60 = vpop.f32.mrf.mxu1  ;;  %4074 = vmatpush1.msra.mxu1 %v3533_v43  ;;  %v3528_v43 = vld [vmem:[#allocation9 + $0x220] sm:$0xff] }
 0x1f0   : > { %v1954_v3 = vadd.f32 %v1953_v11, %v6320_v0  ;;  %4075 = vmatprep.subr.mxu1 %v6383_v27 }
 0x1f1   : > { %v1955_v55 = vpop.f32.mrf.mxu0  ;;  %v2178_v49 = vpop.f32.mrf.mxu1  ;;  %4076 = vmatpush1.msra.mxu1 %v3532_v21  ;;  %v3527_v21 = vld [vmem:[#allocation9 + $0x218] sm:$0xff] }
 0x1f2   : > { %v6506_v12 = vadd.f32 %v2178_v49, %v1954_v3  ;;  %4077 = vmatprep.subr.mxu1 %v6383_v27 }
 0x1f3   : > { %v1958_v57 = vpop.f32.mrf.mxu0  ;;  %v2180_v42 = vpop.f32.mrf.mxu1  ;;  %4078 = vmatpush1.msra.mxu1 %v3531_v9  ;;  %v3526_v9 = vld [vmem:[#allocation9 + $0x210] sm:$0xff] }
 0x1f4   : > { %v1959_v24 = vadd.f32 %v1958_v57, %v6326_v61  ;;  %4079 = vmatprep.subr.mxu1 %v6383_v27 }
 0x1f5   : > { %v1960_v38 = vpop.f32.mrf.mxu0  ;;  %v2183_v20 = vpop.f32.mrf.mxu1  ;;  %4080 = vmatpush1.msra.mxu1 %v3530_v26 }
 0x1f6   : > { %v6510_v14 = vadd.f32 %v2183_v20, %v1959_v24  ;;  %4081 = vmatprep.subr.mxu1 %v6383_v27 }
 0x1f7   : > { %v1963_v0 = vpop.f32.mrf.mxu0  ;;  %v2185_v22 = vpop.f32.mrf.mxu1  ;;  %4082 = vmatpush1.msra.mxu1 %v3529_v59 }
 0x1f8   : > { %v1964_v8 = vadd.f32 %v1963_v0, %v6332_v29  ;;  %4083 = vmatprep.subr.mxu1 %v6383_v27 }
 0x1f9   : > { %v1965_v1 = vpop.f32.mrf.mxu0  ;;  %v2188_v28 = vpop.f32.mrf.mxu1  ;;  %4084 = vmatpush1.msra.mxu1 %v3528_v43 }
 0x1fa   : > { %v6514_v40 = vadd.f32 %v2188_v28, %v1964_v8  ;;  %4085 = vmatprep.subr.mxu1 %v6383_v27 }
 0x1fb   : > { %v1968_v61 = vpop.f32.mrf.mxu0  ;;  %v2190_v54 = vpop.f32.mrf.mxu1  ;;  %4086 = vmatpush1.msra.mxu1 %v3527_v21 }
 0x1fc   : > { %v1969_v41 = vadd.f32 %v1968_v61, %v6338_v63  ;;  %4087 = vmatprep.subr.mxu1 %v6383_v27 }
 0x1fd   : > { %v1970_v56 = vpop.f32.mrf.mxu0  ;;  %v2193_v25 = vpop.f32.mrf.mxu1  ;;  %4088 = vmatpush1.msra.mxu1 %v3526_v9 }
 0x1fe   : > { %v6518_v46 = vadd.f32 %v2193_v25, %v1969_v41  ;;  %4089 = vmatprep.subr.mxu1 %v6383_v27 }
 0x1ff   : > { %v1973_v29 = vpop.f32.mrf.mxu0  ;;  %v2195_v37 = vpop.f32.mrf.mxu1 }
 0x200   : > { %v1974_v50 = vadd.f32 %v1973_v29, %v6344_v44 }
 0x201   : > { %v1975_v31 = vpop.f32.mrf.mxu0  ;;  %v2198_v39 = vpop.f32.mrf.mxu1 }
 0x202   : > { %v6522_v11 = vadd.f32 %v2198_v39, %v1974_v50 }
 0x203   : > { %v1978_v63 = vpop.f32.mrf.mxu0  ;;  %v2200_v60 = vpop.f32.mrf.mxu1 }
 0x204   : > { %v1979_v3 = vadd.f32 %v1978_v63, %v6350_v17 }
 0x205   : > { %v1980_v55 = vpop.f32.mrf.mxu0  ;;  %v2203_v49 = vpop.f32.mrf.mxu1 }
 0x206   : > { %v6526_v57 = vadd.f32 %v2203_v49, %v1979_v3 }
 0x207   : > { %v1983_v44 = vpop.f32.mrf.mxu0  ;;  %v2205_v42 = vpop.f32.mrf.mxu1 }
 0x208   : > { %v1984_v24 = vadd.f32 %v1983_v44, %v6358_v2 }
 0x209   : > { %v1985_v38 = vpop.f32.mrf.mxu0  ;;  %v2208_v20 = vpop.f32.mrf.mxu1 }
 0x20a   : > { %v6530_v0 = vadd.f32 %v2208_v20, %v1984_v24  ;;  %v3524_v38 = vld [vmem:[#allocation9 + $0x200] sm:$0xff] }
 0x20b   : > { %v1988_v17 = vpop.f32.mrf.mxu0  ;;  %v2210_v22 = vpop.f32.mrf.mxu1 }
 0x20c   : > { %v1989_v8 = vadd.f32 %v1988_v17, %v6366_v36 }
 0x20d   : > { %v1990_v1 = vpop.f32.mrf.mxu0  ;;  %v2213_v28 = vpop.f32.mrf.mxu1 }
 0x20e   : > { %v6534_v61 = vadd.f32 %v2213_v28, %v1989_v8  ;;  %v3555_v1 = vld [vmem:[#allocation9 + $0x2f8] sm:$0xff] }
 0x20f   : > { %v1993_v2 = vpop.f32.mrf.mxu0  ;;  %v2215_v54 = vpop.f32.mrf.mxu1 }
 0x210   : > { %v1994_v41 = vadd.f32 %v1993_v2, %v6372_v53 }
 0x211   : > { %v1995_v56 = vpop.f32.mrf.mxu0  ;;  %v2218_v25 = vpop.f32.mrf.mxu1 }
 0x212   : > { %v6538_v29 = vadd.f32 %v2218_v25, %v1994_v41  ;;  %v3554_v56 = vld [vmem:[#allocation9 + $0x2f0] sm:$0xff] }
 0x213   : > { %v1998_v36 = vpop.f32.mrf.mxu0  ;;  %v2220_v37 = vpop.f32.mrf.mxu1 }
 0x214   : > { %v1999_v50 = vadd.f32 %v1998_v36, %v6377_v34  ;;  %v3525_v34 = vld [vmem:[#allocation9 + $0x208] sm:$0xff] }
 0x215   : > { %v2000_v31 = vpop.f32.mrf.mxu0  ;;  %v2223_v39 = vpop.f32.mrf.mxu1  ;;  %4090 = vmatpush1.msra.mxu1 %v3525_v34 }
 0x216   : > { %v6542_v63 = vadd.f32 %v2223_v39, %v1999_v50  ;;  %4091 = vmatprep.subr.mxu1 %v6383_v27  ;;  %v3553_v31 = vld [vmem:[#allocation9 + $0x2e8] sm:$0xff] }
 0x217   : > { %v2003_v53 = vpop.f32.mrf.mxu0  ;;  %v2225_v60 = vpop.f32.mrf.mxu1  ;;  %4092 = vmatpush1.msra.mxu1 %v3524_v38  ;;  %v3551_v38 = vld [vmem:[#allocation9 + $0x2d8] sm:$0xff] }
 0x218   : > { %v2004_v3 = vadd.f32 %v2003_v53, %v6381_v48  ;;  %4093 = vmatprep.subr.mxu1 %v6383_v27 }
 0x219   : > { %v2005_v55 = vpop.f32.mrf.mxu0  ;;  %v2228_v49 = vpop.f32.mrf.mxu1  ;;  %4094 = vmatpush2.msra.mxu1 %v3555_v1  ;;  %v3550_v1 = vld [vmem:[#allocation9 + $0x2d0] sm:$0xff] }
 0x21a   : > { %v6546_v44 = vadd.f32 %v2228_v49, %v2004_v3  ;;  %4095 = vmatprep.subr.mxu1 %v6383_v27  ;;  %v3552_v55 = vld [vmem:[#allocation9 + $0x2e0] sm:$0xff] }
 0x21b   : > { %v2008_v42 = vpop.f32.mrf.mxu0  ;;  %v2230_v24 = vpop.f32.mrf.mxu1  ;;  %4096 = vmatpush2.msra.mxu1 %v3554_v56  ;;  %v3549_v56 = vld [vmem:[#allocation9 + $0x2c8] sm:$0xff] }
 0x21c   : > { %v2009_v26 = vadd.f32 %v2008_v42, %v6387_v45  ;;  %4097 = vmatprep.subr.mxu1 %v6383_v27 }
 0x21d   : > { %v2010_v20 = vpop.f32.mrf.mxu0  ;;  %v2233_v17 = vpop.f32.mrf.mxu1  ;;  %4098 = vmatpush2.msra.mxu1 %v3553_v31 }
 0x21e   : > { %v6551_v48 = vadd.f32 %v2233_v17, %v2009_v26  ;;  %4099 = vmatprep.subr.mxu1 %v6383_v27 }
 0x21f   : > { %v2013_v22 = vpop.f32.mrf.mxu0  ;;  %v2235_v8 = vpop.f32.mrf.mxu1  ;;  %4100 = vmatpush2.msra.mxu1 %v3552_v55  ;;  %v3547_v55 = vld [vmem:[#allocation9 + $0x2b8] sm:$0xff] }
 0x220   : > { %v2014_v59 = vadd.f32 %v2013_v22, %v6391_v32  ;;  %4101 = vmatprep.subr.mxu1 %v6383_v27 }
 0x221   : > { %v2015_v28 = vpop.f32.mrf.mxu0  ;;  %v2238_v2 = vpop.f32.mrf.mxu1  ;;  %4102 = vmatpush2.msra.mxu1 %v3551_v38  ;;  %v3546_v38 = vld [vmem:[#allocation9 + $0x2b0] sm:$0xff] }
 0x222   : > { %v6555_v54 = vadd.f32 %v2238_v2, %v2014_v59  ;;  %4103 = vmatprep.subr.mxu1 %v6383_v27 }
 0x223   : > { %v2018_v45 = vpop.f32.mrf.mxu0  ;;  %v2240_v41 = vpop.f32.mrf.mxu1  ;;  %4104 = vmatpush2.msra.mxu1 %v3550_v1  ;;  %v3545_v1 = vld [vmem:[#allocation9 + $0x2a8] sm:$0xff] }
 0x224   : > { %v2019_v43 = vadd.f32 %v2018_v45, %v6395_v18  ;;  %4105 = vmatprep.subr.mxu1 %v6383_v27 }
 0x225   : > { %v2020_v25 = vpop.f32.mrf.mxu0  ;;  %v2243_v36 = vpop.f32.mrf.mxu1  ;;  %4106 = vmatpush2.msra.mxu1 %v3549_v56  ;;  %v3544_v56 = vld [vmem:[#allocation9 + $0x2a0] sm:$0xff] }
 0x226   : > { %v6559_v37 = vadd.f32 %v2243_v36, %v2019_v43 }
 0x227   : > { %v2023_v32 = vpop.f32.mrf.mxu0  ;;  %v2245_v50 = vpop.f32.mrf.mxu1 }
 0x228   : > { %v2024_v21 = vadd.f32 %v2023_v32, %v6400_v10  ;;  %v6581_v50 = vld [vmem:[#allocation2] sm:$0xff] }
 0x229   : > { %v2025_v39 = vpop.f32.mrf.mxu0  ;;  %v2248_v53 = vpop.f32.mrf.mxu1  ;;  %4107 = vmatprep.subr.mxu1 %v6581_v50 }
 0x22a   : > { %v6563_v60 = vadd.f32 %v2248_v53, %v2024_v21  ;;  %v3548_v39 = vld [vmem:[#allocation9 + $0x2c0] sm:$0xff] }
 0x22b   : > { %v2028_v18 = vpop.f32.mrf.mxu0  ;;  %v2250_v3 = vpop.f32.mrf.mxu1  ;;  %4108 = vmatpush2.msra.mxu1 %v3548_v39  ;;  %v3543_v39 = vld [vmem:[#allocation9 + $0x298] sm:$0xff] }
 0x22c   : > { %v2029_v9 = vadd.f32 %v2028_v18, %v6406_v35  ;;  %4109 = vmatprep.subr.mxu1 %v6581_v50 }
 0x22d   : > { %v2030_v49 = vpop.f32.mrf.mxu0  ;;  %v2253_v34 = vpop.f32.mrf.mxu1  ;;  %4110 = vmatpush2.msra.mxu1 %v3547_v55 }
 0x22e   : > { %v6567_v42 = vadd.f32 %v2253_v34, %v2029_v9  ;;  %4111 = vmatprep.subr.mxu1 %v6581_v50 }
 0x22f   : > { %v2033_v10 = vpop.f32.mrf.mxu0  ;;  %v2255_v24 = vpop.f32.mrf.mxu1  ;;  %4112 = vmatpush2.msra.mxu1 %v3546_v38 }
 0x230   : > { %v2034_v26 = vadd.f32 %v2033_v10, %v6412_v19  ;;  %4113 = vmatprep.subr.mxu1 %v6581_v50 }
 0x231   : > { %v2035_v20 = vpop.f32.mrf.mxu0  ;;  %v2258_v17 = vpop.f32.mrf.mxu1  ;;  %4114 = vmatpush2.msra.mxu1 %v3545_v1 }
 0x232   : > { %v6571_v22 = vadd.f32 %v2258_v17, %v2034_v26  ;;  %4115 = vmatprep.subr.mxu1 %v6581_v50 }
 0x233   : > { %v2038_v35 = vpop.f32.mrf.mxu0  ;;  %v2260_v8 = vpop.f32.mrf.mxu1  ;;  %4116 = vmatpush2.msra.mxu1 %v3544_v56 }
 0x234   : > { %v2039_v59 = vadd.f32 %v2038_v35, %v6418_v51  ;;  %4117 = vmatprep.subr.mxu1 %v6581_v50 }
 0x235   : > { %v2040_v28 = vpop.f32.mrf.mxu0  ;;  %v2263_v2 = vpop.f32.mrf.mxu1  ;;  %4118 = vmatpush2.msra.mxu1 %v3543_v39 }
 0x236   : > { %v6575_v45 = vadd.f32 %v2263_v2, %v2039_v59  ;;  %4119 = vmatprep.subr.mxu1 %v6581_v50 }
 0x237   : > { %v2043_v19 = vpop.f32.mrf.mxu0  ;;  %v2265_v41 = vpop.f32.mrf.mxu1 }
 0x238   : > { %v2044_v43 = vadd.f32 %v2043_v19, %v6424_v30 }
 0x239   : > { %v2045_v25 = vpop.f32.mrf.mxu0  ;;  %v2268_v36 = vpop.f32.mrf.mxu1 }
 0x23a   : > { %v6579_v32 = vadd.f32 %v2268_v36, %v2044_v43 }
 0x23b   : > { %v2048_v51 = vpop.f32.mrf.mxu0  ;;  %v2270_v21 = vpop.f32.mrf.mxu1 }
 0x23c   : > { %v2049_v31 = vadd.f32 %v2048_v51, %v6430_v62 }
 0x23d   : > { %v2050_v27 = vpop.f32.mrf.mxu0  ;;  %v2273_v53 = vpop.f32.mrf.mxu1 }
 0x23e   : > { %v6585_v18 = vadd.f32 %v2273_v53, %v2049_v31 }
 0x23f   : > { %v2053_v30 = vpop.f32.mrf.mxu0  ;;  %v2275_v3 = vpop.f32.mrf.mxu1 }
 0x240   : > { %v2054_v9 = vadd.f32 %v2053_v30, %v6436_v52 }
 0x241   : > { %v2055_v49 = vpop.f32.mrf.mxu0  ;;  %v2278_v34 = vpop.f32.mrf.mxu1 }
 0x242   : > { %v6589_v10 = vadd.f32 %v2278_v34, %v2054_v9  ;;  %v3542_v9 = vld [vmem:[#allocation9 + $0x290] sm:$0xff] }
 0x243   : > { %v2058_v62 = vpop.f32.mrf.mxu0  ;;  %v2280_v24 = vpop.f32.mrf.mxu1  ;;  %4120 = vmatpush2.msra.mxu1 %v3542_v9 }
 0x244   : > { %v2059_v26 = vadd.f32 %v2058_v62, %v6442_v33  ;;  %4121 = vmatprep.subr.mxu1 %v6581_v50  ;;  %v3541_v24 = vld [vmem:[#allocation9 + $0x288] sm:$0xff] }
 0x245   : > { %v2060_v20 = vpop.f32.mrf.mxu0  ;;  %v2283_v17 = vpop.f32.mrf.mxu1  ;;  %4122 = vmatpush2.msra.mxu1 %v3541_v24 }
 0x246   : > { %v6593_v35 = vadd.f32 %v2283_v17, %v2059_v26  ;;  %4123 = vmatprep.subr.mxu1 %v6581_v50 }
 0x247   : > { %v2063_v52 = vpop.f32.mrf.mxu0  ;;  %v2285_v8 = vpop.f32.mrf.mxu1 }
 0x248   : > { %v2064_v59 = vadd.f32 %v2063_v52, %v6448_v47 }
 0x249   : > { %v2065_v28 = vpop.f32.mrf.mxu0  ;;  %v2288_v2 = vpop.f32.mrf.mxu1 }
 0x24a   : > { %v6597_v19 = vadd.f32 %v2288_v2, %v2064_v59  ;;  %v3540_v59 = vld [vmem:[#allocation9 + $0x280] sm:$0xff] }
 0x24b   : > { %v2068_v33 = vpop.f32.mrf.mxu0  ;;  %v2290_v41 = vpop.f32.mrf.mxu1  ;;  %4124 = vmatpush2.msra.mxu1 %v3540_v59 }
 0x24c   : > { %v2069_v43 = vadd.f32 %v2068_v33, %v6455_v58  ;;  %v6621_v33 = vld [vmem:[#allocation9 + $0x478] sm:$0xff] }
 0x24d   : > { %v2070_v25 = vpop.f32.mrf.mxu0  ;;  %v2293_v36 = vpop.f32.mrf.mxu1  ;;  %5168 = vmatprep.subr.mxu1 %v6621_v33 }
 0x24e   : > { %v6601_v51 = vadd.f32 %v2293_v36, %v2069_v43 }
 0x24f   : > { %v2073_v47 = vpop.f32.mrf.mxu0  ;;  %v2295_v21 = vpop.f32.mrf.mxu1 }
 0x250   : > { %v2074_v31 = vadd.f32 %v2073_v47, %v6462_v6 }
 0x251   : > { %v2075_v27 = vpop.f32.mrf.mxu0  ;;  %v2298_v53 = vpop.f32.mrf.mxu1 }
 0x252   : > { %v6605_v30 = vadd.f32 %v2298_v53, %v2074_v31  ;;  %v3571_v31 = vld [vmem:[#allocation9 + $0x378] sm:$0xff] }
 0x253   : > { %v6608_v58 = vpop.f32.mrf.mxu0  ;;  %v2300_v3 = vpop.f32.mrf.mxu1 }
 0x255   : > { %v2080_v55 = vpop.f32.mrf.mxu0  ;;  %v6610_v49 = vpop.f32.mrf.mxu1 }
 0x256   : > { %v2725_v55 = vld [vmem:[#allocation2 + $0xa] sm:$0xff] }
 0x257   : > { %v5122_v34 = vpop.f32.mrf.mxu0  ;;  %v2305_v6 = vpop.f32.mrf.mxu1 }
 0x258   : > { %v2379_v62 = vadd.f32 %v5122_v34, %v6482_v13 }
 0x259   : > { %v2373_v26 = vpop.f32.mrf.mxu0 }
 0x25a   : > { %v2533_v38 = vmax.f32 %v2379_v62, 0.0  ;;  %v2374_v20 = vadd.f32 %v2373_v26, %v6475_v4  ;;  %v3569_v62 = vld [vmem:[#allocation9 + $0x368] sm:$0xff] }
 0x25b   : > { %v5125_v17 = vpop.f32.mrf.mxu0 }
 0x25c   : > { %2565 = vst [vmem:[#allocation2 + $0x21] sm:$0xff] %v2533_v38  ;;  %v2532_v52 = vmax.f32 %v2374_v20, 0.0  ;;  %v6617_v8 = vadd.f32 %v5125_v17, %v6493_v15  ;;  %v3568_v20 = vld [vmem:[#allocation9 + $0x360] sm:$0xff] }
 0x25d   : > { %v2383_v1 = vpop.f32.mrf.mxu0 }
 0x25e   : > { %2564 = vst [vmem:[#allocation2 + $0x19] sm:$0xff] %v2532_v52  ;;  %v2535_v13 = vmax.f32 %v6617_v8, 0.0  ;;  %v2384_v28 = vadd.f32 %v2383_v1, %v6488_v16  ;;  %3685 = vmatprep.mubr.f32.mxu1 %v2532_v52 }
 0x25f   : > { %v5128_v2 = vpop.f32.mrf.mxu0 }
 0x260   : > { %2567 = vst [vmem:[#allocation2 + $0x39] sm:$0xff] %v2535_v13  ;;  %v2534_v4 = vmax.f32 %v2384_v28, 0.0  ;;  %v6626_v41 = vadd.f32 %v5128_v2, %v6502_v5  ;;  %v2724_v5 = vld [vmem:[#allocation2 + $0x2] sm:$0xff] }
 0x261   : > { %v2393_v15 = vpop.f32.mrf.mxu0  ;;  %v3567_v28 = vld [vmem:[#allocation9 + $0x358] sm:$0xff] }
 0x262   : > { %2566 = vst [vmem:[#allocation2 + $0x31] sm:$0xff] %v2534_v4  ;;  %v2537_v43 = vmax.f32 %v6626_v41, 0.0  ;;  %v6631_v56 = vadd.f32 %v2393_v15, %v6498_v7 }
 0x263   : > { %v5131_v16 = vpop.f32.mrf.mxu0  ;;  %v6694_v15 = vld [vmem:[#allocation2 + $0x22] sm:$0xff] }
 0x264   : > { %2569 = vst [vmem:[#allocation2 + $0x51] sm:$0xff] %v2537_v43  ;;  %v2536_v25 = vmax.f32 %v6631_v56, 0.0  ;;  %v6637_v36 = vadd.f32 %v5131_v16, %v6510_v14  ;;  %v3570_v14 = vld [vmem:[#allocation9 + $0x370] sm:$0xff] }
 0x265   : > { %v2403_v47 = vpop.f32.mrf.mxu0  ;;  %v2788_v21 = vld [vmem:[#allocation2 + $0x18] sm:$0xff]  ;;  %v2789_v53 = vld [vmem:[#allocation2 + $0x20] sm:$0xff] }
 0x266   : > { %2568 = vst [vmem:[#allocation2 + $0x49] sm:$0xff] %v2536_v25  ;;  %v2539_v39 = vmax.f32 %v6637_v36, 0.0  ;;  %v6643_v7 = vadd.f32 %v2403_v47, %v6506_v12  ;;  %3900 = vmatprep.mubr.f32.mxu0 %v2788_v21  ;;  %3686 = vmatmul.mubr.f32.gmra.mxu1 %v2788_v21  ;;  %v6671_v59 = vld [vmem:[#allocation2 + $0x1a] sm:$0xff] }
 0x267   : > { %v5134_v27 = vpop.f32.mrf.mxu0  ;;  %3901 = vmatmul.mubr.f32.vlgmr.msra.gmra.mxu0 %v2724_v5  ;;  %3690 = vmatprep.mubr.f32.mxu1 %v2533_v38 }
 0x268   : > { %2571 = vst [vmem:[#allocation2 + $0x69] sm:$0xff] %v2539_v39  ;;  %v2538_v3 = vmax.f32 %v6643_v7, 0.0  ;;  %v6649_v9 = vadd.f32 %v5134_v27, %v6518_v46  ;;  %3905 = vmatprep.mubr.f32.mxu0 %v2789_v53  ;;  %4287 = vmatpush1.msra.mxu0 %v3571_v31  ;;  %v3565_v31 = vld [vmem:[#allocation9 + $0x348] sm:$0xff] }
 0x269   : > { %v2413_v12 = vpop.f32.mrf.mxu0  ;;  %4288 = vmatprep.subr.mxu0 %v6581_v50  ;;  %v2790_v46 = vld [vmem:[#allocation2 + $0x30] sm:$0xff]  ;;  %v6677_v1 = vld [vmem:[#allocation2 + $0x38] sm:$0xff] }
 0x26a   : > { %2570 = vst [vmem:[#allocation2 + $0x61] sm:$0xff] %v2538_v3  ;;  %v2541_v34 = vmax.f32 %v6649_v9, 0.0  ;;  %v6656_v6 = vadd.f32 %v2413_v12, %v6514_v40  ;;  %3691 = vmatmul.mubr.f32.gmra.mxu1 %v2789_v53  ;;  %4289 = vmatpush1.msra.mxu0 %v3570_v14  ;;  %v6716_v27 = vld [vmem:[#allocation2 + $0x32] sm:$0xff] }
 0x26b   : > { %v5137_v24 = vpop.f32.mrf.mxu0  ;;  %3906 = vmatmul.mubr.f32.gmra.mxu0 %v2725_v55  ;;  %3695 = vmatprep.mubr.f32.mxu1 %v2534_v4  ;;  %v3564_v14 = vld [vmem:[#allocation9 + $0x340] sm:$0xff] }
 0x26c   : > { %2573 = vst [vmem:[#allocation2 + $0x81] sm:$0xff] %v2541_v34  ;;  %v2540_v26 = vmax.f32 %v6656_v6, 0.0  ;;  %v6662_v38 = vadd.f32 %v5137_v24, %v6526_v57  ;;  %3910 = vmatprep.mubr.f32.mxu0 %v2790_v46  ;;  %4290 = vmatprep.subr.mxu0 %v6581_v50 }
 0x26d   : > { %v2423_v40 = vpop.f32.mrf.mxu0  ;;  %4291 = vmatpush1.msra.mxu0 %v3569_v62  ;;  %v6699_v5 = vld [vmem:[#allocation2 + $0x48] sm:$0xff]  ;;  %v6722_v53 = vld [vmem:[#allocation2 + $0x50] sm:$0xff]  ;;  %v6739_v62 = vld [vmem:[#allocation2 + $0x3a] sm:$0xff] }
 0x26e   : > { %2572 = vst [vmem:[#allocation2 + $0x79] sm:$0xff] %v2540_v26  ;;  %v2543_v17 = vmax.f32 %v6662_v38, 0.0  ;;  %v6669_v52 = vadd.f32 %v2423_v40, %v6522_v11  ;;  %3696 = vmatmul.mubr.f32.gmra.mxu1 %v2790_v46  ;;  %4292 = vmatprep.subr.mxu0 %v6581_v50 }
 0x26f   : > { %v5140_v57 = vpop.f32.mrf.mxu0  ;;  %3911 = vmatmul.mubr.f32.gmra.mxu0 %v6671_v59  ;;  %3700 = vmatprep.mubr.f32.mxu1 %v2535_v13 }
 0x270   : > { %2575 = vst [vmem:[#allocation2 + $0x99] sm:$0xff] %v2543_v17  ;;  %v2542_v11 = vmax.f32 %v6669_v52, 0.0  ;;  %v6683_v2 = vadd.f32 %v5140_v57, %v6534_v61  ;;  %3915 = vmatprep.mubr.f32.mxu0 %v6677_v1  ;;  %4293 = vmatpush1.msra.mxu0 %v3568_v20  ;;  %v3566_v61 = vld [vmem:[#allocation9 + $0x350] sm:$0xff]  ;;  %v2079_v52 = vadd.f32 %v6608_v58, %v6469_v23  ;;  %v3587_v58 = vld [vmem:[#allocation9 + $0x3f8] sm:$0xff] }
 0x271   : > { %v2433_v4 = vpop.f32.mrf.mxu0  ;;  %4294 = vmatprep.subr.mxu0 %v6581_v50  ;;  %v6744_v46 = vld [vmem:[#allocation2 + $0x60] sm:$0xff] }
 0x272   : > { %2574 = vst [vmem:[#allocation2 + $0x91] sm:$0xff] %v2542_v11  ;;  %v2545_v8 = vmax.f32 %v6683_v2, 0.0  ;;  %v6691_v13 = vadd.f32 %v2433_v4, %v6530_v0  ;;  %3701 = vmatmul.mubr.f32.gmra.mxu1 %v6677_v1  ;;  %4295 = vmatpush1.msra.mxu0 %v3567_v28  ;;  %v3562_v57 = vld [vmem:[#allocation9 + $0x330] sm:$0xff]  ;;  %v6761_v28 = vld [vmem:[#allocation2 + $0x4a] sm:$0xff]  ;;  %v2304_v38 = vadd.f32 %v6610_v49, %v2079_v52 }
 0x273   : > { %v5143_v16 = vpop.f32.mrf.mxu0  ;;  %3916 = vmatmul.mubr.f32.gmra.mxu0 %v6694_v15  ;;  %3705 = vmatprep.mubr.f32.mxu1 %v2536_v25  ;;  %v6767_v4 = vld [vmem:[#allocation2 + $0x68] sm:$0xff] }
 0x274   : > { %2577 = vst [vmem:[#allocation2 + $0xb1] sm:$0xff] %v2545_v8  ;;  %v2544_v0 = vmax.f32 %v6691_v13, 0.0  ;;  %v6705_v47 = vadd.f32 %v5143_v16, %v6542_v63  ;;  %3920 = vmatprep.mubr.f32.mxu0 %v6699_v5  ;;  %4296 = vmatprep.subr.mxu0 %v6581_v50 }
 0x275   : > { %v2443_v21 = vpop.f32.mrf.mxu0  ;;  %4297 = vmatpush1.msra.mxu0 %v3566_v61  ;;  %v3561_v61 = vld [vmem:[#allocation9 + $0x328] sm:$0xff] }
 0x276   : > { %2576 = vst [vmem:[#allocation2 + $0xa9] sm:$0xff] %v2544_v0  ;;  %v2547_v56 = vmax.f32 %v6705_v47, 0.0  ;;  %v6713_v25 = vadd.f32 %v2443_v21, %v6538_v29  ;;  %3706 = vmatmul.mubr.f32.gmra.mxu1 %v6699_v5  ;;  %4298 = vmatprep.subr.mxu0 %v6581_v50 }
 0x277   : > { %v5146_v63 = vpop.f32.mrf.mxu0  ;;  %3921 = vmatmul.mubr.f32.gmra.mxu0 %v6716_v27  ;;  %3710 = vmatprep.mubr.f32.mxu1 %v2537_v43 }
 0x278   : > { %2579 = vst [vmem:[#allocation2 + $0xc9] sm:$0xff] %v2547_v56  ;;  %v2546_v29 = vmax.f32 %v6713_v25, 0.0  ;;  %v6728_v55 = vadd.f32 %v5146_v63, %v6551_v48  ;;  %3925 = vmatprep.mubr.f32.mxu0 %v6722_v53  ;;  %4299 = vmatpush1.msra.mxu0 %v3565_v31  ;;  %v3563_v48 = vld [vmem:[#allocation9 + $0x338] sm:$0xff]  ;;  %v6784_v31 = vld [vmem:[#allocation2 + $0x52] sm:$0xff] }
 0x279   : > { %v2453_v12 = vpop.f32.mrf.mxu0  ;;  %4300 = vmatprep.subr.mxu0 %v6581_v50  ;;  %v6859_v23 = vld [vmem:[#allocation2 + $0x98] sm:$0xff] }
 0x27a   : > { %2578 = vst [vmem:[#allocation2 + $0xc1] sm:$0xff] %v2546_v29  ;;  %v2549_v41 = vmax.f32 %v6728_v55, 0.0  ;;  %v6736_v43 = vadd.f32 %v2453_v12, %v6546_v44  ;;  %3711 = vmatmul.mubr.f32.gmra.mxu1 %v6722_v53  ;;  %4301 = vmatpush1.msra.mxu0 %v3564_v14  ;;  %v6789_v14 = vld [vmem:[#allocation2 + $0x78] sm:$0xff] }
 0x27b   : > { %v5149_v24 = vpop.f32.mrf.mxu0  ;;  %3926 = vmatmul.mubr.f32.gmra.mxu0 %v6739_v62  ;;  %3715 = vmatprep.mubr.f32.mxu1 %v2538_v3 }
 0x27c   : > { %2581 = vst [vmem:[#allocation2 + $0xe1] sm:$0xff] %v2549_v41  ;;  %v2548_v44 = vmax.f32 %v6736_v43, 0.0  ;;  %v6750_v40 = vadd.f32 %v5149_v24, %v6559_v37  ;;  %3930 = vmatprep.mubr.f32.mxu0 %v6744_v46  ;;  %4302 = vmatprep.subr.mxu0 %v6581_v50  ;;  %v3559_v24 = vld [vmem:[#allocation9 + $0x318] sm:$0xff] }
 0x27d   : > { %v2463_v20 = vpop.f32.mrf.mxu0  ;;  %4303 = vmatpush1.msra.mxu0 %v3563_v48  ;;  %v6882_v49 = vld [vmem:[#allocation2 + $0xa8] sm:$0xff] }
 0x27e   : > { %2580 = vst [vmem:[#allocation2 + $0xd9] sm:$0xff] %v2548_v44  ;;  %v2551_v7 = vmax.f32 %v6750_v40, 0.0  ;;  %v6758_v3 = vadd.f32 %v2463_v20, %v6555_v54  ;;  %3716 = vmatmul.mubr.f32.gmra.mxu1 %v6744_v46  ;;  %4304 = vmatprep.subr.mxu0 %v6581_v50  ;;  %v6806_v20 = vld [vmem:[#allocation2 + $0x62] sm:$0xff] }
 0x27f   : > { %v5152_v37 = vpop.f32.mrf.mxu0  ;;  %3931 = vmatmul.mubr.f32.gmra.mxu0 %v6761_v28  ;;  %3720 = vmatprep.mubr.f32.mxu1 %v2539_v39 }
 0x280   : > { %2583 = vst [vmem:[#allocation2 + $0xf9] sm:$0xff] %v2551_v7  ;;  %v2550_v54 = vmax.f32 %v6758_v3, 0.0  ;;  %v6773_v16 = vadd.f32 %v5152_v37, %v6567_v42  ;;  %3935 = vmatprep.mubr.f32.mxu0 %v6767_v4  ;;  %4305 = vmatpush1.msra.mxu0 %v3562_v57  ;;  %v3560_v42 = vld [vmem:[#allocation9 + $0x320] sm:$0xff]  ;;  %v6812_v57 = vld [vmem:[#allocation2 + $0x80] sm:$0xff] }
 0x281   : > { %v2473_v21 = vpop.f32.mrf.mxu0  ;;  %4306 = vmatprep.subr.mxu0 %v6581_v50  ;;  %v3558_v37 = vld [vmem:[#allocation9 + $0x310] sm:$0xff]  ;;  %v6922_v25 = vld [vmem:[#allocation2 + $0xc8] sm:$0xff] }
 0x282   : > { %2582 = vst [vmem:[#allocation2 + $0xf1] sm:$0xff] %v2550_v54  ;;  %v2553_v36 = vmax.f32 %v6773_v16, 0.0  ;;  %v6781_v39 = vadd.f32 %v2473_v21, %v6563_v60  ;;  %3721 = vmatmul.mubr.f32.gmra.mxu1 %v6767_v4  ;;  %4307 = vmatpush1.msra.mxu0 %v3561_v61  ;;  %v6909_v2 = vld [vmem:[#allocation2 + $0xc0] sm:$0xff] }
 0x283   : > { %v5155_v63 = vpop.f32.mrf.mxu0  ;;  %3936 = vmatmul.mubr.f32.gmra.mxu0 %v6784_v31  ;;  %3725 = vmatprep.mubr.f32.mxu1 %v2540_v26 }
 0x284   : > { %2585 = vst [vmem:[#allocation2 + $0x111] sm:$0xff] %v2553_v36  ;;  %v2552_v60 = vmax.f32 %v6781_v39, 0.0  ;;  %v6795_v12 = vadd.f32 %v5155_v63, %v6575_v45  ;;  %3940 = vmatprep.mubr.f32.mxu0 %v6789_v14  ;;  %4308 = vmatprep.subr.mxu0 %v6581_v50 }
 0x285   : > { %v2483_v48 = vpop.f32.mrf.mxu0  ;;  %4309 = vmatpush1.msra.mxu0 %v3560_v42  ;;  %v6829_v42 = vld [vmem:[#allocation2 + $0x6a] sm:$0xff]  ;;  %v6934_v47 = vld [vmem:[#allocation2 + $0xd8] sm:$0xff]  ;;  %v6945_v43 = vld [vmem:[#allocation2 + $0xe0] sm:$0xff] }
 0x286   : > { %2584 = vst [vmem:[#allocation2 + $0x109] sm:$0xff] %v2552_v60  ;;  %v2555_v6 = vmax.f32 %v6795_v12, 0.0  ;;  %v6803_v26 = vadd.f32 %v2483_v48, %v6571_v22  ;;  %3726 = vmatmul.mubr.f32.gmra.mxu1 %v6789_v14  ;;  %4310 = vmatprep.subr.mxu0 %v6581_v50  ;;  %v6834_v48 = vld [vmem:[#allocation2 + $0x90] sm:$0xff] }
 0x287   : > { %v5158_v45 = vpop.f32.mrf.mxu0  ;;  %3941 = vmatmul.mubr.f32.gmra.mxu0 %v6806_v20  ;;  %3730 = vmatprep.mubr.f32.mxu1 %v2541_v34 }
 0x288   : > { %2587 = vst [vmem:[#allocation2 + $0x129] sm:$0xff] %v2555_v6  ;;  %v2554_v22 = vmax.f32 %v6803_v26, 0.0  ;;  %v6818_v61 = vadd.f32 %v5158_v45, %v6585_v18  ;;  %3945 = vmatprep.mubr.f32.mxu0 %v6812_v57  ;;  %4311 = vmatpush1.msra.mxu0 %v3559_v24  ;;  %v3557_v18 = vld [vmem:[#allocation9 + $0x308] sm:$0xff] }
 0x289   : > { %v2493_v21 = vpop.f32.mrf.mxu0  ;;  %4312 = vmatprep.subr.mxu0 %v6581_v50  ;;  %v6955_v55 = vld [vmem:[#allocation2 + $0xf0] sm:$0xff]  ;;  %v6966_v3 = vld [vmem:[#allocation2 + $0xf8] sm:$0xff] }
 0x28a   : > { %2586 = vst [vmem:[#allocation2 + $0x121] sm:$0xff] %v2554_v22  ;;  %v2557_v9 = vmax.f32 %v6818_v61, 0.0  ;;  %v6826_v34 = vadd.f32 %v2493_v21, %v6579_v32  ;;  %3731 = vmatmul.mubr.f32.gmra.mxu1 %v6812_v57  ;;  %4313 = vmatpush1.msra.mxu0 %v3558_v37  ;;  %v3556_v37 = vld [vmem:[#allocation9 + $0x300] sm:$0xff] }
 0x28b   : > { %v5161_v63 = vpop.f32.mrf.mxu0  ;;  %3946 = vmatmul.mubr.f32.gmra.mxu0 %v6829_v42  ;;  %3735 = vmatprep.mubr.f32.mxu1 %v2542_v11  ;;  %v7010_v26 = vld [vmem:[#allocation2 + $0x112] sm:$0xff] }
 0x28c   : > { %2589 = vst [vmem:[#allocation2 + $0x141] sm:$0xff] %v2557_v9  ;;  %v2556_v32 = vmax.f32 %v6826_v34, 0.0  ;;  %v6840_v24 = vadd.f32 %v5161_v63, %v6593_v35  ;;  %3950 = vmatprep.mubr.f32.mxu0 %v6834_v48  ;;  %4314 = vmatprep.subr.mxu0 %v6581_v50  ;;  %v6853_v35 = vld [vmem:[#allocation2 + $0x7a] sm:$0xff] }
 0x28d   : > { %v2503_v45 = vpop.f32.mrf.mxu0  ;;  %4315 = vmatpush1.msra.mxu0 %v3557_v18  ;;  %v6976_v40 = vld [vmem:[#allocation2 + $0x108] sm:$0xff]  ;;  %v6987_v39 = vld [vmem:[#allocation2 + $0x110] sm:$0xff] }
 0x28e   : > { %2588 = vst [vmem:[#allocation2 + $0x139] sm:$0xff] %v2556_v32  ;;  %v7527_v11 = vmax.f32 %v6840_v24, 0.0  ;;  %v6850_v21 = vadd.f32 %v2503_v45, %v6589_v10  ;;  %3736 = vmatmul.mubr.f32.gmra.mxu1 %v6834_v48  ;;  %4316 = vmatprep.subr.mxu0 %v6581_v50 }
 0x28f   : > { %v5164_v63 = vpop.f32.mrf.mxu0  ;;  %3951 = vmatmul.mubr.f32.gmra.mxu0 %v6853_v35  ;;  %3740 = vmatprep.mubr.f32.mxu1 %v2543_v17  ;;  %v7028_v34 = vld [vmem:[#allocation2 + $0x12a] sm:$0xff] }
 0x290   : > { %2591 = vst [vmem:[#allocation2 + $0x159] sm:$0xff] %v7527_v11  ;;  %v7528_v10 = vmax.f32 %v6850_v21, 0.0  ;;  %v6865_v18 = vadd.f32 %v5164_v63, %v6601_v51  ;;  %3955 = vmatprep.mubr.f32.mxu0 %v6859_v23  ;;  %4317 = vmatpush1.msra.mxu0 %v3556_v37  ;;  %v6877_v51 = vld [vmem:[#allocation2 + $0x82] sm:$0xff] }
 0x291   : > { %v2513_v45 = vpop.f32.mrf.mxu0  ;;  %4318 = vmatprep.subr.mxu0 %v6581_v50  ;;  %v3586_v63 = vld [vmem:[#allocation9 + $0x3f0] sm:$0xff] }
 0x292   : > { %2590 = vst [vmem:[#allocation2 + $0x151] sm:$0xff] %v7528_v10  ;;  %v2561_v17 = vmax.f32 %v6865_v18, 0.0  ;;  %v6874_v11 = vadd.f32 %v2513_v45, %v6597_v19  ;;  %3741 = vmatmul.mubr.f32.gmra.mxu1 %v6859_v23  ;;  %4319 = vmatpush2.msra.mxu0 %v3587_v58  ;;  %v3585_v45 = vld [vmem:[#allocation9 + $0x3e8] sm:$0xff]  ;;  %v6997_v16 = vld [vmem:[#allocation2 + $0x120] sm:$0xff] }
 0x293   : > { %v5167_v37 = vpop.f32.mrf.mxu0  ;;  %3956 = vmatmul.mubr.f32.gmra.mxu0 %v6877_v51  ;;  %3745 = vmatprep.mubr.f32.mxu1 %v2544_v0  ;;  %v6893_v10 = vld [vmem:[#allocation2 + $0x92] sm:$0xff]  ;;  %v7019_v12 = vld [vmem:[#allocation2 + $0x122] sm:$0xff] }
 0x294   : > { %2593 = vst [vmem:[#allocation2 + $0x171] sm:$0xff] %v2561_v17  ;;  %v2560_v19 = vmax.f32 %v6874_v11, 0.0  ;;  %v2529_v52 = vadd.f32 %v5167_v37, %v2304_v38  ;;  %3960 = vmatprep.mubr.f32.mxu0 %v6882_v49  ;;  %4320 = vmatprep.subr.mxu0 %v6581_v50  ;;  %v6899_v38 = vld [vmem:[#allocation2 + $0xb0] sm:$0xff]  ;;  %v3602_v18 = vld [vmem:[#allocation9 + $0x470] sm:$0xff] }
 0x295   : > { %v2523_v58 = vpop.f32.mrf.mxu0  ;;  %4321 = vmatpush2.msra.mxu0 %v3586_v63  ;;  %v3584_v63 = vld [vmem:[#allocation9 + $0x3e0] sm:$0xff]  ;;  %v7037_v61 = vld [vmem:[#allocation2 + $0x13a] sm:$0xff] }
 0x296   : > { %2592 = vst [vmem:[#allocation2 + $0x169] sm:$0xff] %v2560_v19  ;;  %v2563_v13 = vmax.f32 %v2529_v52, 0.0  ;;  %v2524_v0 = vadd.f32 %v2523_v58, %v6605_v30  ;;  %3746 = vmatmul.mubr.f32.gmra.mxu1 %v6882_v49  ;;  %4322 = vmatprep.subr.mxu0 %v6581_v50  ;;  %v6904_v30 = vld [vmem:[#allocation2 + $0x9a] sm:$0xff]  ;;  %v3583_v52 = vld [vmem:[#allocation9 + $0x3d8] sm:$0xff] }
 0x297   : > { %3961 = vmatmul.mubr.f32.gmra.mxu0 %v6893_v10  ;;  %3750 = vmatprep.mubr.f32.mxu1 %v2545_v8  ;;  %v6913_v8 = vpop.f32.mrf.mxu1  ;;  %v3582_v58 = vld [vmem:[#allocation9 + $0x3d0] sm:$0xff] }
 0x298   : > { %2595 = vst [vmem:[#allocation2 + $0x189] sm:$0xff] %v2563_v13  ;;  %v2562_v37 = vmax.f32 %v2524_v0, 0.0  ;;  %3965 = vmatprep.mubr.f32.mxu0 %v6899_v38  ;;  %4323 = vmatpush2.msra.mxu0 %v3585_v45  ;;  %v6916_v45 = vld [vmem:[#allocation2 + $0xaa] sm:$0xff]  ;;  %v7064_v11 = vld [vmem:[#allocation2 + $0x15a] sm:$0xff] }
 0x299   : > { %4324 = vmatprep.subr.mxu0 %v6581_v50  ;;  %v3679_v13 = vpop.f32.mrf.mxu1 }
 0x29a   : > { %2594 = vst [vmem:[#allocation2 + $0x181] sm:$0xff] %v2562_v37  ;;  %3751 = vmatmul.mubr.f32.gmra.mxu1 %v6899_v38  ;;  %4325 = vmatpush2.msra.mxu0 %v3584_v63  ;;  %v6929_v63 = vld [vmem:[#allocation2 + $0xb2] sm:$0xff]  ;;  %v6950_v13 = vld [vmem:[#allocation2 + $0xca] sm:$0xff] }
 0x29b   : > { %3966 = vmatmul.mubr.f32.gmra.mxu0 %v6904_v30  ;;  %3755 = vmatprep.mubr.f32.mxu1 %v2546_v29  ;;  %v3581_v29 = vld [vmem:[#allocation9 + $0x3c8] sm:$0xff]  ;;  %v6925_v0 = vpop.f32.mrf.mxu1  ;;  %v3580_v37 = vld [vmem:[#allocation9 + $0x3c0] sm:$0xff] }
 0x29c   : > { %3970 = vmatprep.mubr.f32.mxu0 %v6909_v2  ;;  %4326 = vmatprep.subr.mxu0 %v6581_v50 }
 0x29d   : > { %4327 = vmatpush2.msra.mxu0 %v3583_v52  ;;  %v3684_v52 = vpop.f32.mrf.mxu1 }
 0x29e   : > { %3756 = vmatmul.mubr.f32.gmra.mxu1 %v6909_v2  ;;  %4328 = vmatprep.subr.mxu0 %v6581_v50  ;;  %v6971_v52 = vld [vmem:[#allocation2 + $0xe2] sm:$0xff] }
 0x29f   : > { %3971 = vmatmul.mubr.f32.gmra.mxu0 %v6916_v45  ;;  %3760 = vmatprep.mubr.f32.mxu1 %v2547_v56  ;;  %v3579_v56 = vld [vmem:[#allocation9 + $0x3b8] sm:$0xff] }
 0x2a0   : > { %3975 = vmatprep.mubr.f32.mxu0 %v6922_v25  ;;  %4329 = vmatpush2.msra.mxu0 %v3582_v58  ;;  %v6939_v58 = vld [vmem:[#allocation2 + $0xc2] sm:$0xff] }
 0x2a1   : > { %4330 = vmatprep.subr.mxu0 %v6581_v50 }
 0x2a2   : > { %3761 = vmatmul.mubr.f32.gmra.mxu1 %v6922_v25  ;;  %4331 = vmatpush2.msra.mxu0 %v3581_v29  ;;  %v3577_v29 = vld [vmem:[#allocation9 + $0x3a8] sm:$0xff] }
 0x2a3   : > { %3976 = vmatmul.mubr.f32.gmra.mxu0 %v6929_v63  ;;  %3765 = vmatprep.mubr.f32.mxu1 %v2548_v44  ;;  %v3578_v44 = vld [vmem:[#allocation9 + $0x3b0] sm:$0xff] }
 0x2a4   : > { %3980 = vmatprep.mubr.f32.mxu0 %v6934_v47  ;;  %4332 = vmatprep.subr.mxu0 %v6581_v50 }
 0x2a5   : > { %4333 = vmatpush2.msra.mxu0 %v3580_v37  ;;  %v6960_v37 = vld [vmem:[#allocation2 + $0xda] sm:$0xff] }
 0x2a6   : > { %3766 = vmatmul.mubr.f32.gmra.mxu1 %v6934_v47  ;;  %4334 = vmatprep.subr.mxu0 %v6581_v50 }
 0x2a7   : > { %3981 = vmatmul.mubr.f32.gmra.mxu0 %v6939_v58  ;;  %3770 = vmatprep.mubr.f32.mxu1 %v2549_v41  ;;  %v3576_v41 = vld [vmem:[#allocation9 + $0x3a0] sm:$0xff] }
 0x2a8   : > { %3985 = vmatprep.mubr.f32.mxu0 %v6945_v43  ;;  %4335 = vmatpush2.msra.mxu0 %v3579_v56  ;;  %v3574_v56 = vld [vmem:[#allocation9 + $0x390] sm:$0xff] }
 0x2a9   : > { %4336 = vmatprep.subr.mxu0 %v6581_v50 }
 0x2aa   : > { %3771 = vmatmul.mubr.f32.gmra.mxu1 %v6945_v43  ;;  %4337 = vmatpush2.msra.mxu0 %v3578_v44  ;;  %v6981_v44 = vld [vmem:[#allocation2 + $0xf2] sm:$0xff] }
 0x2ab   : > { %3986 = vmatmul.mubr.f32.gmra.mxu0 %v6950_v13  ;;  %3775 = vmatprep.mubr.f32.mxu1 %v2550_v54  ;;  %v3575_v54 = vld [vmem:[#allocation9 + $0x398] sm:$0xff] }
 0x2ac   : > { %3990 = vmatprep.mubr.f32.mxu0 %v6955_v55  ;;  %4338 = vmatprep.subr.mxu0 %v6581_v50 }
 0x2ad   : > { %4339 = vmatpush2.msra.mxu0 %v3577_v29  ;;  %v6992_v29 = vld [vmem:[#allocation2 + $0xfa] sm:$0xff] }
 0x2ae   : > { %3776 = vmatmul.mubr.f32.gmra.mxu1 %v6955_v55  ;;  %4340 = vmatprep.subr.mxu0 %v6581_v50 }
 0x2af   : > { %3991 = vmatmul.mubr.f32.gmra.mxu0 %v6960_v37  ;;  %3780 = vmatprep.mubr.f32.mxu1 %v2551_v7  ;;  %v3573_v7 = vld [vmem:[#allocation9 + $0x388] sm:$0xff] }
 0x2b0   : > { %3995 = vmatprep.mubr.f32.mxu0 %v6966_v3  ;;  %4341 = vmatpush2.msra.mxu0 %v3576_v41  ;;  %v7033_v41 = vld [vmem:[#allocation2 + $0x150] sm:$0xff] }
 0x2b1   : > { %4342 = vmatprep.subr.mxu0 %v6581_v50 }
 0x2b2   : > { %3781 = vmatmul.mubr.f32.gmra.mxu1 %v6966_v3  ;;  %4343 = vmatpush2.msra.mxu0 %v3575_v54  ;;  %v7042_v54 = vld [vmem:[#allocation2 + $0x158] sm:$0xff] }
 0x2b3   : > { %3996 = vmatmul.mubr.f32.gmra.mxu0 %v6971_v52  ;;  %3785 = vmatprep.mubr.f32.mxu1 %v2552_v60  ;;  %v3572_v60 = vld [vmem:[#allocation9 + $0x380] sm:$0xff] }
 0x2b4   : > { %4000 = vmatprep.mubr.f32.mxu0 %v6976_v40  ;;  %4344 = vmatprep.subr.mxu0 %v6581_v50 }
 0x2b5   : > { %4345 = vmatpush2.msra.mxu0 %v3574_v56  ;;  %v7051_v56 = vld [vmem:[#allocation2 + $0x168] sm:$0xff] }
 0x2b6   : > { %3786 = vmatmul.mubr.f32.gmra.mxu1 %v6976_v40  ;;  %4346 = vmatprep.subr.mxu0 %v6581_v50 }
 0x2b7   : > { %4001 = vmatmul.mubr.f32.gmra.mxu0 %v6981_v44  ;;  %3790 = vmatprep.mubr.f32.mxu1 %v2553_v36  ;;  %v7001_v36 = vld [vmem:[#allocation2 + $0x10a] sm:$0xff] }
 0x2b8   : > { %4005 = vmatprep.mubr.f32.mxu0 %v6987_v39  ;;  %4347 = vmatpush2.msra.mxu0 %v3573_v7  ;;  %v7060_v7 = vld [vmem:[#allocation2 + $0x170] sm:$0xff] }
 0x2b9   : > { %4348 = vmatprep.subr.mxu0 %v6581_v50  ;;  %v7006_v50 = vld [vmem:[#allocation2 + $0x128] sm:$0xff]  ;;  %7554 = vst [vmem:[#allocation14_spill] sm:$0xff] %v7060_v7 }
 0x2ba   : > { %3791 = vmatmul.mubr.f32.gmra.mxu1 %v6987_v39  ;;  %4349 = vmatpush2.msra.mxu0 %v3572_v60  ;;  %v2852_v60 = vld [vmem:[#allocation2 + $0x19] sm:$0xff] }
 0x2bb   : > { %4006 = vmatmul.mubr.f32.gmra.mxu0 %v6992_v29  ;;  %3795 = vmatprep.mubr.f32.mxu1 %v2554_v22  ;;  %v7015_v22 = vld [vmem:[#allocation2 + $0x138] sm:$0xff] }
 0x2bc   : > { %4010 = vmatprep.mubr.f32.mxu0 %v6997_v16 }
 0x2be   : > { %3796 = vmatmul.mubr.f32.gmra.mxu1 %v6997_v16 }
 0x2bf   : > { %4011 = vmatmul.mubr.f32.gmra.mxu0 %v7001_v36  ;;  %3800 = vmatprep.mubr.f32.mxu1 %v2555_v6  ;;  %v7024_v6 = vld [vmem:[#allocation2 + $0x140] sm:$0xff] }
 0x2c0   : > { %4015 = vmatprep.mubr.f32.mxu0 %v7006_v50 }
 0x2c2   : > { %3801 = vmatmul.mubr.f32.gmra.mxu1 %v7006_v50 }
 0x2c3   : > { %4016 = vmatmul.mubr.f32.gmra.mxu0 %v7010_v26  ;;  %3805 = vmatprep.mubr.f32.mxu1 %v2556_v32  ;;  %v7552_v32 = vmax.f32 %v6850_v21, 0.0  ;;  %v7046_v21 = vld [vmem:[#allocation2 + $0x142] sm:$0xff] }
 0x2c4   : > { %4020 = vmatprep.mubr.f32.mxu0 %v7015_v22 }
 0x2c6   : > { %3806 = vmatmul.mubr.f32.gmra.mxu1 %v7015_v22 }
 0x2c7   : > { %4021 = vmatmul.mubr.f32.gmra.mxu0 %v7019_v12  ;;  %3810 = vmatprep.mubr.f32.mxu1 %v2557_v9  ;;  %v7553_v9 = vmax.f32 %v6840_v24, 0.0  ;;  %v7055_v24 = vld [vmem:[#allocation2 + $0x152] sm:$0xff] }
 0x2c8   : > { %4025 = vmatprep.mubr.f32.mxu0 %v7024_v6 }
 0x2ca   : > { %3811 = vmatmul.mubr.f32.gmra.mxu1 %v7024_v6 }
 0x2cb   : > { %4026 = vmatmul.mubr.f32.gmra.mxu0 %v7028_v34  ;;  %3815 = vmatprep.mubr.f32.mxu1 %v7552_v32  ;;  %v7071_v32 = vld [vmem:[#allocation2 + $0x16a] sm:$0xff] }
 0x2cc   : > { %4030 = vmatprep.mubr.f32.mxu0 %v7033_v41 }
 0x2ce   : > { %3816 = vmatmul.mubr.f32.gmra.mxu1 %v7033_v41 }
 0x2cf   : > { %4031 = vmatmul.mubr.f32.gmra.mxu0 %v7037_v61  ;;  %3820 = vmatprep.mubr.f32.mxu1 %v7553_v9  ;;  %v2853_v9 = vld [vmem:[#allocation2 + $0x21] sm:$0xff] }
 0x2d0   : > { %4035 = vmatprep.mubr.f32.mxu0 %v7042_v54 }
 0x2d2   : > { %3821 = vmatmul.mubr.f32.gmra.mxu1 %v7042_v54 }
 0x2d3   : > { %4036 = vmatmul.mubr.f32.gmra.mxu0 %v7046_v21  ;;  %3825 = vmatprep.mubr.f32.mxu1 %v2560_v19  ;;  %v7067_v19 = vld [vmem:[#allocation2 + $0x180] sm:$0xff] }
 0x2d4   : > { %4040 = vmatprep.mubr.f32.mxu0 %v7051_v56  ;;  %7555 = vst [vmem:[#allocation15_spill] sm:$0xff] %v7067_v19 }
 0x2d6   : > { %3826 = vmatmul.mubr.f32.gmra.mxu1 %v7051_v56 }
 0x2d7   : > { %4041 = vmatmul.mubr.f32.gmra.mxu0 %v7055_v24  ;;  %3830 = vmatprep.mubr.f32.mxu1 %v2561_v17  ;;  %v7074_v17 = vld [vmem:[#allocation2 + $0x188] sm:$0xff] }
 0x2d8   : > { %4045 = vmatprep.mubr.f32.mxu0 %v7060_v7 }
 0x2da   : > { %3831 = vmatmul.mubr.f32.gmra.mxu1 %v7060_v7  ;;  %v3600_v7 = vld [vmem:[#allocation9 + $0x460] sm:$0xff] }
 0x2db   : > { %4046 = vmatmul.mubr.f32.gmra.mxu0 %v7064_v11  ;;  %4125 = vmatprep.mubr.f32.mxu1 %v6671_v59  ;;  %v7079_v59 = vld [vmem:[#allocation2 + $0x172] sm:$0xff] }
 0x2dc   : > { %4050 = vmatprep.mubr.f32.mxu0 %v7067_v19  ;;  %v3601_v19 = vld [vmem:[#allocation9 + $0x468] sm:$0xff] }
 0x2de   : > { %4126 = vmatmul.mubr.f32.vlgmr.msra.gmra.mxu1 %v2852_v60  ;;  %v3044_v60 = vld [vmem:[#allocation2 + $0x31] sm:$0xff] }
 0x2df   : > { %4051 = vmatmul.mubr.f32.gmra.mxu0 %v7071_v32  ;;  %4130 = vmatprep.mubr.f32.mxu1 %v6694_v15  ;;  %v2980_v15 = vld [vmem:[#allocation2 + $0x30] sm:$0xff] }
 0x2e0   : > { %4055 = vmatprep.mubr.f32.mxu0 %v7074_v17  ;;  %5169 = vmatpush3.msra.mxu1 %v6621_v33  ;;  %v3045_v33 = vld [vmem:[#allocation2 + $0x39] sm:$0xff] }
 0x2e1   : > { %5170 = vmatprep.subr.mxu1 %v3602_v18 }
 0x2e2   : > { %4131 = vmatmul.mubr.f32.gmra.mxu1 %v2853_v9  ;;  %v3599_v9 = vld [vmem:[#allocation9 + $0x458] sm:$0xff] }
 0x2e3   : > { %4056 = vmatmul.mubr.f32.gmra.mxu0 %v7079_v59  ;;  %4135 = vmatprep.mubr.f32.mxu1 %v6716_v27  ;;  %v3046_v27 = vld [vmem:[#allocation2 + $0x49] sm:$0xff] }
 0x2e4   : > { %4350 = vmatprep.mubr.f32.mxu0 %v3044_v60  ;;  %5171 = vmatpush3.msra.mxu1 %v3602_v18  ;;  %v3598_v18 = vld [vmem:[#allocation9 + $0x450] sm:$0xff] }
 0x2e5   : > { %5172 = vmatprep.subr.mxu1 %v3601_v19 }
 0x2e6   : > { %4136 = vmatmul.mubr.f32.gmra.mxu1 %v3044_v60 }
 0x2e7   : > { %4351 = vmatmul.mubr.f32.vlgmr.msra.gmra.mxu0 %v2980_v15  ;;  %4140 = vmatprep.mubr.f32.mxu1 %v6739_v62  ;;  %v3047_v62 = vld [vmem:[#allocation2 + $0x51] sm:$0xff] }
 0x2e8   : > { %4355 = vmatprep.mubr.f32.mxu0 %v3045_v33  ;;  %5173 = vmatpush3.msra.mxu1 %v3601_v19  ;;  %v3597_v19 = vld [vmem:[#allocation9 + $0x448] sm:$0xff] }
 0x2e9   : > { %5174 = vmatprep.subr.mxu1 %v3600_v7 }
 0x2ea   : > { %4141 = vmatmul.mubr.f32.gmra.mxu1 %v3045_v33 }
 0x2eb   : > { %4356 = vmatmul.mubr.f32.gmra.mxu0 %v6677_v1  ;;  %4145 = vmatprep.mubr.f32.mxu1 %v6761_v28  ;;  %v3048_v1 = vld [vmem:[#allocation2 + $0x61] sm:$0xff]  ;;  %v3596_v28 = vld [vmem:[#allocation9 + $0x440] sm:$0xff] }
 0x2ec   : > { %4360 = vmatprep.mubr.f32.mxu0 %v3046_v27  ;;  %5175 = vmatpush3.msra.mxu1 %v3600_v7 }
 0x2ed   : > { %5176 = vmatprep.subr.mxu1 %v3599_v9 }
 0x2ee   : > { %4146 = vmatmul.mubr.f32.gmra.mxu1 %v3046_v27 }
 0x2ef   : > { %4361 = vmatmul.mubr.f32.gmra.mxu0 %v6699_v5  ;;  %4150 = vmatprep.mubr.f32.mxu1 %v6784_v31  ;;  %v3049_v5 = vld [vmem:[#allocation2 + $0x69] sm:$0xff] }
 0x2f0   : > { %4365 = vmatprep.mubr.f32.mxu0 %v3047_v62  ;;  %5177 = vmatpush3.msra.mxu1 %v3599_v9  ;;  %v3595_v31 = vld [vmem:[#allocation9 + $0x438] sm:$0xff] }
 0x2f1   : > { %5178 = vmatprep.subr.mxu1 %v3598_v18 }
 0x2f2   : > { %4151 = vmatmul.mubr.f32.gmra.mxu1 %v3047_v62 }
 0x2f3   : > { %4366 = vmatmul.mubr.f32.gmra.mxu0 %v6722_v53  ;;  %4155 = vmatprep.mubr.f32.mxu1 %v6806_v20  ;;  %v3050_v53 = vld [vmem:[#allocation2 + $0x79] sm:$0xff] }
 0x2f4   : > { %4370 = vmatprep.mubr.f32.mxu0 %v3048_v1  ;;  %5179 = vmatpush3.msra.mxu1 %v3598_v18  ;;  %v3594_v20 = vld [vmem:[#allocation9 + $0x430] sm:$0xff] }
 0x2f5   : > { %5180 = vmatprep.subr.mxu1 %v3597_v19 }
 0x2f6   : > { %4156 = vmatmul.mubr.f32.gmra.mxu1 %v3048_v1 }
 0x2f7   : > { %4371 = vmatmul.mubr.f32.gmra.mxu0 %v6744_v46  ;;  %4160 = vmatprep.mubr.f32.mxu1 %v6829_v42  ;;  %v3051_v46 = vld [vmem:[#allocation2 + $0x81] sm:$0xff]  ;;  %v3593_v42 = vld [vmem:[#allocation9 + $0x428] sm:$0xff] }
 0x2f8   : > { %4375 = vmatprep.mubr.f32.mxu0 %v3049_v5  ;;  %5181 = vmatpush3.msra.mxu1 %v3597_v19 }
 0x2f9   : > { %5182 = vmatprep.subr.mxu1 %v3596_v28 }
 0x2fa   : > { %4161 = vmatmul.mubr.f32.gmra.mxu1 %v3049_v5  ;;  %v3064_v5 = vld [vmem:[#allocation2 + $0x121] sm:$0xff] }
 0x2fb   : > { %4376 = vmatmul.mubr.f32.gmra.mxu0 %v6767_v4  ;;  %4165 = vmatprep.mubr.f32.mxu1 %v6853_v35  ;;  %v3052_v4 = vld [vmem:[#allocation2 + $0x91] sm:$0xff] }
 0x2fc   : > { %4380 = vmatprep.mubr.f32.mxu0 %v3050_v53  ;;  %5183 = vmatpush3.msra.mxu1 %v3596_v28  ;;  %v3592_v35 = vld [vmem:[#allocation9 + $0x420] sm:$0xff] }
 0x2fd   : > { %5184 = vmatprep.subr.mxu1 %v3595_v31 }
 0x2fe   : > { %4166 = vmatmul.mubr.f32.gmra.mxu1 %v3050_v53 }
 0x2ff   : > { %4381 = vmatmul.mubr.f32.gmra.mxu0 %v6789_v14  ;;  %4170 = vmatprep.mubr.f32.mxu1 %v6877_v51  ;;  %v3053_v14 = vld [vmem:[#allocation2 + $0x99] sm:$0xff]  ;;  %v3591_v51 = vld [vmem:[#allocation9 + $0x418] sm:$0xff] }
 0x300   : > { %4385 = vmatprep.mubr.f32.mxu0 %v3051_v46  ;;  %5185 = vmatpush3.msra.mxu1 %v3595_v31 }
 0x301   : > { %5186 = vmatprep.subr.mxu1 %v3594_v20 }
 0x302   : > { %4171 = vmatmul.mubr.f32.gmra.mxu1 %v3051_v46 }
 0x303   : > { %4386 = vmatmul.mubr.f32.gmra.mxu0 %v6812_v57  ;;  %4175 = vmatprep.mubr.f32.mxu1 %v6893_v10  ;;  %v3054_v57 = vld [vmem:[#allocation2 + $0xa9] sm:$0xff]  ;;  %v3590_v10 = vld [vmem:[#allocation9 + $0x410] sm:$0xff] }
 0x304   : > { %4390 = vmatprep.mubr.f32.mxu0 %v3052_v4  ;;  %5187 = vmatpush3.msra.mxu1 %v3594_v20 }
 0x305   : > { %5188 = vmatprep.subr.mxu1 %v3593_v42 }
 0x306   : > { %4176 = vmatmul.mubr.f32.gmra.mxu1 %v3052_v4 }
 0x307   : > { %4391 = vmatmul.mubr.f32.gmra.mxu0 %v6834_v48  ;;  %4180 = vmatprep.mubr.f32.mxu1 %v6904_v30  ;;  %v3055_v48 = vld [vmem:[#allocation2 + $0xb1] sm:$0xff] }
 0x308   : > { %4395 = vmatprep.mubr.f32.mxu0 %v3053_v14  ;;  %5189 = vmatpush3.msra.mxu1 %v3593_v42  ;;  %v3589_v30 = vld [vmem:[#allocation9 + $0x408] sm:$0xff]  ;;  %v3065_v42 = vld [vmem:[#allocation2 + $0x129] sm:$0xff] }
 0x309   : > { %5190 = vmatprep.subr.mxu1 %v3592_v35 }
 0x30a   : > { %4181 = vmatmul.mubr.f32.gmra.mxu1 %v3053_v14 }
 0x30b   : > { %4396 = vmatmul.mubr.f32.gmra.mxu0 %v6859_v23  ;;  %4185 = vmatprep.mubr.f32.mxu1 %v6916_v45  ;;  %v3056_v23 = vld [vmem:[#allocation2 + $0xc1] sm:$0xff]  ;;  %v3588_v45 = vld [vmem:[#allocation9 + $0x400] sm:$0xff] }
 0x30c   : > { %4400 = vmatprep.mubr.f32.mxu0 %v3054_v57  ;;  %5191 = vmatpush3.msra.mxu1 %v3592_v35 }
 0x30d   : > { %5192 = vmatprep.subr.mxu1 %v3591_v51 }
 0x30e   : > { %4186 = vmatmul.mubr.f32.gmra.mxu1 %v3054_v57  ;;  %v3066_v57 = vld [vmem:[#allocation2 + $0x139] sm:$0xff] }
 0x30f   : > { %4401 = vmatmul.mubr.f32.gmra.mxu0 %v6882_v49  ;;  %4190 = vmatprep.mubr.f32.mxu1 %v6929_v63  ;;  %v3057_v49 = vld [vmem:[#allocation2 + $0xc9] sm:$0xff]  ;;  %v7115_v63 = vld [vmem:[%s7515_s4] ss:$0 sm:$0xff] }
 0x310   : > { %4405 = vmatprep.mubr.f32.mxu0 %v3055_v48  ;;  %5193 = vmatpush3.msra.mxu1 %v3591_v51 }
 0x311   : > { %5194 = vmatprep.subr.mxu1 %v3590_v10 }
 0x312   : > { %4191 = vmatmul.mubr.f32.gmra.mxu1 %v3055_v48 }
 0x313   : > { %4406 = vmatmul.mubr.f32.gmra.mxu0 %v6899_v38  ;;  %4195 = vmatprep.mubr.f32.mxu1 %v6939_v58  ;;  %v3058_v38 = vld [vmem:[#allocation2 + $0xd9] sm:$0xff]  ;;  %v3678_v58 = vadd.f32 %v7115_v63, %v6913_v8  ;;  %v3062_v8 = vld [vmem:[#allocation2 + $0x109] sm:$0xff] }
 0x314   : > { %4410 = vmatprep.mubr.f32.mxu0 %v3056_v23  ;;  %5195 = vmatpush3.msra.mxu1 %v3590_v10 }
 0x315   : > { %5196 = vmatprep.subr.mxu1 %v3589_v30 }
 0x316   : > { %4196 = vmatmul.mubr.f32.gmra.mxu1 %v3056_v23 }
 0x317   : > { %4411 = vmatmul.mubr.f32.gmra.mxu0 %v6909_v2  ;;  %4200 = vmatprep.mubr.f32.mxu1 %v6950_v13  ;;  %v3059_v2 = vld [vmem:[#allocation2 + $0xe1] sm:$0xff] }
 0x318   : > { %4415 = vmatprep.mubr.f32.mxu0 %v3057_v49  ;;  %5197 = vmatpush3.msra.mxu1 %v3589_v30 }
 0x319   : > { %5198 = vmatprep.subr.mxu1 %v3588_v45 }
 0x31a   : > { %4201 = vmatmul.mubr.f32.gmra.mxu1 %v3057_v49 }
 0x31b   : > { %4416 = vmatmul.mubr.f32.gmra.mxu0 %v6922_v25  ;;  %4205 = vmatprep.mubr.f32.mxu1 %v6960_v37  ;;  %v3060_v25 = vld [vmem:[#allocation2 + $0xf1] sm:$0xff]  ;;  %v3061_v37 = vld [vmem:[#allocation2 + $0xf9] sm:$0xff] }
 0x31c   : > { %4420 = vmatprep.mubr.f32.mxu0 %v3058_v38  ;;  %5199 = vmatpush3.msra.mxu1 %v3588_v45  ;;  %v3067_v45 = vld [vmem:[#allocation2 + $0x141] sm:$0xff] }
 0x31e   : > { %4206 = vmatmul.mubr.f32.gmra.mxu1 %v3058_v38 }
 0x31f   : > { %4421 = vmatmul.mubr.f32.gmra.mxu0 %v6934_v47  ;;  %4210 = vmatprep.mubr.f32.mxu1 %v6971_v52 }
 0x320   : > { %4425 = vmatprep.mubr.f32.mxu0 %v3059_v2 }
 0x322   : > { %4211 = vmatmul.mubr.f32.gmra.mxu1 %v3059_v2 }
 0x323   : > { %4426 = vmatmul.mubr.f32.gmra.mxu0 %v6945_v43  ;;  %4215 = vmatprep.mubr.f32.mxu1 %v6981_v44  ;;  %v3683_v44 = vadd.f32 %v7115_v63, %v6925_v0  ;;  %v3063_v0 = vld [vmem:[#allocation2 + $0x111] sm:$0xff] }
 0x324   : > { %4430 = vmatprep.mubr.f32.mxu0 %v3060_v25 }
 0x326   : > { %v3687_v47 = vpop.f32.mrf.mxu1  ;;  %4216 = vmatmul.mubr.f32.gmra.mxu1 %v3060_v25 }
 0x327   : > { %v3902_v13 = vpop.f32.mrf.mxu0  ;;  %4431 = vmatmul.mubr.f32.gmra.mxu0 %v6955_v55  ;;  %4220 = vmatprep.mubr.f32.mxu1 %v6992_v29  ;;  %v3688_v9 = vadd.f32 %v7115_v63, %v3687_v47 }
 0x328   : > { %v7123_v52 = vadd.f32 %v3902_v13, %v3678_v58  ;;  %4435 = vmatprep.mubr.f32.mxu0 %v3061_v37  ;;  %v3689_v7 = vpop.f32.mrf.mxu1  ;;  %v3068_v58 = vld [vmem:[#allocation2 + $0x151] sm:$0xff] }
 0x329   : > { %v3904_v43 = vpop.f32.mrf.mxu0 }
 0x32a   : > { %v3692_v60 = vpop.f32.mrf.mxu1  ;;  %4221 = vmatmul.mubr.f32.gmra.mxu1 %v3061_v37  ;;  %v3069_v43 = vld [vmem:[#allocation2 + $0x159] sm:$0xff] }
 0x32b   : > { %v3907_v15 = vpop.f32.mrf.mxu0  ;;  %4436 = vmatmul.mubr.f32.gmra.mxu0 %v6966_v3  ;;  %4225 = vmatprep.mubr.f32.mxu1 %v7001_v36  ;;  %v3693_v19 = vadd.f32 %v7115_v63, %v3692_v60 }
 0x32c   : > { %v7129_v55 = vadd.f32 %v3907_v15, %v3683_v44  ;;  %4440 = vmatprep.mubr.f32.mxu0 %v3062_v8  ;;  %v3694_v29 = vpop.f32.mrf.mxu1 }
 0x32d   : > { %v3909_v33 = vpop.f32.mrf.mxu0  ;;  %v3070_v29 = vld [vmem:[#allocation2 + $0x169] sm:$0xff] }
 0x32e   : > { %v3697_v27 = vpop.f32.mrf.mxu1  ;;  %4226 = vmatmul.mubr.f32.gmra.mxu1 %v3062_v8 }
 0x32f   : > { %v3912_v18 = vpop.f32.mrf.mxu0  ;;  %4441 = vmatmul.mubr.f32.gmra.mxu0 %v6976_v40  ;;  %4230 = vmatprep.mubr.f32.mxu1 %v7010_v26  ;;  %v3698_v53 = vadd.f32 %v7115_v63, %v3697_v27 }
 0x330   : > { %v7134_v62 = vadd.f32 %v3912_v18, %v3688_v9  ;;  %4445 = vmatprep.mubr.f32.mxu0 %v3063_v0  ;;  %v3699_v3 = vpop.f32.mrf.mxu1 }
 0x331   : > { %v3914_v36 = vpop.f32.mrf.mxu0 }
 0x332   : > { %v3702_v1 = vpop.f32.mrf.mxu1  ;;  %4231 = vmatmul.mubr.f32.gmra.mxu1 %v3063_v0  ;;  %v3071_v0 = vld [vmem:[#allocation2 + $0x171] sm:$0xff] }
 0x333   : > { %v3917_v28 = vpop.f32.mrf.mxu0  ;;  %4446 = vmatmul.mubr.f32.gmra.mxu0 %v6987_v39  ;;  %4235 = vmatprep.mubr.f32.mxu1 %v7019_v12  ;;  %v3703_v35 = vadd.f32 %v7115_v63, %v3702_v1  ;;  %v7177_v1 = vld [vmem:[#allocation2 + $0x182] sm:$0xff] }
 0x334   : > { %v7139_v31 = vadd.f32 %v3917_v28, %v3693_v19  ;;  %4450 = vmatprep.mubr.f32.mxu0 %v3064_v5  ;;  %v3704_v40 = vpop.f32.mrf.mxu1 }
 0x335   : > { %v3919_v26 = vpop.f32.mrf.mxu0 }
 0x336   : > { %v3707_v20 = vpop.f32.mrf.mxu1  ;;  %4236 = vmatmul.mubr.f32.gmra.mxu1 %v3064_v5  ;;  %v7556_v5 = vld [vmem:[#allocation14_spill] sm:$0xff] }
 0x337   : > { %v3922_v46 = vpop.f32.mrf.mxu0  ;;  %4451 = vmatmul.mubr.f32.gmra.mxu0 %v6997_v16  ;;  %4240 = vmatprep.mubr.f32.mxu1 %v7028_v34  ;;  %v3708_v48 = vadd.f32 %v7115_v63, %v3707_v20 }
 0x338   : > { %v7144_v4 = vadd.f32 %v3922_v46, %v3698_v53  ;;  %4455 = vmatprep.mubr.f32.mxu0 %v3065_v42  ;;  %v3709_v39 = vpop.f32.mrf.mxu1  ;;  %v7184_v46 = vld [vmem:[#allocation2 + $0x18a] sm:$0xff] }
 0x339   : > { %v3924_v12 = vpop.f32.mrf.mxu0  ;;  %v7557_v39 = vld [vmem:[#allocation15_spill] sm:$0xff] }
 0x33a   : > { %v3712_v14 = vpop.f32.mrf.mxu1  ;;  %4241 = vmatmul.mubr.f32.gmra.mxu1 %v3065_v42  ;;  %v3073_v12 = vld [vmem:[#allocation2 + $0x189] sm:$0xff] }
 0x33b   : > { %v3927_v51 = vpop.f32.mrf.mxu0  ;;  %4456 = vmatmul.mubr.f32.gmra.mxu0 %v7006_v50  ;;  %4245 = vmatprep.mubr.f32.mxu1 %v7037_v61  ;;  %v3713_v38 = vadd.f32 %v7115_v63, %v3712_v14 }
 0x33c   : > { %v7149_v10 = vadd.f32 %v3927_v51, %v3703_v35  ;;  %4460 = vmatprep.mubr.f32.mxu0 %v3066_v57  ;;  %v3714_v16 = vpop.f32.mrf.mxu1 }
 0x33d   : > { %v3929_v34 = vpop.f32.mrf.mxu0 }
 0x33e   : > { %v3717_v30 = vpop.f32.mrf.mxu1  ;;  %4246 = vmatmul.mubr.f32.gmra.mxu1 %v3066_v57  ;;  %v3074_v57 = vld [vmem:[#allocation2 + $0x199] sm:$0xff] }
 0x33f   : > { %v3932_v23 = vpop.f32.mrf.mxu0  ;;  %4461 = vmatmul.mubr.f32.gmra.mxu0 %v7015_v22  ;;  %4250 = vmatprep.mubr.f32.mxu1 %v7046_v21  ;;  %v3718_v13 = vadd.f32 %v7115_v63, %v3717_v30 }
 0x340   : > { %v7154_v49 = vadd.f32 %v3932_v23, %v3708_v48  ;;  %4465 = vmatprep.mubr.f32.mxu0 %v3067_v45  ;;  %v3719_v50 = vpop.f32.mrf.mxu1  ;;  %v3108_v48 = vld [vmem:[#allocation2 + $0x32] sm:$0xff] }
 0x341   : > { %v3934_v61 = vpop.f32.mrf.mxu0 }
 0x342   : > { %v3722_v2 = vpop.f32.mrf.mxu1  ;;  %4251 = vmatmul.mubr.f32.gmra.mxu1 %v3067_v45  ;;  %v3109_v61 = vld [vmem:[#allocation2 + $0x3a] sm:$0xff] }
 0x343   : > { %v3937_v25 = vpop.f32.mrf.mxu0  ;;  %4466 = vmatmul.mubr.f32.gmra.mxu0 %v7024_v6  ;;  %4255 = vmatprep.mubr.f32.mxu1 %v7055_v24  ;;  %v3723_v60 = vadd.f32 %v7115_v63, %v3722_v2 }
 0x344   : > { %v7159_v47 = vadd.f32 %v3937_v25, %v3713_v38  ;;  %4470 = vmatprep.mubr.f32.mxu0 %v3068_v58  ;;  %v3724_v22 = vpop.f32.mrf.mxu1  ;;  %v3075_v38 = vld [vmem:[#allocation2 + $0x1a1] sm:$0xff] }
 0x345   : > { %v3939_v21 = vpop.f32.mrf.mxu0 }
 0x346   : > { %v3727_v37 = vpop.f32.mrf.mxu1  ;;  %4256 = vmatmul.mubr.f32.gmra.mxu1 %v3068_v58  ;;  %v3110_v58 = vld [vmem:[#allocation2 + $0x4a] sm:$0xff]  ;;  %v5355_v21 = vld [vmem:[#allocation2] sm:$0xff] }
 0x347   : > { %v3942_v7 = vpop.f32.mrf.mxu0  ;;  %4471 = vmatmul.mubr.f32.gmra.mxu0 %v7033_v41  ;;  %4260 = vmatprep.mubr.f32.mxu1 %v7064_v11  ;;  %v3728_v9 = vadd.f32 %v7115_v63, %v3727_v37 }
 0x348   : > { %v7164_v44 = vadd.f32 %v3942_v7, %v3718_v13  ;;  %4475 = vmatprep.mubr.f32.mxu0 %v3069_v43  ;;  %v3729_v6 = vpop.f32.mrf.mxu1  ;;  %v3111_v7 = vld [vmem:[#allocation2 + $0x52] sm:$0xff] }
 0x349   : > { %v3944_v24 = vpop.f32.mrf.mxu0 }
 0x34a   : > { %v3732_v15 = vpop.f32.mrf.mxu1  ;;  %4261 = vmatmul.mubr.f32.gmra.mxu1 %v3069_v43  ;;  %v3112_v24 = vld [vmem:[#allocation2 + $0x62] sm:$0xff] }
 0x34b   : > { %v3947_v8 = vpop.f32.mrf.mxu0  ;;  %4476 = vmatmul.mubr.f32.gmra.mxu0 %v7042_v54  ;;  %4265 = vmatprep.mubr.f32.mxu1 %v7071_v32  ;;  %v3733_v36 = vadd.f32 %v7115_v63, %v3732_v15 }
 0x34c   : > { %v7169_v33 = vadd.f32 %v3947_v8, %v3723_v60  ;;  %4480 = vmatprep.mubr.f32.mxu0 %v3070_v29  ;;  %v3734_v41 = vpop.f32.mrf.mxu1 }
 0x34d   : > { %v3949_v11 = vpop.f32.mrf.mxu0  ;;  %v3113_v41 = vld [vmem:[#allocation2 + $0x6a] sm:$0xff] }
 0x34e   : > { %v3737_v27 = vpop.f32.mrf.mxu1  ;;  %4266 = vmatmul.mubr.f32.gmra.mxu1 %v3070_v29 }
 0x34f   : > { %v3952_v18 = vpop.f32.mrf.mxu0  ;;  %4481 = vmatmul.mubr.f32.gmra.mxu0 %v7051_v56  ;;  %4270 = vmatprep.mubr.f32.mxu1 %v7079_v59  ;;  %v3072_v56 = vld [vmem:[#allocation2 + $0x181] sm:$0xff]  ;;  %v3738_v53 = vadd.f32 %v7115_v63, %v3737_v27 }
 0x350   : > { %v7174_v3 = vadd.f32 %v3952_v18, %v3728_v9  ;;  %4485 = vmatprep.mubr.f32.mxu0 %v3071_v0  ;;  %v3739_v54 = vpop.f32.mrf.mxu1  ;;  %v3114_v27 = vld [vmem:[#allocation2 + $0x7a] sm:$0xff] }
 0x351   : > { %v3954_v32 = vpop.f32.mrf.mxu0 }
 0x352   : > { %v3742_v19 = vpop.f32.mrf.mxu1  ;;  %4271 = vmatmul.mubr.f32.gmra.mxu1 %v3071_v0 }
 0x353   : > { %v3957_v28 = vpop.f32.mrf.mxu0  ;;  %4486 = vmatmul.mubr.f32.gmra.mxu0 %v7556_v5  ;;  %4275 = vmatprep.mubr.f32.mxu1 %v7177_v1  ;;  %v3743_v16 = vadd.f32 %v7115_v63, %v3742_v19  ;;  %v3116_v5 = vld [vmem:[#allocation2 + $0x92] sm:$0xff] }
 0x354   : > { %v7181_v40 = vadd.f32 %v3957_v28, %v3733_v36  ;;  %4490 = vmatprep.mubr.f32.mxu0 %v3072_v56  ;;  %v3744_v59 = vpop.f32.mrf.mxu1  ;;  %v3115_v36 = vld [vmem:[#allocation2 + $0x82] sm:$0xff] }
 0x355   : > { %v3959_v26 = vpop.f32.mrf.mxu0 }
 0x356   : > { %v3747_v20 = vpop.f32.mrf.mxu1  ;;  %4276 = vmatmul.mubr.f32.gmra.mxu1 %v3072_v56 }
 0x357   : > { %v3962_v42 = vpop.f32.mrf.mxu0  ;;  %4491 = vmatmul.mubr.f32.gmra.mxu0 %v7557_v39  ;;  %4280 = vmatprep.mubr.f32.mxu1 %v7184_v46  ;;  %v3748_v2 = vadd.f32 %v7115_v63, %v3747_v20  ;;  %v3117_v20 = vld [vmem:[#allocation2 + $0x9a] sm:$0xff] }
 0x358   : > { %v7188_v35 = vadd.f32 %v3962_v42, %v3738_v53  ;;  %4495 = vmatprep.mubr.f32.mxu0 %v3073_v12  ;;  %v3749_v14 = vpop.f32.mrf.mxu1 }
 0x359   : > { %v3964_v51 = vpop.f32.mrf.mxu0 }
 0x35a   : > { %v3752_v34 = vpop.f32.mrf.mxu1  ;;  %4281 = vmatmul.mubr.f32.gmra.mxu1 %v3073_v12  ;;  %v3118_v12 = vld [vmem:[#allocation2 + $0xaa] sm:$0xff] }
 0x35b   : > { %v3967_v30 = vpop.f32.mrf.mxu0  ;;  %4496 = vmatmul.mubr.f32.gmra.mxu0 %v7074_v17  ;;  %5200 = vmatprep.mubr.f32.mxu1 %v3108_v48  ;;  %v3753_v43 = vadd.f32 %v7115_v63, %v3752_v34  ;;  %v3119_v34 = vld [vmem:[#allocation2 + $0xb2] sm:$0xff] }
 0x35c   : > { %v7192_v23 = vadd.f32 %v3967_v30, %v3743_v16  ;;  %v3754_v45 = vpop.f32.mrf.mxu1  ;;  %4500 = vmatprep.mubr.f32.mxu0 %v3074_v57 }
 0x35d   : > { %v3969_v50 = vpop.f32.mrf.mxu0  ;;  %v3120_v45 = vld [vmem:[#allocation2 + $0xc2] sm:$0xff] }
 0x35e   : > { %v3757_v25 = vpop.f32.mrf.mxu1  ;;  %5201 = vmatmul.mubr.f32.vlgmr.msra.gmra.mxu1 %v3109_v61 }
 0x35f   : > { %v3972_v22 = vpop.f32.mrf.mxu0  ;;  %4501 = vmatmul.mubr.f32.gmra.mxu0 %v5355_v21  ;;  %5203 = vmatprep.mubr.f32.mxu1 %v3110_v58  ;;  %v3758_v11 = vadd.f32 %v7115_v63, %v3757_v25  ;;  %v3121_v25 = vld [vmem:[#allocation2 + $0xca] sm:$0xff] }
 0x360   : > { %v7195_v13 = vadd.f32 %v3972_v22, %v3748_v2  ;;  %v3759_v17 = vpop.f32.mrf.mxu1  ;;  %4505 = vmatprep.mubr.f32.mxu0 %v3075_v38 }
 0x361   : > { %v3974_v37 = vpop.f32.mrf.mxu0 }
 0x362   : > { %v3762_v6 = vpop.f32.mrf.mxu1  ;;  %5204 = vmatmul.mubr.f32.gmra.mxu1 %v3111_v7 }
 0x363   : > { %v3977_v60 = vpop.f32.mrf.mxu0  ;;  %4506 = vmatmul.mubr.f32.gmra.mxu0 %v5355_v21  ;;  %5206 = vmatprep.mubr.f32.mxu1 %v3112_v24  ;;  %v3763_v19 = vadd.f32 %v7115_v63, %v3762_v6  ;;  %v3122_v21 = vld [vmem:[#allocation2 + $0xda] sm:$0xff]  ;;  %v3123_v6 = vld [vmem:[#allocation2 + $0xe2] sm:$0xff] }
 0x364   : > { %v7198_v15 = vadd.f32 %v3977_v60, %v3753_v43  ;;  %v3764_v8 = vpop.f32.mrf.mxu1 }
 0x365   : > { %v3979_v29 = vpop.f32.mrf.mxu0  ;;  %v3124_v8 = vld [vmem:[#allocation2 + $0xf2] sm:$0xff] }
 0x366   : > { %v3767_v9 = vpop.f32.mrf.mxu1  ;;  %5207 = vmatmul.mubr.f32.gmra.mxu1 %v3113_v41 }
 0x367   : > { %v3982_v18 = vpop.f32.mrf.mxu0  ;;  %5209 = vmatprep.mubr.f32.mxu1 %v3114_v27  ;;  %v3768_v42 = vadd.f32 %v7115_v63, %v3767_v9  ;;  %v3125_v27 = vld [vmem:[#allocation2 + $0xfa] sm:$0xff] }
 0x368   : > { %v7201_v0 = vadd.f32 %v3982_v18, %v3758_v11  ;;  %v3769_v54 = vpop.f32.mrf.mxu1 }
 0x369   : > { %v3984_v32 = vpop.f32.mrf.mxu0 }
 0x36a   : > { %v3772_v28 = vpop.f32.mrf.mxu1  ;;  %5210 = vmatmul.mubr.f32.gmra.mxu1 %v3115_v36  ;;  %v3126_v32 = vld [vmem:[#allocation2 + $0x10a] sm:$0xff] }
 0x36b   : > { %v3987_v56 = vpop.f32.mrf.mxu0  ;;  %5212 = vmatprep.mubr.f32.mxu1 %v3116_v5  ;;  %v3773_v48 = vadd.f32 %v7115_v63, %v3772_v28 }
 0x36c   : > { %v7204_v59 = vadd.f32 %v3987_v56, %v3763_v19  ;;  %v3774_v26 = vpop.f32.mrf.mxu1  ;;  %v3127_v56 = vld [vmem:[#allocation2 + $0x112] sm:$0xff] }
 0x36d   : > { %v3989_v53 = vpop.f32.mrf.mxu0 }
 0x36e   : > { %v3777_v39 = vpop.f32.mrf.mxu1  ;;  %5213 = vmatmul.mubr.f32.gmra.mxu1 %v3117_v20  ;;  %v3128_v20 = vld [vmem:[#allocation2 + $0x122] sm:$0xff] }
 0x36f   : > { %v3992_v14 = vpop.f32.mrf.mxu0  ;;  %5215 = vmatprep.mubr.f32.mxu1 %v3118_v12  ;;  %v3778_v58 = vadd.f32 %v7115_v63, %v3777_v39 }
 0x370   : > { %v7207_v51 = vadd.f32 %v3992_v14, %v3768_v42  ;;  %v3779_v57 = vpop.f32.mrf.mxu1 }
 0x371   : > { %v3994_v16 = vpop.f32.mrf.mxu0  ;;  %v3129_v57 = vld [vmem:[#allocation2 + $0x12a] sm:$0xff] }
 0x372   : > { %v3782_v30 = vpop.f32.mrf.mxu1  ;;  %5216 = vmatmul.mubr.f32.gmra.mxu1 %v3119_v34 }
 0x373   : > { %v3997_v50 = vpop.f32.mrf.mxu0  ;;  %5218 = vmatprep.mubr.f32.mxu1 %v3120_v45  ;;  %v3783_v24 = vadd.f32 %v7115_v63, %v3782_v30 }
 0x374   : > { %v7210_v61 = vadd.f32 %v3997_v50, %v3773_v48  ;;  %v3784_v38 = vpop.f32.mrf.mxu1  ;;  %v3130_v48 = vld [vmem:[#allocation2 + $0x13a] sm:$0xff] }
 0x375   : > { %v3999_v2 = vpop.f32.mrf.mxu0 }
 0x376   : > { %v3787_v22 = vpop.f32.mrf.mxu1  ;;  %5219 = vmatmul.mubr.f32.gmra.mxu1 %v3121_v25  ;;  %v3131_v2 = vld [vmem:[#allocation2 + $0x142] sm:$0xff] }
 0x377   : > { %v4002_v17 = vpop.f32.mrf.mxu0  ;;  %5221 = vmatprep.mubr.f32.mxu1 %v3122_v21  ;;  %v3788_v18 = vadd.f32 %v7115_v63, %v3787_v22  ;;  %v3132_v22 = vld [vmem:[#allocation2 + $0x152] sm:$0xff] }
 0x378   : > { %v7213_v37 = vadd.f32 %v4002_v17, %v3778_v58  ;;  %v3789_v7 = vpop.f32.mrf.mxu1 }
 0x379   : > { %v4004_v43 = vpop.f32.mrf.mxu0 }
 0x37a   : > { %v3792_v60 = vpop.f32.mrf.mxu1  ;;  %5222 = vmatmul.mubr.f32.gmra.mxu1 %v3123_v6  ;;  %v3133_v6 = vld [vmem:[#allocation2 + $0x15a] sm:$0xff] }
 0x37b   : > { %v4007_v29 = vpop.f32.mrf.mxu0  ;;  %5224 = vmatprep.mubr.f32.mxu1 %v3124_v8  ;;  %v3793_v26 = vadd.f32 %v7115_v63, %v3792_v60  ;;  %v3134_v8 = vld [vmem:[#allocation2 + $0x16a] sm:$0xff] }
 0x37c   : > { %v7216_v41 = vadd.f32 %v4007_v29, %v3783_v24  ;;  %v3794_v11 = vpop.f32.mrf.mxu1 }
 0x37d   : > { %v4009_v9 = vpop.f32.mrf.mxu0 }
 0x37e   : > { %v3797_v54 = vpop.f32.mrf.mxu1  ;;  %5225 = vmatmul.mubr.f32.gmra.mxu1 %v3125_v27 }
 0x37f   : > { %v4012_v36 = vpop.f32.mrf.mxu0  ;;  %5227 = vmatprep.mubr.f32.mxu1 %v3126_v32  ;;  %v3798_v16 = vadd.f32 %v7115_v63, %v3797_v54 }
 0x380   : > { %v7219_v19 = vadd.f32 %v4012_v36, %v3788_v18  ;;  %v3799_v28 = vpop.f32.mrf.mxu1  ;;  %v3135_v18 = vld [vmem:[#allocation2 + $0x172] sm:$0xff] }
 0x381   : > { %v4014_v5 = vpop.f32.mrf.mxu0 }
 0x382   : > { %v3802_v53 = vpop.f32.mrf.mxu1  ;;  %5228 = vmatmul.mubr.f32.gmra.mxu1 %v3127_v56  ;;  %v3138_v56 = vld [vmem:[#allocation2 + $0x19a] sm:$0xff] }
 0x383   : > { %v4017_v42 = vpop.f32.mrf.mxu0  ;;  %5230 = vmatprep.mubr.f32.mxu1 %v3128_v20  ;;  %v3803_v25 = vadd.f32 %v7115_v63, %v3802_v53 }
 0x384   : > { %v7222_v39 = vadd.f32 %v4017_v42, %v3793_v26  ;;  %v3804_v12 = vpop.f32.mrf.mxu1 }
 0x385   : > { %v4019_v14 = vpop.f32.mrf.mxu0  ;;  %v3139_v12 = vld [vmem:[#allocation2 + $0x1a2] sm:$0xff] }
 0x386   : > { %v3807_v34 = vpop.f32.mrf.mxu1  ;;  %5231 = vmatmul.mubr.f32.gmra.mxu1 %v3129_v57 }
 0x387   : > { %v4022_v30 = vpop.f32.mrf.mxu0  ;;  %5233 = vmatprep.mubr.f32.mxu1 %v3130_v48  ;;  %v3808_v24 = vadd.f32 %v7115_v63, %v3807_v34 }
 0x388   : > { %v7225_v45 = vadd.f32 %v4022_v30, %v3798_v16  ;;  %v3809_v50 = vpop.f32.mrf.mxu1 }
 0x389   : > { %v4024_v38 = vpop.f32.mrf.mxu0 }
 0x38a   : > { %v3812_v58 = vpop.f32.mrf.mxu1  ;;  %5234 = vmatmul.mubr.f32.gmra.mxu1 %v3131_v2 }
 0x38b   : > { %v4027_v21 = vpop.f32.mrf.mxu0  ;;  %5236 = vmatprep.mubr.f32.mxu1 %v3132_v22  ;;  %v3813_v54 = vadd.f32 %v7115_v63, %v3812_v58 }
 0x38c   : > { %v7228_v17 = vadd.f32 %v4027_v21, %v3803_v25  ;;  %v3814_v7 = vpop.f32.mrf.mxu1 }
 0x38d   : > { %v4029_v43 = vpop.f32.mrf.mxu0 }
 0x38e   : > { %v3817_v60 = vpop.f32.mrf.mxu1  ;;  %5237 = vmatmul.mubr.f32.gmra.mxu1 %v3133_v6 }
 0x38f   : > { %v4032_v29 = vpop.f32.mrf.mxu0  ;;  %5239 = vmatprep.mubr.f32.mxu1 %v3134_v8  ;;  %v3818_v53 = vadd.f32 %v7115_v63, %v3817_v60 }
 0x390   : > { %v7231_v11 = vadd.f32 %v4032_v29, %v3808_v24  ;;  %v3819_v9 = vpop.f32.mrf.mxu1 }
 0x391   : > { %v4034_v27 = vpop.f32.mrf.mxu0 }
 0x392   : > { %v3822_v32 = vpop.f32.mrf.mxu1  ;;  %5240 = vmatmul.mubr.f32.gmra.mxu1 %v3135_v18 }
 0x393   : > { %v4037_v36 = vpop.f32.mrf.mxu0  ;;  %5242 = vmatprep.mubr.f32.mxu1 %v7177_v1  ;;  %v3823_v34 = vadd.f32 %v7115_v63, %v3822_v32 }
 0x394   : > { %v7235_v28 = vadd.f32 %v4037_v36, %v3813_v54  ;;  %v3824_v5 = vpop.f32.mrf.mxu1 }
 0x395   : > { %v4039_v26 = vpop.f32.mrf.mxu0 }
 0x396   : > { %v3827_v20 = vpop.f32.mrf.mxu1  ;;  %5243 = vmatmul.mubr.f32.gmra.mxu1 %v7184_v46 }
 0x397   : > { %v4042_v42 = vpop.f32.mrf.mxu0  ;;  %5245 = vmatprep.mubr.f32.mxu1 %v3138_v56  ;;  %v3828_v2 = vadd.f32 %v7115_v63, %v3827_v20 }
 0x398   : > { %v7239_v14 = vadd.f32 %v4042_v42, %v3818_v53  ;;  %v3829_v57 = vpop.f32.mrf.mxu1 }
 0x399   : > { %v4044_v16 = vpop.f32.mrf.mxu0 }
 0x39a   : > { %v3832_v1 = vpop.f32.mrf.mxu1  ;;  %5246 = vmatmul.mubr.f32.gmra.mxu1 %v3139_v12 }
 0x39b   : > { %v4047_v48 = vpop.f32.mrf.mxu0  ;;  %v3833_v43 = vadd.f32 %v7115_v63, %v3832_v1 }
 0x39c   : > { %v7242_v30 = vadd.f32 %v4047_v48, %v3823_v34  ;;  %v3834_v50 = vpop.f32.mrf.mxu1 }
 0x39d   : > { %v4049_v38 = vpop.f32.mrf.mxu0 }
 0x39e   : > { %v4127_v25 = vpop.f32.mrf.mxu1 }
 0x39f   : > { %v4052_v46 = vpop.f32.mrf.mxu0  ;;  %v4128_v58 = vadd.f32 %v4127_v25, %v7123_v52 }
 0x3a0   : > { %v7246_v22 = vadd.f32 %v4052_v46, %v3828_v2  ;;  %v4129_v21 = vpop.f32.mrf.mxu1 }
 0x3a1   : > { %v4054_v7 = vpop.f32.mrf.mxu0 }
 0x3a2   : > { %v4132_v6 = vpop.f32.mrf.mxu1 }
 0x3a3   : > { %v4057_v24 = vpop.f32.mrf.mxu0  ;;  %v4133_v60 = vadd.f32 %v4132_v6, %v7129_v55 }
 0x3a4   : > { %v7250_v8 = vadd.f32 %v4057_v24, %v3833_v43  ;;  %v4134_v29 = vpop.f32.mrf.mxu1 }
 0x3a5   : > { %v4059_v9 = vpop.f32.mrf.mxu0 }
 0x3a6   : > { %v4137_v27 = vpop.f32.mrf.mxu1 }
 0x3a7   : > { %v4138_v18 = vadd.f32 %v4137_v27, %v7134_v62  ;;  %v4352_v54 = vpop.f32.mrf.mxu0 }
 0x3a8   : > { %v7253_v32 = vadd.f32 %v4352_v54, %v4128_v58  ;;  %v4139_v52 = vpop.f32.mrf.mxu1 }
 0x3a9   : > { %v4354_v36 = vpop.f32.mrf.mxu0 }
 0x3aa   : > { %v4142_v5 = vpop.f32.mrf.mxu1 }
 0x3ab   : > { %v4143_v56 = vadd.f32 %v4142_v5, %v7139_v31  ;;  %v4357_v63 = vpop.f32.mrf.mxu0 }
 0x3ac   : > { %v7256_v26 = vadd.f32 %v4357_v63, %v4133_v60  ;;  %v4144_v53 = vpop.f32.mrf.mxu1 }
 0x3ad   : > { %v4359_v55 = vpop.f32.mrf.mxu0 }
 0x3ae   : > { %v4147_v20 = vpop.f32.mrf.mxu1 }
 0x3af   : > { %v4148_v42 = vadd.f32 %v4147_v20, %v7144_v4  ;;  %v4362_v12 = vpop.f32.mrf.mxu0 }
 0x3b0   : > { %v7259_v57 = vadd.f32 %v4362_v12, %v4138_v18  ;;  %v4149_v62 = vpop.f32.mrf.mxu1 }
 0x3b1   : > { %v4364_v16 = vpop.f32.mrf.mxu0 }
 0x3b2   : > { %v4152_v34 = vpop.f32.mrf.mxu1 }
 0x3b3   : > { %v4153_v1 = vadd.f32 %v4152_v34, %v7149_v10  ;;  %v4367_v48 = vpop.f32.mrf.mxu0 }
 0x3b4   : > { %v7262_v50 = vadd.f32 %v4367_v48, %v4143_v56  ;;  %v4154_v31 = vpop.f32.mrf.mxu1 }
 0x3b5   : > { %v4369_v38 = vpop.f32.mrf.mxu0 }
 0x3b6   : > { %v4157_v2 = vpop.f32.mrf.mxu1 }
 0x3b7   : > { %v4158_v25 = vadd.f32 %v4157_v2, %v7154_v49  ;;  %v4372_v46 = vpop.f32.mrf.mxu0 }
 0x3b8   : > { %v7265_v58 = vadd.f32 %v4372_v46, %v4148_v42  ;;  %v4159_v4 = vpop.f32.mrf.mxu1 }
 0x3b9   : > { %v4374_v21 = vpop.f32.mrf.mxu0 }
 0x3ba   : > { %v4162_v7 = vpop.f32.mrf.mxu1 }
 0x3bb   : > { %v4163_v43 = vadd.f32 %v4162_v7, %v7159_v47  ;;  %v4377_v6 = vpop.f32.mrf.mxu0 }
 0x3bc   : > { %v7268_v24 = vadd.f32 %v4377_v6, %v4153_v1  ;;  %v4164_v10 = vpop.f32.mrf.mxu1 }
 0x3bd   : > { %v4379_v60 = vpop.f32.mrf.mxu0 }
 0x3be   : > { %v4167_v29 = vpop.f32.mrf.mxu1 }
 0x3bf   : > { %v4168_v9 = vadd.f32 %v4167_v29, %v7164_v44  ;;  %v4382_v27 = vpop.f32.mrf.mxu0 }
 0x3c0   : > { %v7271_v18 = vadd.f32 %v4382_v27, %v4158_v25  ;;  %v4169_v49 = vpop.f32.mrf.mxu1 }
 0x3c1   : > { %v4384_v54 = vpop.f32.mrf.mxu0 }
 0x3c2   : > { %v4172_v52 = vpop.f32.mrf.mxu1 }
 0x3c3   : > { %v4173_v36 = vadd.f32 %v4172_v52, %v7169_v33  ;;  %v4387_v5 = vpop.f32.mrf.mxu0 }
 0x3c4   : > { %v7274_v56 = vadd.f32 %v4387_v5, %v4163_v43  ;;  %v4174_v47 = vpop.f32.mrf.mxu1 }
 0x3c5   : > { %v4389_v63 = vpop.f32.mrf.mxu0 }
 0x3c6   : > { %v4177_v53 = vpop.f32.mrf.mxu1 }
 0x3c7   : > { %v4178_v55 = vadd.f32 %v4177_v53, %v7174_v3  ;;  %v4392_v20 = vpop.f32.mrf.mxu0 }
 0x3c8   : > { %v7277_v42 = vadd.f32 %v4392_v20, %v4168_v9  ;;  %v4179_v44 = vpop.f32.mrf.mxu1 }
 0x3c9   : > { %v4394_v12 = vpop.f32.mrf.mxu0 }
 0x3ca   : > { %v4182_v62 = vpop.f32.mrf.mxu1 }
 0x3cb   : > { %v4183_v16 = vadd.f32 %v4182_v62, %v7181_v40  ;;  %v4397_v34 = vpop.f32.mrf.mxu0 }
 0x3cc   : > { %v7280_v1 = vadd.f32 %v4397_v34, %v4173_v36  ;;  %v4184_v33 = vpop.f32.mrf.mxu1 }
 0x3cd   : > { %v4399_v48 = vpop.f32.mrf.mxu0 }
 0x3ce   : > { %v4187_v31 = vpop.f32.mrf.mxu1 }
 0x3cf   : > { %v4188_v38 = vadd.f32 %v4187_v31, %v7188_v35  ;;  %v4402_v2 = vpop.f32.mrf.mxu0 }
 0x3d0   : > { %v7283_v25 = vadd.f32 %v4402_v2, %v4178_v55  ;;  %v4189_v3 = vpop.f32.mrf.mxu1 }
 0x3d1   : > { %v4404_v46 = vpop.f32.mrf.mxu0 }
 0x3d2   : > { %v4192_v4 = vpop.f32.mrf.mxu1 }
 0x3d3   : > { %v4193_v21 = vadd.f32 %v4192_v4, %v7192_v23  ;;  %v4407_v7 = vpop.f32.mrf.mxu0 }
 0x3d4   : > { %v7286_v43 = vadd.f32 %v4407_v7, %v4183_v16  ;;  %v4194_v40 = vpop.f32.mrf.mxu1 }
 0x3d5   : > { %v4409_v6 = vpop.f32.mrf.mxu0 }
 0x3d6   : > { %v4197_v10 = vpop.f32.mrf.mxu1 }
 0x3d7   : > { %v4198_v60 = vadd.f32 %v4197_v10, %v7195_v13  ;;  %v4412_v29 = vpop.f32.mrf.mxu0 }
 0x3d8   : > { %v7289_v9 = vadd.f32 %v4412_v29, %v4188_v38  ;;  %v4199_v35 = vpop.f32.mrf.mxu1 }
 0x3d9   : > { %v4414_v27 = vpop.f32.mrf.mxu0 }
 0x3da   : > { %v4202_v49 = vpop.f32.mrf.mxu1 }
 0x3db   : > { %v4203_v54 = vadd.f32 %v4202_v49, %v7198_v15  ;;  %v4417_v52 = vpop.f32.mrf.mxu0 }
 0x3dc   : > { %v7292_v36 = vadd.f32 %v4417_v52, %v4193_v21  ;;  %v4204_v23 = vpop.f32.mrf.mxu1 }
 0x3dd   : > { %v4419_v5 = vpop.f32.mrf.mxu0 }
 0x3de   : > { %v4207_v47 = vpop.f32.mrf.mxu1 }
 0x3df   : > { %v4208_v63 = vadd.f32 %v4207_v47, %v7201_v0  ;;  %v4422_v53 = vpop.f32.mrf.mxu0 }
 0x3e0   : > { %v7295_v55 = vadd.f32 %v4422_v53, %v4198_v60  ;;  %v4209_v13 = vpop.f32.mrf.mxu1 }
 0x3e1   : > { %v4424_v20 = vpop.f32.mrf.mxu0 }
 0x3e2   : > { %v4212_v44 = vpop.f32.mrf.mxu1 }
 0x3e3   : > { %v4213_v12 = vadd.f32 %v4212_v44, %v7204_v59  ;;  %v4427_v62 = vpop.f32.mrf.mxu0 }
 0x3e4   : > { %v7298_v16 = vadd.f32 %v4427_v62, %v4203_v54  ;;  %v4214_v15 = vpop.f32.mrf.mxu1 }
 0x3e5   : > { %v4429_v34 = vpop.f32.mrf.mxu0 }
 0x3e6   : > { %v4217_v33 = vpop.f32.mrf.mxu1 }
 0x3e7   : > { %v4218_v48 = vadd.f32 %v4217_v33, %v7207_v51  ;;  %v4432_v31 = vpop.f32.mrf.mxu0 }
 0x3e8   : > { %v7301_v38 = vadd.f32 %v4432_v31, %v4208_v63  ;;  %v4219_v0 = vpop.f32.mrf.mxu1 }
 0x3e9   : > { %v4434_v2 = vpop.f32.mrf.mxu0 }
 0x3ea   : > { %v4222_v3 = vpop.f32.mrf.mxu1 }
 0x3eb   : > { %v4223_v46 = vadd.f32 %v4222_v3, %v7210_v61  ;;  %v4437_v4 = vpop.f32.mrf.mxu0 }
 0x3ec   : > { %v7304_v21 = vadd.f32 %v4437_v4, %v4213_v12  ;;  %v4224_v59 = vpop.f32.mrf.mxu1 }
 0x3ed   : > { %v4439_v7 = vpop.f32.mrf.mxu0 }
 0x3ee   : > { %v4227_v40 = vpop.f32.mrf.mxu1 }
 0x3ef   : > { %v4228_v6 = vadd.f32 %v4227_v40, %v7213_v37  ;;  %v4442_v10 = vpop.f32.mrf.mxu0 }
 0x3f0   : > { %v7307_v60 = vadd.f32 %v4442_v10, %v4218_v48  ;;  %v4229_v51 = vpop.f32.mrf.mxu1 }
 0x3f1   : > { %v4444_v29 = vpop.f32.mrf.mxu0 }
 0x3f2   : > { %v4232_v35 = vpop.f32.mrf.mxu1 }
 0x3f3   : > { %v4233_v27 = vadd.f32 %v4232_v35, %v7216_v41  ;;  %v4447_v49 = vpop.f32.mrf.mxu0 }
 0x3f4   : > { %v7310_v54 = vadd.f32 %v4447_v49, %v4223_v46  ;;  %v4234_v61 = vpop.f32.mrf.mxu1 }
 0x3f5   : > { %v4449_v52 = vpop.f32.mrf.mxu0 }
 0x3f6   : > { %v4237_v23 = vpop.f32.mrf.mxu1 }
 0x3f7   : > { %v4238_v5 = vadd.f32 %v4237_v23, %v7219_v19  ;;  %v4452_v47 = vpop.f32.mrf.mxu0 }
 0x3f8   : > { %v7313_v63 = vadd.f32 %v4452_v47, %v4228_v6  ;;  %v4239_v37 = vpop.f32.mrf.mxu1 }
 0x3f9   : > { %v4454_v53 = vpop.f32.mrf.mxu0 }
 0x3fa   : > { %v4242_v13 = vpop.f32.mrf.mxu1 }
 0x3fb   : > { %v4243_v20 = vadd.f32 %v4242_v13, %v7222_v39  ;;  %v4457_v44 = vpop.f32.mrf.mxu0 }
 0x3fc   : > { %v7316_v12 = vadd.f32 %v4457_v44, %v4233_v27  ;;  %v4244_v41 = vpop.f32.mrf.mxu1 }
 0x3fd   : > { %v4459_v62 = vpop.f32.mrf.mxu0 }
 0x3fe   : > { %v4247_v15 = vpop.f32.mrf.mxu1 }
 0x3ff   : > { %v4248_v34 = vadd.f32 %v4247_v15, %v7225_v45  ;;  %v4462_v33 = vpop.f32.mrf.mxu0 }
 0x400   : > { %v7319_v48 = vadd.f32 %v4462_v33, %v4238_v5  ;;  %v4249_v19 = vpop.f32.mrf.mxu1 }
 0x401   : > { %v4464_v31 = vpop.f32.mrf.mxu0 }
 0x402   : > { %v4252_v0 = vpop.f32.mrf.mxu1 }
 0x403   : > { %v4253_v2 = vadd.f32 %v4252_v0, %v7228_v17  ;;  %v4467_v3 = vpop.f32.mrf.mxu0  ;;  %v4737_v0 = vld [vmem:[%s5687_s13 + $0x8] sm:$0xff] }
 0x404   : > { %v7322_v46 = vadd.f32 %v4467_v3, %v4243_v20  ;;  %v4254_v39 = vpop.f32.mrf.mxu1 }
 0x405   : > { %v4469_v4 = vpop.f32.mrf.mxu0  ;;  %v4736_v39 = vld [vmem:[%s5687_s13] sm:$0xff] }
 0x406   : > { %v4257_v59 = vpop.f32.mrf.mxu1 }
 0x407   : > { %v4258_v7 = vadd.f32 %v4257_v59, %v7231_v11  ;;  %v4472_v40 = vpop.f32.mrf.mxu0 }
 0x408   : > { %v7325_v6 = vadd.f32 %v4472_v40, %v4248_v34  ;;  %v4259_v45 = vpop.f32.mrf.mxu1 }
 0x409   : > { %v4474_v10 = vpop.f32.mrf.mxu0  ;;  %v4739_v45 = vld [vmem:[%s5687_s13 + $0x18] sm:$0xff] }
 0x40a   : > { %v4262_v51 = vpop.f32.mrf.mxu1 }
 0x40b   : > { %v7328_v29 = vadd.f32 %v4262_v51, %v7235_v28  ;;  %v4477_v35 = vpop.f32.mrf.mxu0 }
 0x40c   : > { %v7330_v27 = vadd.f32 %v4477_v35, %v4253_v2  ;;  %v4264_v17 = vpop.f32.mrf.mxu1 }
 0x40d   : > { %v4479_v49 = vpop.f32.mrf.mxu0 }
 0x40e   : > { %v4267_v61 = vpop.f32.mrf.mxu1 }
 0x40f   : > { %v7333_v52 = vadd.f32 %v4267_v61, %v7239_v14  ;;  %v4482_v23 = vpop.f32.mrf.mxu0  ;;  %v4738_v61 = vld [vmem:[%s5687_s13 + $0x10] sm:$0xff] }
 0x410   : > { %v7335_v11 = vadd.f32 %v4482_v23, %v4258_v7  ;;  %v4269_v5 = vpop.f32.mrf.mxu1 }
 0x411   : > { %v4484_v47 = vpop.f32.mrf.mxu0 }
 0x412   : > { %v4272_v37 = vpop.f32.mrf.mxu1 }
 0x413   : > { %v7338_v53 = vadd.f32 %v4272_v37, %v7242_v30  ;;  %v7340_v28 = vpop.f32.mrf.mxu0  ;;  %v4741_v37 = vld [vmem:[%s5687_s13 + $0x28] sm:$0xff] }
 0x414   : > { %v4274_v13 = vpop.f32.mrf.mxu1 }
 0x415   : > { %v4489_v20 = vpop.f32.mrf.mxu0 }
 0x416   : > { %v4277_v44 = vpop.f32.mrf.mxu1 }
 0x417   : > { %v7343_v41 = vadd.f32 %v4277_v44, %v7246_v22  ;;  %v7345_v14 = vpop.f32.mrf.mxu0 }
 0x418   : > { %v4279_v62 = vpop.f32.mrf.mxu1 }
 0x419   : > { %v4494_v15 = vpop.f32.mrf.mxu0  ;;  %v4740_v62 = vld [vmem:[%s5687_s13 + $0x20] sm:$0xff] }
 0x41a   : > { %v7347_v34 = vpop.f32.mrf.mxu1 }
 0x41b   : > { %v7349_v33 = vpop.f32.mrf.mxu0 }
 0x41c   : > { %v4284_v30 = vpop.f32.mrf.mxu1 }
 0x41d   : > { %v4499_v19 = vpop.f32.mrf.mxu0 }
 0x41e   : > { %v5202_v31 = vpop.f32.mrf.mxu1 }
 0x41f   : > { %v7352_v2 = vpop.f32.mrf.mxu0  ;;  %v4583_v22 = vadd.f32 %v5202_v31, %v7256_v26  ;;  %v4743_v31 = vld [vmem:[%s5687_s13 + $0x38] sm:$0xff] }
 0x420   : > { %v4577_v3 = vpop.f32.mrf.mxu1 }
 0x421   : > { %v4769_v4 = vadd.f32 %v4737_v0, %v4583_v22  ;;  %v4504_v59 = vpop.f32.mrf.mxu0  ;;  %v4578_v7 = vadd.f32 %v4577_v3, %v7253_v32 }
 0x422   : > { %v5205_v40 = vpop.f32.mrf.mxu1 }
 0x423   : > { %v4801_v10 = vmax.f32 %v4769_v4, 0.0  ;;  %v4768_v51 = vadd.f32 %v4736_v39, %v4578_v7  ;;  %v7358_v35 = vpop.f32.mrf.mxu0  ;;  %v4593_v17 = vadd.f32 %v5205_v40, %v7262_v50 }
 0x424   : > { %v4587_v49 = vpop.f32.mrf.mxu1 }
 0x425   : > { %4833 = vst [vmem:[%s7364_s12 + $0x8] sm:$0xff] %v4801_v10  ;;  %v4800_v32 = vmax.f32 %v4768_v51, 0.0  ;;  %v4771_v26 = vadd.f32 %v4739_v45, %v4593_v17  ;;  %v4588_v23 = vadd.f32 %v4587_v49, %v7259_v57  ;;  %v4509_v5 = vpop.f32.mrf.mxu0 }
 0x426   : > { %v5208_v47 = vpop.f32.mrf.mxu1 }
 0x427   : > { %4832 = vst [vmem:[%s7364_s12] sm:$0xff] %v4800_v32  ;;  %v4803_v50 = vmax.f32 %v4771_v26, 0.0  ;;  %v4770_v13 = vadd.f32 %v4738_v61, %v4588_v23  ;;  %v4603_v20 = vadd.f32 %v5208_v47, %v7268_v24  ;;  %v4742_v24 = vld [vmem:[%s5687_s13 + $0x30] sm:$0xff] }
 0x428   : > { %v4597_v44 = vpop.f32.mrf.mxu1 }
 0x429   : > { %4835 = vst [vmem:[%s7364_s12 + $0x18] sm:$0xff] %v4803_v50  ;;  %v4802_v15 = vmax.f32 %v4770_v13, 0.0  ;;  %v4773_v30 = vadd.f32 %v4741_v37, %v4603_v20  ;;  %v4598_v57 = vadd.f32 %v4597_v44, %v7265_v58  ;;  %v4745_v58 = vld [vmem:[%s5687_s13 + $0x48] sm:$0xff] }
 0x42a   : > { %v5211_v19 = vpop.f32.mrf.mxu1 }
 0x42b   : > { %4834 = vst [vmem:[%s7364_s12 + $0x10] sm:$0xff] %v4802_v15  ;;  %v4805_v0 = vmax.f32 %v4773_v30, 0.0  ;;  %v4772_v22 = vadd.f32 %v4740_v62, %v4598_v57  ;;  %v4613_v3 = vadd.f32 %v5211_v19, %v7274_v56  ;;  %v4744_v56 = vld [vmem:[%s5687_s13 + $0x40] sm:$0xff] }
 0x42c   : > { %v4607_v39 = vpop.f32.mrf.mxu1 }
 0x42d   : > { %4837 = vst [vmem:[%s7364_s12 + $0x28] sm:$0xff] %v4805_v0  ;;  %v4804_v4 = vmax.f32 %v4772_v22, 0.0  ;;  %v4775_v59 = vadd.f32 %v4743_v31, %v4613_v3  ;;  %v4608_v7 = vadd.f32 %v4607_v39, %v7271_v18  ;;  %v4747_v18 = vld [vmem:[%s5687_s13 + $0x58] sm:$0xff] }
 0x42e   : > { %v5214_v40 = vpop.f32.mrf.mxu1 }
 0x42f   : > { %4836 = vst [vmem:[%s7364_s12 + $0x20] sm:$0xff] %v4804_v4  ;;  %v4807_v45 = vmax.f32 %v4775_v59, 0.0  ;;  %v4774_v10 = vadd.f32 %v4742_v24, %v4608_v7  ;;  %v4623_v51 = vadd.f32 %v5214_v40, %v7280_v1  ;;  %v4746_v1 = vld [vmem:[%s5687_s13 + $0x50] sm:$0xff] }
 0x430   : > { %v4617_v17 = vpop.f32.mrf.mxu1 }
 0x431   : > { %4839 = vst [vmem:[%s7364_s12 + $0x38] sm:$0xff] %v4807_v45  ;;  %v4806_v49 = vmax.f32 %v4774_v10, 0.0  ;;  %v4777_v61 = vadd.f32 %v4745_v58, %v4623_v51  ;;  %v4618_v32 = vadd.f32 %v4617_v17, %v7277_v42  ;;  %v4749_v42 = vld [vmem:[%s5687_s13 + $0x68] sm:$0xff] }
 0x432   : > { %v5217_v26 = vpop.f32.mrf.mxu1 }
 0x433   : > { %4838 = vst [vmem:[%s7364_s12 + $0x30] sm:$0xff] %v4806_v49  ;;  %v4809_v23 = vmax.f32 %v4777_v61, 0.0  ;;  %v4776_v5 = vadd.f32 %v4744_v56, %v4618_v32  ;;  %v4633_v47 = vadd.f32 %v5217_v26, %v7286_v43  ;;  %v4748_v43 = vld [vmem:[%s5687_s13 + $0x60] sm:$0xff] }
 0x434   : > { %v4627_v37 = vpop.f32.mrf.mxu1 }
 0x435   : > { %4841 = vst [vmem:[%s7364_s12 + $0x48] sm:$0xff] %v4809_v23  ;;  %v4808_v50 = vmax.f32 %v4776_v5, 0.0  ;;  %v4779_v13 = vadd.f32 %v4747_v18, %v4633_v47  ;;  %v4628_v20 = vadd.f32 %v4627_v37, %v7283_v25  ;;  %v4751_v25 = vld [vmem:[%s5687_s13 + $0x78] sm:$0xff] }
 0x436   : > { %v5220_v44 = vpop.f32.mrf.mxu1 }
 0x437   : > { %4840 = vst [vmem:[%s7364_s12 + $0x40] sm:$0xff] %v4808_v50  ;;  %v4811_v62 = vmax.f32 %v4779_v13, 0.0  ;;  %v4778_v15 = vadd.f32 %v4746_v1, %v4628_v20  ;;  %v4643_v30 = vadd.f32 %v5220_v44, %v7292_v36  ;;  %v4750_v36 = vld [vmem:[%s5687_s13 + $0x70] sm:$0xff] }
 0x438   : > { %v4637_v57 = vpop.f32.mrf.mxu1 }
 0x439   : > { %4843 = vst [vmem:[%s7364_s12 + $0x58] sm:$0xff] %v4811_v62  ;;  %v4810_v19 = vmax.f32 %v4778_v15, 0.0  ;;  %v4781_v31 = vadd.f32 %v4749_v42, %v4643_v30  ;;  %v4638_v0 = vadd.f32 %v4637_v57, %v7289_v9  ;;  %v4753_v9 = vld [vmem:[%s5687_s13 + $0x88] sm:$0xff] }
 0x43a   : > { %v5223_v22 = vpop.f32.mrf.mxu1 }
 0x43b   : > { %4842 = vst [vmem:[%s7364_s12 + $0x50] sm:$0xff] %v4810_v19  ;;  %v4813_v3 = vmax.f32 %v4781_v31, 0.0  ;;  %v4780_v39 = vadd.f32 %v4748_v43, %v4638_v0  ;;  %v4653_v24 = vadd.f32 %v5223_v22, %v7298_v16  ;;  %v4752_v16 = vld [vmem:[%s5687_s13 + $0x80] sm:$0xff] }
 0x43c   : > { %v4647_v4 = vpop.f32.mrf.mxu1 }
 0x43d   : > { %4845 = vst [vmem:[%s7364_s12 + $0x68] sm:$0xff] %v4813_v3  ;;  %v4812_v59 = vmax.f32 %v4780_v39, 0.0  ;;  %v4783_v7 = vadd.f32 %v4751_v25, %v4653_v24  ;;  %v4648_v40 = vadd.f32 %v4647_v4, %v7295_v55  ;;  %v4755_v55 = vld [vmem:[%s5687_s13 + $0x98] sm:$0xff] }
 0x43e   : > { %v5226_v58 = vpop.f32.mrf.mxu1 }
 0x43f   : > { %4844 = vst [vmem:[%s7364_s12 + $0x60] sm:$0xff] %v4812_v59  ;;  %v4815_v45 = vmax.f32 %v4783_v7, 0.0  ;;  %v4782_v10 = vadd.f32 %v4750_v36, %v4648_v40  ;;  %v4663_v51 = vadd.f32 %v5226_v58, %v7304_v21  ;;  %v4754_v21 = vld [vmem:[%s5687_s13 + $0x90] sm:$0xff]  ;;  %v4488_v7 = vadd.f32 %v7340_v28, %v7328_v29 }
 0x440   : > { %v4657_v17 = vpop.f32.mrf.mxu1 }
 0x441   : > { %4847 = vst [vmem:[%s7364_s12 + $0x78] sm:$0xff] %v4815_v45  ;;  %v4814_v56 = vmax.f32 %v4782_v10, 0.0  ;;  %v4785_v49 = vadd.f32 %v4753_v9, %v4663_v51  ;;  %v4658_v61 = vadd.f32 %v4657_v17, %v7301_v38  ;;  %v4757_v38 = vld [vmem:[%s5687_s13 + $0xa8] sm:$0xff]  ;;  %v4763_v45 = vld [vmem:[%s5687_s13 + $0xd8] sm:$0xff] }
 0x442   : > { %v5229_v32 = vpop.f32.mrf.mxu1 }
 0x443   : > { %4846 = vst [vmem:[%s7364_s12 + $0x70] sm:$0xff] %v4814_v56  ;;  %v4817_v26 = vmax.f32 %v4785_v49, 0.0  ;;  %v4784_v18 = vadd.f32 %v4752_v16, %v4658_v61  ;;  %v4673_v23 = vadd.f32 %v5229_v32, %v7310_v54  ;;  %v4756_v54 = vld [vmem:[%s5687_s13 + $0xa0] sm:$0xff]  ;;  %v4762_v16 = vld [vmem:[%s5687_s13 + $0xd0] sm:$0xff]  ;;  %v4498_v56 = vadd.f32 %v7349_v33, %v7338_v53  ;;  %v4765_v32 = vld [vmem:[%s5687_s13 + $0xe8] sm:$0xff] }
 0x444   : > { %v4667_v5 = vpop.f32.mrf.mxu1  ;;  %v4493_v49 = vadd.f32 %v7345_v14, %v7333_v52 }
 0x445   : > { %4849 = vst [vmem:[%s7364_s12 + $0x88] sm:$0xff] %v4817_v26  ;;  %v4816_v47 = vmax.f32 %v4784_v18, 0.0  ;;  %v4787_v37 = vadd.f32 %v4755_v55, %v4673_v23  ;;  %v4668_v1 = vadd.f32 %v4667_v5, %v7307_v60  ;;  %v4759_v60 = vld [vmem:[%s5687_s13 + $0xb8] sm:$0xff]  ;;  %v4283_v55 = vadd.f32 %v7347_v34, %v7250_v8  ;;  %v4764_v23 = vld [vmem:[%s5687_s13 + $0xe0] sm:$0xff] }
 0x446   : > { %v5232_v50 = vpop.f32.mrf.mxu1  ;;  %v4503_v8 = vadd.f32 %v7352_v2, %v7343_v41 }
 0x447   : > { %4848 = vst [vmem:[%s7364_s12 + $0x80] sm:$0xff] %v4816_v47  ;;  %v4819_v13 = vmax.f32 %v4787_v37, 0.0  ;;  %v4786_v20 = vadd.f32 %v4754_v21, %v4668_v1  ;;  %v4683_v44 = vadd.f32 %v5232_v50, %v7316_v12  ;;  %v4758_v12 = vld [vmem:[%s5687_s13 + $0xb0] sm:$0xff]  ;;  %v4767_v47 = vld [vmem:[%s5687_s13 + $0xf8] sm:$0xff] }
 0x448   : > { %v4677_v42 = vpop.f32.mrf.mxu1 }
 0x449   : > { %4851 = vst [vmem:[%s7364_s12 + $0x98] sm:$0xff] %v4819_v13  ;;  %v4818_v62 = vmax.f32 %v4786_v20, 0.0  ;;  %v4789_v15 = vadd.f32 %v4757_v38, %v4683_v44  ;;  %v4678_v30 = vadd.f32 %v4677_v42, %v7313_v63  ;;  %v4761_v63 = vld [vmem:[%s5687_s13 + $0xc8] sm:$0xff] }
 0x44a   : > { %v5235_v57 = vpop.f32.mrf.mxu1 }
 0x44b   : > { %4850 = vst [vmem:[%s7364_s12 + $0x90] sm:$0xff] %v4818_v62  ;;  %v4821_v43 = vmax.f32 %v4789_v15, 0.0  ;;  %v4788_v19 = vadd.f32 %v4756_v54, %v4678_v30  ;;  %v4693_v31 = vadd.f32 %v5235_v57, %v7322_v46  ;;  %v4760_v46 = vld [vmem:[%s5687_s13 + $0xc0] sm:$0xff] }
 0x44c   : > { %v4687_v0 = vpop.f32.mrf.mxu1 }
 0x44d   : > { %4853 = vst [vmem:[%s7364_s12 + $0xa8] sm:$0xff] %v4821_v43  ;;  %v4820_v22 = vmax.f32 %v4788_v19, 0.0  ;;  %v4791_v25 = vadd.f32 %v4759_v60, %v4693_v31  ;;  %v4688_v3 = vadd.f32 %v4687_v0, %v7319_v48 }
 0x44e   : > { %v5238_v39 = vpop.f32.mrf.mxu1 }
 0x44f   : > { %4852 = vst [vmem:[%s7364_s12 + $0xa0] sm:$0xff] %v4820_v22  ;;  %v4823_v24 = vmax.f32 %v4791_v25, 0.0  ;;  %v4790_v4 = vadd.f32 %v4758_v12, %v4688_v3  ;;  %v4703_v36 = vadd.f32 %v5238_v39, %v7330_v27 }
 0x450   : > { %v4697_v59 = vpop.f32.mrf.mxu1 }
 0x451   : > { %4855 = vst [vmem:[%s7364_s12 + $0xb8] sm:$0xff] %v4823_v24  ;;  %v4822_v40 = vmax.f32 %v4790_v4, 0.0  ;;  %v4793_v58 = vadd.f32 %v4761_v63, %v4703_v36  ;;  %v4698_v48 = vadd.f32 %v4697_v59, %v7325_v6 }
 0x452   : > { %v5241_v9 = vpop.f32.mrf.mxu1 }
 0x453   : > { %4854 = vst [vmem:[%s7364_s12 + $0xb0] sm:$0xff] %v4822_v40  ;;  %v4825_v10 = vmax.f32 %v4793_v58, 0.0  ;;  %v4792_v51 = vadd.f32 %v4760_v46, %v4698_v48  ;;  %v4713_v17 = vadd.f32 %v5241_v9, %v4488_v7 }
 0x454   : > { %v4707_v27 = vpop.f32.mrf.mxu1 }
 0x455   : > { %4857 = vst [vmem:[%s7364_s12 + $0xc8] sm:$0xff] %v4825_v10  ;;  %v4824_v29 = vmax.f32 %v4792_v51, 0.0  ;;  %v4795_v28 = vadd.f32 %v4763_v45, %v4713_v17  ;;  %v4708_v6 = vadd.f32 %v4707_v27, %v7335_v11  ;;  %v4508_v11 = vadd.f32 %v7358_v35, %v4283_v55  ;;  %v4766_v35 = vld [vmem:[%s5687_s13 + $0xf0] sm:$0xff] }
 0x456   : > { %v5244_v61 = vpop.f32.mrf.mxu1 }
 0x457   : > { %4856 = vst [vmem:[%s7364_s12 + $0xc0] sm:$0xff] %v4824_v29  ;;  %v4827_v26 = vmax.f32 %v4795_v28, 0.0  ;;  %v4794_v18 = vadd.f32 %v4762_v16, %v4708_v6  ;;  %v4723_v53 = vadd.f32 %v5244_v61, %v4498_v56 }
 0x458   : > { %v4717_v33 = vpop.f32.mrf.mxu1 }
 0x459   : > { %4859 = vst [vmem:[%s7364_s12 + $0xd8] sm:$0xff] %v4827_v26  ;;  %v4826_v5 = vmax.f32 %v4794_v18, 0.0  ;;  %v4797_v52 = vadd.f32 %v4765_v32, %v4723_v53  ;;  %v4718_v14 = vadd.f32 %v4717_v33, %v4493_v49 }
 0x45a   : > { %v5247_v21 = vpop.f32.mrf.mxu1 }
 0x45b   : > { %4858 = vst [vmem:[%s7364_s12 + $0xd0] sm:$0xff] %v4826_v5  ;;  %v4829_v34 = vmax.f32 %v4797_v52, 0.0  ;;  %v4796_v37 = vadd.f32 %v4764_v23, %v4718_v14  ;;  %v4733_v1 = vadd.f32 %v5247_v21, %v4508_v11 }
 0x45c   : > { %v4727_v50 = vpop.f32.mrf.mxu1 }
 0x45d   : > { %4861 = vst [vmem:[%s7364_s12 + $0xe8] sm:$0xff] %v4829_v34  ;;  %v4828_v38 = vmax.f32 %v4796_v37, 0.0  ;;  %v4799_v13 = vadd.f32 %v4767_v47, %v4733_v1  ;;  %v4728_v20 = vadd.f32 %v4727_v50, %v4503_v8 }
 0x45f   : > { %4860 = vst [vmem:[%s7364_s12 + $0xe0] sm:$0xff] %v4828_v38  ;;  %v4831_v44 = vmax.f32 %v4799_v13, 0.0  ;;  %v4798_v42 = vadd.f32 %v4766_v35, %v4728_v20 }
 0x461   : > { %4863 = vst [vmem:[%s7364_s12 + $0xf8] sm:$0xff] %v4831_v44  ;;  %v4830_v41 = vmax.f32 %v4798_v42, 0.0 }
 0x463   : > { %4862 = vst [vmem:[%s7364_s12 + $0xf0] sm:$0xff] %v4830_v41 }
 0x464   : > { %5449 = shalt.err (!%p5446_p3)
}
 0x465   : > { %s5450_s13 = scalar_lea.hbm %s7464_s11, 4096  ;;  %s5454_s9 = scalar_lea.hbm %s7516_s5, 8192 }
 0x466   : > { %p5451_p11 = scmp.ne.s32.totalorder %s7464_s11, %s5450_s13  ;;  %p5455_p4 = scmp.lt.s32.totalorder %s7464_s11, %s7516_s5 }
 0x467   : > { %p5456_p6 = scmp.lt.s32.totalorder %s5454_s9, %s5450_s13 }
 0x468   : > { %p5452_p9 = pnand %p5451_p11, %p7558_p2 }
 0x469   : > { %p5457_p8 = por %p5456_p6, %p5455_p4 }
 0x46a   : > { %p5453_p1 = pneg %p5452_p9 }
 0x46c   : > { %p5458_p5 = pnand %p5457_p8, %p5453_p1 }
 0x46e   : > { %5461 = shalt.err (!%p5458_p5)
}
 0x46f   : > { %s5513_s14 = smov 128   ;;  %s5514_s7 = smov 8  }
 0x470   : > { %5258 = dma.vmem_to_hbm [thread:$0]  (%p7558_p2), %s7466_s6, 4096, %s7464_s11, %s4865_s17, %s5513_s14, %s5513_s14, %s5514_s7  }
 0x471 PF: > { %s4893_s28 = sand.u32 1, %s5492_s18   ;;  %p7559_p7 = scmp.ne.s32.totalorder %s7532_s25, 0 }
 0x472   : > { %p7560_p12 = scmp.ge.s32.totalorder %s5504_s21, 2  ;;  %s4894_s16 = scalar_lea.sflag [#allocation6], %s4893_s28 }
 0x474   : > { %p5272_p13 = pnand %p7560_p12, %p7559_p7 }
 0x476   : > { %p5273_p0 = pneg %p5272_p13 }
 0x478   : > { %5487 = dma.done.wait (%p5273_p0), %s4894_s16, 4096  }
 0x479   : > { %5489 = vsyncadd (%p5273_p0), %s4894_s16, 4294963200  ;;  %p19_p10 = scmp.ge.s32.totalorder %s5623_s15, 4   ;;  %s7561_s18 = smov %s5496_s19 }
 0x47a   : > { %s7562_s19 = smov %s5500_s20  ;;  %s7563_s20 = smov %s5639_s27 }
 0x47b   : > { %s7564_s21 = smov %s5623_s15  ;;  %21 = sbr.rel (!%p19_p10) target bundleno = 6 (0x6), region = 95 }
 0x480   :  { %4899 = vsyncpa [#allocation5], 1 }
 0x481   :  { %4901 = vsyncpa [#allocation5 + $0x1], 1 }
 0x482   :  { %4902 = vsyncpa [#allocation8], 1 }
 0x483   :  { %4903 = vsyncpa [#allocation6], 1 }
 0x484   :  { %4905 = vsyncpa [#allocation6 + $0x1], 1 }

</bundles_post_ra>
